<compile_context>
chip_gen: v7x
topology: tpu7x:2x2x1
jax: 0.10.0
libtpu: 0.0.40
codegen_flags: <defaults>
</compile_context>

<pallas_src>
import functools

import jax
import jax.numpy as jnp
from jax.experimental import pallas as pl
from jax.experimental.pallas import tpu as pltpu

EPS = 1e-5                   # PyTorch BatchNorm1d default eps
IN_CHANNELS = 3
OUT_CHANNELS = 5             # ResNet output channels (= LSTM input size)
HIDDEN = 4                   # LSTM hidden size
NHL = 192                    # MLP hidden width
BLOCK_CFG = ((3, 2), (2, 2), (2, 5))   # (cin, cout) of the three residual blocks
MAX_K = 8
MAX_LEFT = (MAX_K - 1) // 2  # PyTorch 'same' padding: left = (K-1)//2, extra on the right
MAX_PAD = MAX_K - 1
# im2col patch rows = 1 ("ones" row carrying folded bias/BN shift) + K*Cin; this is also
# the packed conv-weight slab column count (weight columns map 1:1 to patch rows).
PATCH_ROWS = 1 + max(max(8 * cin, 5 * cout, 3 * cout) for cin, cout in BLOCK_CFG)
MAX_CHANNELS = max(max(cin, cout) for cin, cout in BLOCK_CFG)


# ----------------------------------------------------------------------------
# Fused kernel
# ----------------------------------------------------------------------------
def _fused_kernel(x_ref, convw_ref, lstmw_ref, mlp1_ref, mlp2_ref, out_ref,
                  pad_ref, col_ref, *, batch, winsize):
    B, W, H = batch, winsize, HIDDEN
    WB = W * B
    PAD_OFF = MAX_LEFT * B

    def mm(w, v):
        return jnp.dot(w, v, preferred_element_type=jnp.float32)

    # One-time scratch init: zero the padding margins, write the "ones" patch row.
    pad_ref[...] = jnp.zeros(pad_ref.shape, jnp.float32)
    col_ref[0:1, :] = jnp.ones((1, WB), jnp.float32)

    def build_patch(a, k_size):
        """im2col for Conv1d(padding='same'): (C, WB) -> (1 + k_size*C, WB) patch.

        Lanes are ordered time-major (lane = w*B + b), so padding in w is contiguous
        at the lane ends and every tap is a static lane slice of the zero-padded
        staging buffer.  Row 0 is all-ones (carries the folded bias + BN shift).
        """
        c = a.shape[0]
        left = (k_size - 1) // 2                      # PyTorch 'same': extra pad on the right
        pad_ref[0:c, PAD_OFF:PAD_OFF + WB] = a        # pad margins stay zero
        for k in range(k_size):
            lo = (MAX_LEFT + k - left) * B            # tap offset d = k - left
            col_ref[1 + k * c:1 + (k + 1) * c, :] = pad_ref[0:c, lo:lo + WB]
        return col_ref[0:1 + k_size * c, :]

    # -------- ResNetMod: 3 residual blocks, one MXU matmul per conv --------
    a = x_ref[...]                                    # (3, WB)
    row = 0
    for cin, cout in BLOCK_CFG:
        n1 = 1 + 8 * cin
        w_sc = convw_ref[row:row + cout, 0:n1]; row += cout   # 1x1 shortcut conv + BN
        w_c1 = convw_ref[row:row + cout, 0:n1]; row += cout   # conv k=8 + BN (+ReLU)
        patch = build_patch(a, 8)
        sc = mm(w_sc, patch)                          # shortcut reuses the k=8 patch
        h = jnp.maximum(mm(w_c1, patch), 0.0)

        n2 = 1 + 5 * cout
        w_c2 = convw_ref[row:row + cout, 0:n2]; row += cout   # conv k=5 + BN (+ReLU)
        h = jnp.maximum(mm(w_c2, build_patch(h, 5)), 0.0)

        n3 = 1 + 3 * cout
        w_c3 = convw_ref[row:row + cout, 0:n3]; row += cout   # conv k=3 + BN
        h = mm(w_c3, build_patch(h, 3))

        a = jnp.maximum(h + sc, 0.0)                  # residual add + ReLU

    # -------- LSTM (bias=False), column layout: states are (H, B) --------
    w_ih = lstmw_ref[:, 0:OUT_CHANNELS]               # (4H, C), gate rows (i, f, o, g)
    w_hh = lstmw_ref[:, OUT_CHANNELS:OUT_CHANNELS + H]
    gx = mm(w_ih, a)                                  # input projection for ALL timesteps,
                                                      # hoisted off the serial chain: (4H, WB)
    h = jnp.zeros((H, B), jnp.float32)
    c = jnp.zeros((H, B), jnp.float32)
    for t in range(W):                                # static unroll over the window
        gates = gx[:, t * B:(t + 1) * B] + mm(w_hh, h)          # (4H, B)
        s = jax.nn.sigmoid(gates[0:3 * H, :])                   # i, f, o in one pass
        i_g = s[0:H, :]
        f_g = s[H:2 * H, :]
        o_g = s[2 * H:3 * H, :]
        g_g = jnp.tanh(gates[3 * H:4 * H, :])
        c = f_g * c + i_g * g_g
        h = o_g * jnp.tanh(c)

    # -------- MLP head (Dropout = identity in eval); biases pre-folded --------
    z = jnp.maximum(mm(mlp1_ref[:, 0:H], h) + mlp1_ref[:, H:H + 1], 0.0)   # (NHL+1, B)
    out_ref[...] = mm(mlp2_ref[...], z)               # (1, B)


# ----------------------------------------------------------------------------
# Pallas wrapper
# ----------------------------------------------------------------------------
def resnet_lstm_forward(x, packed, winsize):
    conv_slab, lstm_slab, mlp1_slab, mlp2_slab = packed
    x = x.reshape(-1, IN_CHANNELS, winsize).astype(jnp.float32)   # == x.view(-1, 3, winsize)
    batch = x.shape[0]
    # Layout plumbing only: (B, C, W) -> (C, W*B), lanes time-major (lane = w*B + b).
    x_cwb = jnp.transpose(x, (1, 2, 0)).reshape(IN_CHANNELS, winsize * batch)

    vmem = pl.BlockSpec(memory_space=pltpu.MemorySpace.VMEM)
    out = pl.pallas_call(
        functools.partial(_fused_kernel, batch=batch, winsize=winsize),
        out_shape=jax.ShapeDtypeStruct((1, batch), jnp.float32),
        in_specs=[vmem] * 5,
        out_specs=vmem,
        scratch_shapes=[
            pltpu.VMEM((MAX_CHANNELS, (winsize + MAX_PAD) * batch), jnp.float32),  # padded act.
            pltpu.VMEM((PATCH_ROWS, winsize * batch), jnp.float32),                # im2col patch
        ],
    )(x_cwb, conv_slab, lstm_slab, mlp1_slab, mlp2_slab)
    return out.reshape(batch, 1)


# ----------------------------------------------------------------------------
# Parameter construction (deterministic, synthetic, PyTorch layouts)
# ----------------------------------------------------------------------------
def _make_conv_bn(key, cout, cin, k):
    kw, kb, kg, kbe, km, kv = jax.random.split(key, 6)
    return dict(
        w=0.1 * jax.random.normal(kw, (cout, cin, k), jnp.float32),
        b=0.1 * jax.random.normal(kb, (cout,), jnp.float32),
        gamma=1.0 + 0.1 * jax.random.normal(kg, (cout,), jnp.float32),
        beta=0.1 * jax.random.normal(kbe, (cout,), jnp.float32),
        mean=0.1 * jax.random.normal(km, (cout,), jnp.float32),
        var=1.0 + 0.5 * jax.random.uniform(kv, (cout,), jnp.float32),
    )


def make_params(key):
    keys = iter(jax.random.split(key, 4 * len(BLOCK_CFG) + 6))
    blocks = []
    for cin, cout in BLOCK_CFG:
        blocks.append(dict(
            shortcut=_make_conv_bn(next(keys), cout, cin, 1),
            conv1=_make_conv_bn(next(keys), cout, cin, 8),
            conv2=_make_conv_bn(next(keys), cout, cout, 5),
            conv3=_make_conv_bn(next(keys), cout, cout, 3),
        ))
    return dict(
        blocks=blocks,
        # LSTM (bias=False), torch layout: rows stacked (i, f, g, o)
        w_ih=0.1 * jax.random.normal(next(keys), (4 * HIDDEN, OUT_CHANNELS), jnp.float32),
        w_hh=0.1 * jax.random.normal(next(keys), (4 * HIDDEN, HIDDEN), jnp.float32),
        # MLP, torch nn.Linear layout (out, in)
        mlp_w1=0.1 * jax.random.normal(next(keys), (NHL, HIDDEN), jnp.float32),
        mlp_b1=0.1 * jax.random.normal(next(keys), (NHL,), jnp.float32),
        mlp_w2=0.1 * jax.random.normal(next(keys), (1, NHL), jnp.float32),
        mlp_b2=0.1 * jax.random.normal(next(keys), (1,), jnp.float32),
    )


# ----------------------------------------------------------------------------
# Host-side packing: fold bias + eval-BN into weights, build 4 VMEM slabs
# ----------------------------------------------------------------------------
def _fold_conv_bn(w, b, gamma, beta, mean, var):
    scale = gamma / jnp.sqrt(var + EPS)
    shift = scale * (b - mean) + beta
    return w * scale[:, None, None], shift


def _pack_conv(p):
    ws, shift = _fold_conv_bn(**p)
    cout, cin, k = ws.shape
    mat = jnp.transpose(ws, (0, 2, 1)).reshape(cout, k * cin)   # col 1+k*cin+c <-> patch row
    return jnp.concatenate([shift[:, None], mat], axis=1)       # col 0 <-> ones row (shift)


def _pack_shortcut(p, cin):
    ws, shift = _fold_conv_bn(**p)
    cout = ws.shape[0]
    mat = jnp.zeros((cout, 1 + 8 * cin), jnp.float32)
    mat = mat.at[:, 0].set(shift)
    # centre tap (d = 0) of the k=8 im2col is the un-shifted input itself
    mat = mat.at[:, 1 + MAX_LEFT * cin:1 + (MAX_LEFT + 1) * cin].set(ws[:, :, 0])
    return mat


def _pad_cols(m, ncols):
    return jnp.pad(m, ((0, 0), (0, ncols - m.shape[1])))


def pack_params(params):
    rows = []
    for (cin, cout), blk in zip(BLOCK_CFG, params["blocks"]):
        rows.append(_pad_cols(_pack_shortcut(blk["shortcut"], cin), PATCH_ROWS))
        rows.append(_pad_cols(_pack_conv(blk["conv1"]), PATCH_ROWS))
        rows.append(_pad_cols(_pack_conv(blk["conv2"]), PATCH_ROWS))
        rows.append(_pad_cols(_pack_conv(blk["conv3"]), PATCH_ROWS))
    conv_slab = jnp.concatenate(rows, axis=0)                    # (36, PATCH_ROWS)

    # LSTM: permute gate rows (i,f,g,o) -> (i,f,o,g) so one sigmoid covers a contiguous
    # 3H block and tanh the last H; keep (4H, in) layout for the column-major recurrence.
    H = HIDDEN
    perm = jnp.concatenate([jnp.arange(0, 2 * H), jnp.arange(3 * H, 4 * H),
                            jnp.arange(2 * H, 3 * H)])
    lstm_slab = jnp.concatenate([params["w_ih"][perm], params["w_hh"][perm]], axis=1)

    # MLP, column-major, biases folded: z gets an extra row pinned to relu(1)=1 whose
    # second-layer weight is b2.
    w1 = jnp.concatenate([params["mlp_w1"], jnp.zeros((1, H), jnp.float32)], axis=0)
    b1 = jnp.concatenate([params["mlp_b1"], jnp.ones((1,), jnp.float32)])[:, None]
    mlp1_slab = jnp.concatenate([w1, b1], axis=1)                          # (NHL+1, H+1)
    mlp2_slab = jnp.concatenate([params["mlp_w2"], params["mlp_b2"][:, None]], axis=1)
    return conv_slab, lstm_slab, mlp1_slab, mlp2_slab


# ----------------------------------------------------------------------------
# Pure-JAX reference (eval-mode PyTorch semantics) for a correctness check
# ----------------------------------------------------------------------------
def reference_forward(x, params, winsize):
    hi = jax.lax.Precision.HIGHEST

    def conv1d_same(h, w):
        k = w.shape[-1]
        left = (k - 1) // 2
        hp = jnp.pad(h, ((0, 0), (0, 0), (left, k - 1 - left)))
        out = jnp.zeros((h.shape[0], w.shape[0], h.shape[2]), jnp.float32)
        for kk in range(k):
            out = out + jnp.einsum("oc,bcw->bow", w[:, :, kk],
                                   hp[:, :, kk:kk + h.shape[2]], precision=hi)
        return out

    def conv_bn(h, p, relu):
        y = conv1d_same(h, p["w"]) + p["b"][None, :, None]
        y = (p["gamma"][None, :, None] * (y - p["mean"][None, :, None])
             / jnp.sqrt(p["var"][None, :, None] + EPS) + p["beta"][None, :, None])
        return jnp.maximum(y, 0.0) if relu else y

    y = x.reshape(-1, IN_CHANNELS, winsize).astype(jnp.float32)
    for blk in params["blocks"]:
        sc = conv_bn(y, blk["shortcut"], relu=False)
        h = conv_bn(y, blk["conv1"], relu=True)
        h = conv_bn(h, blk["conv2"], relu=True)
        h = conv_bn(h, blk["conv3"], relu=False)
        y = jnp.maximum(h + sc, 0.0)

    seq = jnp.transpose(y, (0, 2, 1))                   # (B, W, C)
    B, H = seq.shape[0], HIDDEN
    w_ih, w_hh = params["w_ih"], params["w_hh"]         # torch gate order (i, f, g, o)
    h = jnp.zeros((B, H), jnp.float32)
    c = jnp.zeros((B, H), jnp.float32)
    for t in range(winsize):
        g = (jnp.dot(seq[:, t, :], w_ih.T, precision=hi)
             + jnp.dot(h, w_hh.T, precision=hi))
        i = jax.nn.sigmoid(g[:, 0:H])
        f = jax.nn.sigmoid(g[:, H:2 * H])
        gg = jnp.tanh(g[:, 2 * H:3 * H])
        o = jax.nn.sigmoid(g[:, 3 * H:4 * H])
        c = f * c + i * gg
        h = o * jnp.tanh(c)

    z = jnp.maximum(jnp.dot(h, params["mlp_w1"].T, precision=hi) + params["mlp_b1"], 0.0)
    return jnp.dot(z, params["mlp_w2"].T, precision=hi) + params["mlp_b2"]


if __name__ == "__main__":
    winsize = 16
    batch = 2
    key = jax.random.PRNGKey(0)
    k_x, k_p = jax.random.split(key)
    # Flat input; the forward view()s it to (B, 3, winsize), as in the module.
    x = jax.random.normal(k_x, (batch, IN_CHANNELS * winsize), jnp.float32)
    params = make_params(k_p)
    packed = pack_params(params)

    fwd = jax.jit(functools.partial(resnet_lstm_forward, winsize=winsize))
    logits = jax.block_until_ready(fwd(x, packed))

    assert logits.shape == (batch, 1), logits.shape
    assert bool(jnp.all(jnp.isfinite(logits)))

    ref = reference_forward(x, params, winsize)
    max_diff = float(jnp.max(jnp.abs(logits - ref)))
    assert max_diff < 1e-2, f"kernel/reference mismatch: max|diff|={max_diff}"
    print("KERNEL_OK")
</pallas_src>

<mosaic_0001>
module attributes {stable_mosaic.version = 11 : i64} {
  func.func @_fused_kernel(%arg0: memref<3x32xf32, #tpu.memory_space<vmem>>, %arg1: memref<36x26xf32, #tpu.memory_space<vmem>>, %arg2: memref<16x9xf32, #tpu.memory_space<vmem>>, %arg3: memref<193x5xf32, #tpu.memory_space<vmem>>, %arg4: memref<1x193xf32, #tpu.memory_space<vmem>>, %arg5: memref<1x2xf32, #tpu.memory_space<vmem>>, %arg6: memref<5x46xf32, #tpu.memory_space<vmem>>, %arg7: memref<26x32xf32, #tpu.memory_space<vmem>>) attributes {dimension_semantics = [], scalar_prefetch = 0 : i64, scratch_operands = 2 : i64, tpu.core_type = #tpu.core_type<tc>} {
    %cst = arith.constant 0.000000e+00 : f32
    %0 = vector.broadcast %cst : f32 to vector<5x46xf32>
    %c0 = arith.constant 0 : index
    %c0_0 = arith.constant 0 : index
    %1 = vector.load %arg6[%c0, %c0_0] : memref<5x46xf32, #tpu.memory_space<vmem>>, vector<5x46xf32>
    tpu.vector_store %arg6[%c0, %c0_0], %0 {strides = array<i32>} : memref<5x46xf32, #tpu.memory_space<vmem>>, vector<5x46xf32>,
    %cst_1 = arith.constant 1.000000e+00 : f32
    %2 = vector.broadcast %cst_1 : f32 to vector<1x32xf32>
    %c0_2 = arith.constant 0 : index
    %c0_3 = arith.constant 0 : index
    %3 = vector.load %arg7[%c0_2, %c0_3] : memref<26x32xf32, #tpu.memory_space<vmem>>, vector<1x32xf32>
    tpu.vector_store %arg7[%c0_2, %c0_3], %2 {strides = array<i32>} : memref<26x32xf32, #tpu.memory_space<vmem>>, vector<1x32xf32>,
    %c0_4 = arith.constant 0 : index
    %c0_5 = arith.constant 0 : index
    %4 = vector.load %arg0[%c0_4, %c0_5] : memref<3x32xf32, #tpu.memory_space<vmem>>, vector<3x32xf32>
    %c0_6 = arith.constant 0 : index
    %c0_7 = arith.constant 0 : index
    %5 = vector.load %arg1[%c0_6, %c0_7] : memref<36x26xf32, #tpu.memory_space<vmem>>, vector<2x25xf32>
    %c2 = arith.constant 2 : index
    %c0_8 = arith.constant 0 : index
    %6 = vector.load %arg1[%c2, %c0_8] : memref<36x26xf32, #tpu.memory_space<vmem>>, vector<2x25xf32>
    %c0_9 = arith.constant 0 : index
    %c6 = arith.constant 6 : index
    %7 = vector.load %arg6[%c0_9, %c6] : memref<5x46xf32, #tpu.memory_space<vmem>>, vector<3x32xf32>
    tpu.vector_store %arg6[%c0_9, %c6], %4 {strides = array<i32>} : memref<5x46xf32, #tpu.memory_space<vmem>>, vector<3x32xf32>,
    %c0_10 = arith.constant 0 : index
    %c0_11 = arith.constant 0 : index
    %8 = vector.load %arg6[%c0_10, %c0_11] : memref<5x46xf32, #tpu.memory_space<vmem>>, vector<3x32xf32>
    %c1 = arith.constant 1 : index
    %c0_12 = arith.constant 0 : index
    %9 = vector.load %arg7[%c1, %c0_12] : memref<26x32xf32, #tpu.memory_space<vmem>>, vector<3x32xf32>
    tpu.vector_store %arg7[%c1, %c0_12], %8 {strides = array<i32>} : memref<26x32xf32, #tpu.memory_space<vmem>>, vector<3x32xf32>,
    %c0_13 = arith.constant 0 : index
    %c2_14 = arith.constant 2 : index
    %10 = vector.load %arg6[%c0_13, %c2_14] : memref<5x46xf32, #tpu.memory_space<vmem>>, vector<3x32xf32>
    %c4 = arith.constant 4 : index
    %c0_15 = arith.constant 0 : index
    %11 = vector.load %arg7[%c4, %c0_15] : memref<26x32xf32, #tpu.memory_space<vmem>>, vector<3x32xf32>
    tpu.vector_store %arg7[%c4, %c0_15], %10 {strides = array<i32>} : memref<26x32xf32, #tpu.memory_space<vmem>>, vector<3x32xf32>,
    %c0_16 = arith.constant 0 : index
    %c4_17 = arith.constant 4 : index
    %12 = vector.load %arg6[%c0_16, %c4_17] : memref<5x46xf32, #tpu.memory_space<vmem>>, vector<3x32xf32>
    %c7 = arith.constant 7 : index
    %c0_18 = arith.constant 0 : index
    %13 = vector.load %arg7[%c7, %c0_18] : memref<26x32xf32, #tpu.memory_space<vmem>>, vector<3x32xf32>
    tpu.vector_store %arg7[%c7, %c0_18], %12 {strides = array<i32>} : memref<26x32xf32, #tpu.memory_space<vmem>>, vector<3x32xf32>,
    %c0_19 = arith.constant 0 : index
    %c6_20 = arith.constant 6 : index
    %14 = vector.load %arg6[%c0_19, %c6_20] : memref<5x46xf32, #tpu.memory_space<vmem>>, vector<3x32xf32>
    %c10 = arith.constant 10 : index
    %c0_21 = arith.constant 0 : index
    %15 = vector.load %arg7[%c10, %c0_21] : memref<26x32xf32, #tpu.memory_space<vmem>>, vector<3x32xf32>
    tpu.vector_store %arg7[%c10, %c0_21], %14 {strides = array<i32>} : memref<26x32xf32, #tpu.memory_space<vmem>>, vector<3x32xf32>,
    %c0_22 = arith.constant 0 : index
    %c8 = arith.constant 8 : index
    %16 = vector.load %arg6[%c0_22, %c8] : memref<5x46xf32, #tpu.memory_space<vmem>>, vector<3x32xf32>
    %c13 = arith.constant 13 : index
    %c0_23 = arith.constant 0 : index
    %17 = vector.load %arg7[%c13, %c0_23] : memref<26x32xf32, #tpu.memory_space<vmem>>, vector<3x32xf32>
    tpu.vector_store %arg7[%c13, %c0_23], %16 {strides = array<i32>} : memref<26x32xf32, #tpu.memory_space<vmem>>, vector<3x32xf32>,
    %c0_24 = arith.constant 0 : index
    %c10_25 = arith.constant 10 : index
    %18 = vector.load %arg6[%c0_24, %c10_25] : memref<5x46xf32, #tpu.memory_space<vmem>>, vector<3x32xf32>
    %c16 = arith.constant 16 : index
    %c0_26 = arith.constant 0 : index
    %19 = vector.load %arg7[%c16, %c0_26] : memref<26x32xf32, #tpu.memory_space<vmem>>, vector<3x32xf32>
    tpu.vector_store %arg7[%c16, %c0_26], %18 {strides = array<i32>} : memref<26x32xf32, #tpu.memory_space<vmem>>, vector<3x32xf32>,
    %c0_27 = arith.constant 0 : index
    %c12 = arith.constant 12 : index
    %20 = vector.load %arg6[%c0_27, %c12] : memref<5x46xf32, #tpu.memory_space<vmem>>, vector<3x32xf32>
    %c19 = arith.constant 19 : index
    %c0_28 = arith.constant 0 : index
    %21 = vector.load %arg7[%c19, %c0_28] : memref<26x32xf32, #tpu.memory_space<vmem>>, vector<3x32xf32>
    tpu.vector_store %arg7[%c19, %c0_28], %20 {strides = array<i32>} : memref<26x32xf32, #tpu.memory_space<vmem>>, vector<3x32xf32>,
    %c0_29 = arith.constant 0 : index
    %c14 = arith.constant 14 : index
    %22 = vector.load %arg6[%c0_29, %c14] : memref<5x46xf32, #tpu.memory_space<vmem>>, vector<3x32xf32>
    %c22 = arith.constant 22 : index
    %c0_30 = arith.constant 0 : index
    %23 = vector.load %arg7[%c22, %c0_30] : memref<26x32xf32, #tpu.memory_space<vmem>>, vector<3x32xf32>
    tpu.vector_store %arg7[%c22, %c0_30], %22 {strides = array<i32>} : memref<26x32xf32, #tpu.memory_space<vmem>>, vector<3x32xf32>,
    %c0_31 = arith.constant 0 : index
    %c0_32 = arith.constant 0 : index
    %24 = vector.load %arg7[%c0_31, %c0_32] : memref<26x32xf32, #tpu.memory_space<vmem>>, vector<25x32xf32>
    %cst_33 = arith.constant dense<0.000000e+00> : vector<2x32xf32>
    %25 = tpu.matmul %5, %24, %cst_33 {dimension_numbers = #tpu.dot_dimension_numbers<[1], [0], [0], [1], [0, 0, 1, 1], [], []>} : vector<2x25xf32>, vector<25x32xf32>, vector<2x32xf32> -> vector<2x32xf32>
    %cst_34 = arith.constant dense<0.000000e+00> : vector<2x32xf32>
    %26 = tpu.matmul %6, %24, %cst_34 {dimension_numbers = #tpu.dot_dimension_numbers<[1], [0], [0], [1], [0, 0, 1, 1], [], []>} : vector<2x25xf32>, vector<25x32xf32>, vector<2x32xf32> -> vector<2x32xf32>
    %cst_35 = arith.constant 0.000000e+00 : f32
    %27 = vector.broadcast %cst_35 : f32 to vector<2x32xf32>
    %28 = arith.maximumf %26, %27 : vector<2x32xf32>
    %c4_36 = arith.constant 4 : index
    %c0_37 = arith.constant 0 : index
    %29 = vector.load %arg1[%c4_36, %c0_37] : memref<36x26xf32, #tpu.memory_space<vmem>>, vector<2x11xf32>
    %c0_38 = arith.constant 0 : index
    %c6_39 = arith.constant 6 : index
    %30 = vector.load %arg6[%c0_38, %c6_39] : memref<5x46xf32, #tpu.memory_space<vmem>>, vector<2x32xf32>
    tpu.vector_store %arg6[%c0_38, %c6_39], %28 {strides = array<i32>} : memref<5x46xf32, #tpu.memory_space<vmem>>, vector<2x32xf32>,
    %c0_40 = arith.constant 0 : index
    %c2_41 = arith.constant 2 : index
    %31 = vector.load %arg6[%c0_40, %c2_41] : memref<5x46xf32, #tpu.memory_space<vmem>>, vector<2x32xf32>
    %c1_42 = arith.constant 1 : index
    %c0_43 = arith.constant 0 : index
    %32 = vector.load %arg7[%c1_42, %c0_43] : memref<26x32xf32, #tpu.memory_space<vmem>>, vector<2x32xf32>
    tpu.vector_store %arg7[%c1_42, %c0_43], %31 {strides = array<i32>} : memref<26x32xf32, #tpu.memory_space<vmem>>, vector<2x32xf32>,
    %c0_44 = arith.constant 0 : index
    %c4_45 = arith.constant 4 : index
    %33 = vector.load %arg6[%c0_44, %c4_45] : memref<5x46xf32, #tpu.memory_space<vmem>>, vector<2x32xf32>
    %c3 = arith.constant 3 : index
    %c0_46 = arith.constant 0 : index
    %34 = vector.load %arg7[%c3, %c0_46] : memref<26x32xf32, #tpu.memory_space<vmem>>, vector<2x32xf32>
    tpu.vector_store %arg7[%c3, %c0_46], %33 {strides = array<i32>} : memref<26x32xf32, #tpu.memory_space<vmem>>, vector<2x32xf32>,
    %c0_47 = arith.constant 0 : index
    %c6_48 = arith.constant 6 : index
    %35 = vector.load %arg6[%c0_47, %c6_48] : memref<5x46xf32, #tpu.memory_space<vmem>>, vector<2x32xf32>
    %c5 = arith.constant 5 : index
    %c0_49 = arith.constant 0 : index
    %36 = vector.load %arg7[%c5, %c0_49] : memref<26x32xf32, #tpu.memory_space<vmem>>, vector<2x32xf32>
    tpu.vector_store %arg7[%c5, %c0_49], %35 {strides = array<i32>} : memref<26x32xf32, #tpu.memory_space<vmem>>, vector<2x32xf32>,
    %c0_50 = arith.constant 0 : index
    %c8_51 = arith.constant 8 : index
    %37 = vector.load %arg6[%c0_50, %c8_51] : memref<5x46xf32, #tpu.memory_space<vmem>>, vector<2x32xf32>
    %c7_52 = arith.constant 7 : index
    %c0_53 = arith.constant 0 : index
    %38 = vector.load %arg7[%c7_52, %c0_53] : memref<26x32xf32, #tpu.memory_space<vmem>>, vector<2x32xf32>
    tpu.vector_store %arg7[%c7_52, %c0_53], %37 {strides = array<i32>} : memref<26x32xf32, #tpu.memory_space<vmem>>, vector<2x32xf32>,
    %c0_54 = arith.constant 0 : index
    %c10_55 = arith.constant 10 : index
    %39 = vector.load %arg6[%c0_54, %c10_55] : memref<5x46xf32, #tpu.memory_space<vmem>>, vector<2x32xf32>
    %c9 = arith.constant 9 : index
    %c0_56 = arith.constant 0 : index
    %40 = vector.load %arg7[%c9, %c0_56] : memref<26x32xf32, #tpu.memory_space<vmem>>, vector<2x32xf32>
    tpu.vector_store %arg7[%c9, %c0_56], %39 {strides = array<i32>} : memref<26x32xf32, #tpu.memory_space<vmem>>, vector<2x32xf32>,
    %c0_57 = arith.constant 0 : index
    %c0_58 = arith.constant 0 : index
    %41 = vector.load %arg7[%c0_57, %c0_58] : memref<26x32xf32, #tpu.memory_space<vmem>>, vector<11x32xf32>
    %cst_59 = arith.constant dense<0.000000e+00> : vector<2x32xf32>
    %42 = tpu.matmul %29, %41, %cst_59 {dimension_numbers = #tpu.dot_dimension_numbers<[1], [0], [0], [1], [0, 0, 1, 1], [], []>} : vector<2x11xf32>, vector<11x32xf32>, vector<2x32xf32> -> vector<2x32xf32>
    %cst_60 = arith.constant 0.000000e+00 : f32
    %43 = vector.broadcast %cst_60 : f32 to vector<2x32xf32>
    %44 = arith.maximumf %42, %43 : vector<2x32xf32>
    %c6_61 = arith.constant 6 : index
    %c0_62 = arith.constant 0 : index
    %45 = vector.load %arg1[%c6_61, %c0_62] : memref<36x26xf32, #tpu.memory_space<vmem>>, vector<2x7xf32>
    %c0_63 = arith.constant 0 : index
    %c6_64 = arith.constant 6 : index
    %46 = vector.load %arg6[%c0_63, %c6_64] : memref<5x46xf32, #tpu.memory_space<vmem>>, vector<2x32xf32>
    tpu.vector_store %arg6[%c0_63, %c6_64], %44 {strides = array<i32>} : memref<5x46xf32, #tpu.memory_space<vmem>>, vector<2x32xf32>,
    %c0_65 = arith.constant 0 : index
    %c4_66 = arith.constant 4 : index
    %47 = vector.load %arg6[%c0_65, %c4_66] : memref<5x46xf32, #tpu.memory_space<vmem>>, vector<2x32xf32>
    %c1_67 = arith.constant 1 : index
    %c0_68 = arith.constant 0 : index
    %48 = vector.load %arg7[%c1_67, %c0_68] : memref<26x32xf32, #tpu.memory_space<vmem>>, vector<2x32xf32>
    tpu.vector_store %arg7[%c1_67, %c0_68], %47 {strides = array<i32>} : memref<26x32xf32, #tpu.memory_space<vmem>>, vector<2x32xf32>,
    %c0_69 = arith.constant 0 : index
    %c6_70 = arith.constant 6 : index
    %49 = vector.load %arg6[%c0_69, %c6_70] : memref<5x46xf32, #tpu.memory_space<vmem>>, vector<2x32xf32>
    %c3_71 = arith.constant 3 : index
    %c0_72 = arith.constant 0 : index
    %50 = vector.load %arg7[%c3_71, %c0_72] : memref<26x32xf32, #tpu.memory_space<vmem>>, vector<2x32xf32>
    tpu.vector_store %arg7[%c3_71, %c0_72], %49 {strides = array<i32>} : memref<26x32xf32, #tpu.memory_space<vmem>>, vector<2x32xf32>,
    %c0_73 = arith.constant 0 : index
    %c8_74 = arith.constant 8 : index
    %51 = vector.load %arg6[%c0_73, %c8_74] : memref<5x46xf32, #tpu.memory_space<vmem>>, vector<2x32xf32>
    %c5_75 = arith.constant 5 : index
    %c0_76 = arith.constant 0 : index
    %52 = vector.load %arg7[%c5_75, %c0_76] : memref<26x32xf32, #tpu.memory_space<vmem>>, vector<2x32xf32>
    tpu.vector_store %arg7[%c5_75, %c0_76], %51 {strides = array<i32>} : memref<26x32xf32, #tpu.memory_space<vmem>>, vector<2x32xf32>,
    %c0_77 = arith.constant 0 : index
    %c0_78 = arith.constant 0 : index
    %53 = vector.load %arg7[%c0_77, %c0_78] : memref<26x32xf32, #tpu.memory_space<vmem>>, vector<7x32xf32>
    %cst_79 = arith.constant dense<0.000000e+00> : vector<2x32xf32>
    %54 = tpu.matmul %45, %53, %cst_79 {dimension_numbers = #tpu.dot_dimension_numbers<[1], [0], [0], [1], [0, 0, 1, 1], [], []>} : vector<2x7xf32>, vector<7x32xf32>, vector<2x32xf32> -> vector<2x32xf32>
    %55 = arith.addf %54, %25 : vector<2x32xf32>
    %cst_80 = arith.constant 0.000000e+00 : f32
    %56 = vector.broadcast %cst_80 : f32 to vector<2x32xf32>
    %57 = arith.maximumf %55, %56 : vector<2x32xf32>
    %c8_81 = arith.constant 8 : index
    %c0_82 = arith.constant 0 : index
    %58 = vector.load %arg1[%c8_81, %c0_82] : memref<36x26xf32, #tpu.memory_space<vmem>>, vector<2x17xf32>
    %c10_83 = arith.constant 10 : index
    %c0_84 = arith.constant 0 : index
    %59 = vector.load %arg1[%c10_83, %c0_84] : memref<36x26xf32, #tpu.memory_space<vmem>>, vector<2x17xf32>
    %c0_85 = arith.constant 0 : index
    %c6_86 = arith.constant 6 : index
    %60 = vector.load %arg6[%c0_85, %c6_86] : memref<5x46xf32, #tpu.memory_space<vmem>>, vector<2x32xf32>
    tpu.vector_store %arg6[%c0_85, %c6_86], %57 {strides = array<i32>} : memref<5x46xf32, #tpu.memory_space<vmem>>, vector<2x32xf32>,
    %c0_87 = arith.constant 0 : index
    %c0_88 = arith.constant 0 : index
    %61 = vector.load %arg6[%c0_87, %c0_88] : memref<5x46xf32, #tpu.memory_space<vmem>>, vector<2x32xf32>
    %c1_89 = arith.constant 1 : index
    %c0_90 = arith.constant 0 : index
    %62 = vector.load %arg7[%c1_89, %c0_90] : memref<26x32xf32, #tpu.memory_space<vmem>>, vector<2x32xf32>
    tpu.vector_store %arg7[%c1_89, %c0_90], %61 {strides = array<i32>} : memref<26x32xf32, #tpu.memory_space<vmem>>, vector<2x32xf32>,
    %c0_91 = arith.constant 0 : index
    %c2_92 = arith.constant 2 : index
    %63 = vector.load %arg6[%c0_91, %c2_92] : memref<5x46xf32, #tpu.memory_space<vmem>>, vector<2x32xf32>
    %c3_93 = arith.constant 3 : index
    %c0_94 = arith.constant 0 : index
    %64 = vector.load %arg7[%c3_93, %c0_94] : memref<26x32xf32, #tpu.memory_space<vmem>>, vector<2x32xf32>
    tpu.vector_store %arg7[%c3_93, %c0_94], %63 {strides = array<i32>} : memref<26x32xf32, #tpu.memory_space<vmem>>, vector<2x32xf32>,
    %c0_95 = arith.constant 0 : index
    %c4_96 = arith.constant 4 : index
    %65 = vector.load %arg6[%c0_95, %c4_96] : memref<5x46xf32, #tpu.memory_space<vmem>>, vector<2x32xf32>
    %c5_97 = arith.constant 5 : index
    %c0_98 = arith.constant 0 : index
    %66 = vector.load %arg7[%c5_97, %c0_98] : memref<26x32xf32, #tpu.memory_space<vmem>>, vector<2x32xf32>
    tpu.vector_store %arg7[%c5_97, %c0_98], %65 {strides = array<i32>} : memref<26x32xf32, #tpu.memory_space<vmem>>, vector<2x32xf32>,
    %c0_99 = arith.constant 0 : index
    %c6_100 = arith.constant 6 : index
    %67 = vector.load %arg6[%c0_99, %c6_100] : memref<5x46xf32, #tpu.memory_space<vmem>>, vector<2x32xf32>
    %c7_101 = arith.constant 7 : index
    %c0_102 = arith.constant 0 : index
    %68 = vector.load %arg7[%c7_101, %c0_102] : memref<26x32xf32, #tpu.memory_space<vmem>>, vector<2x32xf32>
    tpu.vector_store %arg7[%c7_101, %c0_102], %67 {strides = array<i32>} : memref<26x32xf32, #tpu.memory_space<vmem>>, vector<2x32xf32>,
    %c0_103 = arith.constant 0 : index
    %c8_104 = arith.constant 8 : index
    %69 = vector.load %arg6[%c0_103, %c8_104] : memref<5x46xf32, #tpu.memory_space<vmem>>, vector<2x32xf32>
    %c9_105 = arith.constant 9 : index
    %c0_106 = arith.constant 0 : index
    %70 = vector.load %arg7[%c9_105, %c0_106] : memref<26x32xf32, #tpu.memory_space<vmem>>, vector<2x32xf32>
    tpu.vector_store %arg7[%c9_105, %c0_106], %69 {strides = array<i32>} : memref<26x32xf32, #tpu.memory_space<vmem>>, vector<2x32xf32>,
    %c0_107 = arith.constant 0 : index
    %c10_108 = arith.constant 10 : index
    %71 = vector.load %arg6[%c0_107, %c10_108] : memref<5x46xf32, #tpu.memory_space<vmem>>, vector<2x32xf32>
    %c11 = arith.constant 11 : index
    %c0_109 = arith.constant 0 : index
    %72 = vector.load %arg7[%c11, %c0_109] : memref<26x32xf32, #tpu.memory_space<vmem>>, vector<2x32xf32>
    tpu.vector_store %arg7[%c11, %c0_109], %71 {strides = array<i32>} : memref<26x32xf32, #tpu.memory_space<vmem>>, vector<2x32xf32>,
    %c0_110 = arith.constant 0 : index
    %c12_111 = arith.constant 12 : index
    %73 = vector.load %arg6[%c0_110, %c12_111] : memref<5x46xf32, #tpu.memory_space<vmem>>, vector<2x32xf32>
    %c13_112 = arith.constant 13 : index
    %c0_113 = arith.constant 0 : index
    %74 = vector.load %arg7[%c13_112, %c0_113] : memref<26x32xf32, #tpu.memory_space<vmem>>, vector<2x32xf32>
    tpu.vector_store %arg7[%c13_112, %c0_113], %73 {strides = array<i32>} : memref<26x32xf32, #tpu.memory_space<vmem>>, vector<2x32xf32>,
    %c0_114 = arith.constant 0 : index
    %c14_115 = arith.constant 14 : index
    %75 = vector.load %arg6[%c0_114, %c14_115] : memref<5x46xf32, #tpu.memory_space<vmem>>, vector<2x32xf32>
    %c15 = arith.constant 15 : index
    %c0_116 = arith.constant 0 : index
    %76 = vector.load %arg7[%c15, %c0_116] : memref<26x32xf32, #tpu.memory_space<vmem>>, vector<2x32xf32>
    tpu.vector_store %arg7[%c15, %c0_116], %75 {strides = array<i32>} : memref<26x32xf32, #tpu.memory_space<vmem>>, vector<2x32xf32>,
    %c0_117 = arith.constant 0 : index
    %c0_118 = arith.constant 0 : index
    %77 = vector.load %arg7[%c0_117, %c0_118] : memref<26x32xf32, #tpu.memory_space<vmem>>, vector<17x32xf32>
    %cst_119 = arith.constant dense<0.000000e+00> : vector<2x32xf32>
    %78 = tpu.matmul %58, %77, %cst_119 {dimension_numbers = #tpu.dot_dimension_numbers<[1], [0], [0], [1], [0, 0, 1, 1], [], []>} : vector<2x17xf32>, vector<17x32xf32>, vector<2x32xf32> -> vector<2x32xf32>
    %cst_120 = arith.constant dense<0.000000e+00> : vector<2x32xf32>
    %79 = tpu.matmul %59, %77, %cst_120 {dimension_numbers = #tpu.dot_dimension_numbers<[1], [0], [0], [1], [0, 0, 1, 1], [], []>} : vector<2x17xf32>, vector<17x32xf32>, vector<2x32xf32> -> vector<2x32xf32>
    %cst_121 = arith.constant 0.000000e+00 : f32
    %80 = vector.broadcast %cst_121 : f32 to vector<2x32xf32>
    %81 = arith.maximumf %79, %80 : vector<2x32xf32>
    %c12_122 = arith.constant 12 : index
    %c0_123 = arith.constant 0 : index
    %82 = vector.load %arg1[%c12_122, %c0_123] : memref<36x26xf32, #tpu.memory_space<vmem>>, vector<2x11xf32>
    %c0_124 = arith.constant 0 : index
    %c6_125 = arith.constant 6 : index
    %83 = vector.load %arg6[%c0_124, %c6_125] : memref<5x46xf32, #tpu.memory_space<vmem>>, vector<2x32xf32>
    tpu.vector_store %arg6[%c0_124, %c6_125], %81 {strides = array<i32>} : memref<5x46xf32, #tpu.memory_space<vmem>>, vector<2x32xf32>,
    %c0_126 = arith.constant 0 : index
    %c2_127 = arith.constant 2 : index
    %84 = vector.load %arg6[%c0_126, %c2_127] : memref<5x46xf32, #tpu.memory_space<vmem>>, vector<2x32xf32>
    %c1_128 = arith.constant 1 : index
    %c0_129 = arith.constant 0 : index
    %85 = vector.load %arg7[%c1_128, %c0_129] : memref<26x32xf32, #tpu.memory_space<vmem>>, vector<2x32xf32>
    tpu.vector_store %arg7[%c1_128, %c0_129], %84 {strides = array<i32>} : memref<26x32xf32, #tpu.memory_space<vmem>>, vector<2x32xf32>,
    %c0_130 = arith.constant 0 : index
    %c4_131 = arith.constant 4 : index
    %86 = vector.load %arg6[%c0_130, %c4_131] : memref<5x46xf32, #tpu.memory_space<vmem>>, vector<2x32xf32>
    %c3_132 = arith.constant 3 : index
    %c0_133 = arith.constant 0 : index
    %87 = vector.load %arg7[%c3_132, %c0_133] : memref<26x32xf32, #tpu.memory_space<vmem>>, vector<2x32xf32>
    tpu.vector_store %arg7[%c3_132, %c0_133], %86 {strides = array<i32>} : memref<26x32xf32, #tpu.memory_space<vmem>>, vector<2x32xf32>,
    %c0_134 = arith.constant 0 : index
    %c6_135 = arith.constant 6 : index
    %88 = vector.load %arg6[%c0_134, %c6_135] : memref<5x46xf32, #tpu.memory_space<vmem>>, vector<2x32xf32>
    %c5_136 = arith.constant 5 : index
    %c0_137 = arith.constant 0 : index
    %89 = vector.load %arg7[%c5_136, %c0_137] : memref<26x32xf32, #tpu.memory_space<vmem>>, vector<2x32xf32>
    tpu.vector_store %arg7[%c5_136, %c0_137], %88 {strides = array<i32>} : memref<26x32xf32, #tpu.memory_space<vmem>>, vector<2x32xf32>,
    %c0_138 = arith.constant 0 : index
    %c8_139 = arith.constant 8 : index
    %90 = vector.load %arg6[%c0_138, %c8_139] : memref<5x46xf32, #tpu.memory_space<vmem>>, vector<2x32xf32>
    %c7_140 = arith.constant 7 : index
    %c0_141 = arith.constant 0 : index
    %91 = vector.load %arg7[%c7_140, %c0_141] : memref<26x32xf32, #tpu.memory_space<vmem>>, vector<2x32xf32>
    tpu.vector_store %arg7[%c7_140, %c0_141], %90 {strides = array<i32>} : memref<26x32xf32, #tpu.memory_space<vmem>>, vector<2x32xf32>,
    %c0_142 = arith.constant 0 : index
    %c10_143 = arith.constant 10 : index
    %92 = vector.load %arg6[%c0_142, %c10_143] : memref<5x46xf32, #tpu.memory_space<vmem>>, vector<2x32xf32>
    %c9_144 = arith.constant 9 : index
    %c0_145 = arith.constant 0 : index
    %93 = vector.load %arg7[%c9_144, %c0_145] : memref<26x32xf32, #tpu.memory_space<vmem>>, vector<2x32xf32>
    tpu.vector_store %arg7[%c9_144, %c0_145], %92 {strides = array<i32>} : memref<26x32xf32, #tpu.memory_space<vmem>>, vector<2x32xf32>,
    %c0_146 = arith.constant 0 : index
    %c0_147 = arith.constant 0 : index
    %94 = vector.load %arg7[%c0_146, %c0_147] : memref<26x32xf32, #tpu.memory_space<vmem>>, vector<11x32xf32>
    %cst_148 = arith.constant dense<0.000000e+00> : vector<2x32xf32>
    %95 = tpu.matmul %82, %94, %cst_148 {dimension_numbers = #tpu.dot_dimension_numbers<[1], [0], [0], [1], [0, 0, 1, 1], [], []>} : vector<2x11xf32>, vector<11x32xf32>, vector<2x32xf32> -> vector<2x32xf32>
    %cst_149 = arith.constant 0.000000e+00 : f32
    %96 = vector.broadcast %cst_149 : f32 to vector<2x32xf32>
    %97 = arith.maximumf %95, %96 : vector<2x32xf32>
    %c14_150 = arith.constant 14 : index
    %c0_151 = arith.constant 0 : index
    %98 = vector.load %arg1[%c14_150, %c0_151] : memref<36x26xf32, #tpu.memory_space<vmem>>, vector<2x7xf32>
    %c0_152 = arith.constant 0 : index
    %c6_153 = arith.constant 6 : index
    %99 = vector.load %arg6[%c0_152, %c6_153] : memref<5x46xf32, #tpu.memory_space<vmem>>, vector<2x32xf32>
    tpu.vector_store %arg6[%c0_152, %c6_153], %97 {strides = array<i32>} : memref<5x46xf32, #tpu.memory_space<vmem>>, vector<2x32xf32>,
    %c0_154 = arith.constant 0 : index
    %c4_155 = arith.constant 4 : index
    %100 = vector.load %arg6[%c0_154, %c4_155] : memref<5x46xf32, #tpu.memory_space<vmem>>, vector<2x32xf32>
    %c1_156 = arith.constant 1 : index
    %c0_157 = arith.constant 0 : index
    %101 = vector.load %arg7[%c1_156, %c0_157] : memref<26x32xf32, #tpu.memory_space<vmem>>, vector<2x32xf32>
    tpu.vector_store %arg7[%c1_156, %c0_157], %100 {strides = array<i32>} : memref<26x32xf32, #tpu.memory_space<vmem>>, vector<2x32xf32>,
    %c0_158 = arith.constant 0 : index
    %c6_159 = arith.constant 6 : index
    %102 = vector.load %arg6[%c0_158, %c6_159] : memref<5x46xf32, #tpu.memory_space<vmem>>, vector<2x32xf32>
    %c3_160 = arith.constant 3 : index
    %c0_161 = arith.constant 0 : index
    %103 = vector.load %arg7[%c3_160, %c0_161] : memref<26x32xf32, #tpu.memory_space<vmem>>, vector<2x32xf32>
    tpu.vector_store %arg7[%c3_160, %c0_161], %102 {strides = array<i32>} : memref<26x32xf32, #tpu.memory_space<vmem>>, vector<2x32xf32>,
    %c0_162 = arith.constant 0 : index
    %c8_163 = arith.constant 8 : index
    %104 = vector.load %arg6[%c0_162, %c8_163] : memref<5x46xf32, #tpu.memory_space<vmem>>, vector<2x32xf32>
    %c5_164 = arith.constant 5 : index
    %c0_165 = arith.constant 0 : index
    %105 = vector.load %arg7[%c5_164, %c0_165] : memref<26x32xf32, #tpu.memory_space<vmem>>, vector<2x32xf32>
    tpu.vector_store %arg7[%c5_164, %c0_165], %104 {strides = array<i32>} : memref<26x32xf32, #tpu.memory_space<vmem>>, vector<2x32xf32>,
    %c0_166 = arith.constant 0 : index
    %c0_167 = arith.constant 0 : index
    %106 = vector.load %arg7[%c0_166, %c0_167] : memref<26x32xf32, #tpu.memory_space<vmem>>, vector<7x32xf32>
    %cst_168 = arith.constant dense<0.000000e+00> : vector<2x32xf32>
    %107 = tpu.matmul %98, %106, %cst_168 {dimension_numbers = #tpu.dot_dimension_numbers<[1], [0], [0], [1], [0, 0, 1, 1], [], []>} : vector<2x7xf32>, vector<7x32xf32>, vector<2x32xf32> -> vector<2x32xf32>
    %108 = arith.addf %107, %78 : vector<2x32xf32>
    %cst_169 = arith.constant 0.000000e+00 : f32
    %109 = vector.broadcast %cst_169 : f32 to vector<2x32xf32>
    %110 = arith.maximumf %108, %109 : vector<2x32xf32>
    %c16_170 = arith.constant 16 : index
    %c0_171 = arith.constant 0 : index
    %111 = vector.load %arg1[%c16_170, %c0_171] : memref<36x26xf32, #tpu.memory_space<vmem>>, vector<5x17xf32>
    %c21 = arith.constant 21 : index
    %c0_172 = arith.constant 0 : index
    %112 = vector.load %arg1[%c21, %c0_172] : memref<36x26xf32, #tpu.memory_space<vmem>>, vector<5x17xf32>
    %c0_173 = arith.constant 0 : index
    %c6_174 = arith.constant 6 : index
    %113 = vector.load %arg6[%c0_173, %c6_174] : memref<5x46xf32, #tpu.memory_space<vmem>>, vector<2x32xf32>
    tpu.vector_store %arg6[%c0_173, %c6_174], %110 {strides = array<i32>} : memref<5x46xf32, #tpu.memory_space<vmem>>, vector<2x32xf32>,
    %c0_175 = arith.constant 0 : index
    %c0_176 = arith.constant 0 : index
    %114 = vector.load %arg6[%c0_175, %c0_176] : memref<5x46xf32, #tpu.memory_space<vmem>>, vector<2x32xf32>
    %c1_177 = arith.constant 1 : index
    %c0_178 = arith.constant 0 : index
    %115 = vector.load %arg7[%c1_177, %c0_178] : memref<26x32xf32, #tpu.memory_space<vmem>>, vector<2x32xf32>
    tpu.vector_store %arg7[%c1_177, %c0_178], %114 {strides = array<i32>} : memref<26x32xf32, #tpu.memory_space<vmem>>, vector<2x32xf32>,
    %c0_179 = arith.constant 0 : index
    %c2_180 = arith.constant 2 : index
    %116 = vector.load %arg6[%c0_179, %c2_180] : memref<5x46xf32, #tpu.memory_space<vmem>>, vector<2x32xf32>
    %c3_181 = arith.constant 3 : index
    %c0_182 = arith.constant 0 : index
    %117 = vector.load %arg7[%c3_181, %c0_182] : memref<26x32xf32, #tpu.memory_space<vmem>>, vector<2x32xf32>
    tpu.vector_store %arg7[%c3_181, %c0_182], %116 {strides = array<i32>} : memref<26x32xf32, #tpu.memory_space<vmem>>, vector<2x32xf32>,
    %c0_183 = arith.constant 0 : index
    %c4_184 = arith.constant 4 : index
    %118 = vector.load %arg6[%c0_183, %c4_184] : memref<5x46xf32, #tpu.memory_space<vmem>>, vector<2x32xf32>
    %c5_185 = arith.constant 5 : index
    %c0_186 = arith.constant 0 : index
    %119 = vector.load %arg7[%c5_185, %c0_186] : memref<26x32xf32, #tpu.memory_space<vmem>>, vector<2x32xf32>
    tpu.vector_store %arg7[%c5_185, %c0_186], %118 {strides = array<i32>} : memref<26x32xf32, #tpu.memory_space<vmem>>, vector<2x32xf32>,
    %c0_187 = arith.constant 0 : index
    %c6_188 = arith.constant 6 : index
    %120 = vector.load %arg6[%c0_187, %c6_188] : memref<5x46xf32, #tpu.memory_space<vmem>>, vector<2x32xf32>
    %c7_189 = arith.constant 7 : index
    %c0_190 = arith.constant 0 : index
    %121 = vector.load %arg7[%c7_189, %c0_190] : memref<26x32xf32, #tpu.memory_space<vmem>>, vector<2x32xf32>
    tpu.vector_store %arg7[%c7_189, %c0_190], %120 {strides = array<i32>} : memref<26x32xf32, #tpu.memory_space<vmem>>, vector<2x32xf32>,
    %c0_191 = arith.constant 0 : index
    %c8_192 = arith.constant 8 : index
    %122 = vector.load %arg6[%c0_191, %c8_192] : memref<5x46xf32, #tpu.memory_space<vmem>>, vector<2x32xf32>
    %c9_193 = arith.constant 9 : index
    %c0_194 = arith.constant 0 : index
    %123 = vector.load %arg7[%c9_193, %c0_194] : memref<26x32xf32, #tpu.memory_space<vmem>>, vector<2x32xf32>
    tpu.vector_store %arg7[%c9_193, %c0_194], %122 {strides = array<i32>} : memref<26x32xf32, #tpu.memory_space<vmem>>, vector<2x32xf32>,
    %c0_195 = arith.constant 0 : index
    %c10_196 = arith.constant 10 : index
    %124 = vector.load %arg6[%c0_195, %c10_196] : memref<5x46xf32, #tpu.memory_space<vmem>>, vector<2x32xf32>
    %c11_197 = arith.constant 11 : index
    %c0_198 = arith.constant 0 : index
    %125 = vector.load %arg7[%c11_197, %c0_198] : memref<26x32xf32, #tpu.memory_space<vmem>>, vector<2x32xf32>
    tpu.vector_store %arg7[%c11_197, %c0_198], %124 {strides = array<i32>} : memref<26x32xf32, #tpu.memory_space<vmem>>, vector<2x32xf32>,
    %c0_199 = arith.constant 0 : index
    %c12_200 = arith.constant 12 : index
    %126 = vector.load %arg6[%c0_199, %c12_200] : memref<5x46xf32, #tpu.memory_space<vmem>>, vector<2x32xf32>
    %c13_201 = arith.constant 13 : index
    %c0_202 = arith.constant 0 : index
    %127 = vector.load %arg7[%c13_201, %c0_202] : memref<26x32xf32, #tpu.memory_space<vmem>>, vector<2x32xf32>
    tpu.vector_store %arg7[%c13_201, %c0_202], %126 {strides = array<i32>} : memref<26x32xf32, #tpu.memory_space<vmem>>, vector<2x32xf32>,
    %c0_203 = arith.constant 0 : index
    %c14_204 = arith.constant 14 : index
    %128 = vector.load %arg6[%c0_203, %c14_204] : memref<5x46xf32, #tpu.memory_space<vmem>>, vector<2x32xf32>
    %c15_205 = arith.constant 15 : index
    %c0_206 = arith.constant 0 : index
    %129 = vector.load %arg7[%c15_205, %c0_206] : memref<26x32xf32, #tpu.memory_space<vmem>>, vector<2x32xf32>
    tpu.vector_store %arg7[%c15_205, %c0_206], %128 {strides = array<i32>} : memref<26x32xf32, #tpu.memory_space<vmem>>, vector<2x32xf32>,
    %c0_207 = arith.constant 0 : index
    %c0_208 = arith.constant 0 : index
    %130 = vector.load %arg7[%c0_207, %c0_208] : memref<26x32xf32, #tpu.memory_space<vmem>>, vector<17x32xf32>
    %cst_209 = arith.constant dense<0.000000e+00> : vector<5x32xf32>
    %131 = tpu.matmul %111, %130, %cst_209 {dimension_numbers = #tpu.dot_dimension_numbers<[1], [0], [0], [1], [0, 0, 1, 1], [], []>} : vector<5x17xf32>, vector<17x32xf32>, vector<5x32xf32> -> vector<5x32xf32>
    %cst_210 = arith.constant dense<0.000000e+00> : vector<5x32xf32>
    %132 = tpu.matmul %112, %130, %cst_210 {dimension_numbers = #tpu.dot_dimension_numbers<[1], [0], [0], [1], [0, 0, 1, 1], [], []>} : vector<5x17xf32>, vector<17x32xf32>, vector<5x32xf32> -> vector<5x32xf32>
    %cst_211 = arith.constant 0.000000e+00 : f32
    %133 = vector.broadcast %cst_211 : f32 to vector<5x32xf32>
    %134 = arith.maximumf %132, %133 : vector<5x32xf32>
    %c26 = arith.constant 26 : index
    %c0_212 = arith.constant 0 : index
    %135 = vector.load %arg1[%c26, %c0_212] : memref<36x26xf32, #tpu.memory_space<vmem>>, vector<5x26xf32>
    %c0_213 = arith.constant 0 : index
    %c6_214 = arith.constant 6 : index
    %136 = vector.load %arg6[%c0_213, %c6_214] : memref<5x46xf32, #tpu.memory_space<vmem>>, vector<5x32xf32>
    tpu.vector_store %arg6[%c0_213, %c6_214], %134 {strides = array<i32>} : memref<5x46xf32, #tpu.memory_space<vmem>>, vector<5x32xf32>,
    %c0_215 = arith.constant 0 : index
    %c2_216 = arith.constant 2 : index
    %137 = vector.load %arg6[%c0_215, %c2_216] : memref<5x46xf32, #tpu.memory_space<vmem>>, vector<5x32xf32>
    %c1_217 = arith.constant 1 : index
    %c0_218 = arith.constant 0 : index
    %138 = vector.load %arg7[%c1_217, %c0_218] : memref<26x32xf32, #tpu.memory_space<vmem>>, vector<5x32xf32>
    tpu.vector_store %arg7[%c1_217, %c0_218], %137 {strides = array<i32>} : memref<26x32xf32, #tpu.memory_space<vmem>>, vector<5x32xf32>,
    %c0_219 = arith.constant 0 : index
    %c4_220 = arith.constant 4 : index
    %139 = vector.load %arg6[%c0_219, %c4_220] : memref<5x46xf32, #tpu.memory_space<vmem>>, vector<5x32xf32>
    %c6_221 = arith.constant 6 : index
    %c0_222 = arith.constant 0 : index
    %140 = vector.load %arg7[%c6_221, %c0_222] : memref<26x32xf32, #tpu.memory_space<vmem>>, vector<5x32xf32>
    tpu.vector_store %arg7[%c6_221, %c0_222], %139 {strides = array<i32>} : memref<26x32xf32, #tpu.memory_space<vmem>>, vector<5x32xf32>,
    %c0_223 = arith.constant 0 : index
    %c6_224 = arith.constant 6 : index
    %141 = vector.load %arg6[%c0_223, %c6_224] : memref<5x46xf32, #tpu.memory_space<vmem>>, vector<5x32xf32>
    %c11_225 = arith.constant 11 : index
    %c0_226 = arith.constant 0 : index
    %142 = vector.load %arg7[%c11_225, %c0_226] : memref<26x32xf32, #tpu.memory_space<vmem>>, vector<5x32xf32>
    tpu.vector_store %arg7[%c11_225, %c0_226], %141 {strides = array<i32>} : memref<26x32xf32, #tpu.memory_space<vmem>>, vector<5x32xf32>,
    %c0_227 = arith.constant 0 : index
    %c8_228 = arith.constant 8 : index
    %143 = vector.load %arg6[%c0_227, %c8_228] : memref<5x46xf32, #tpu.memory_space<vmem>>, vector<5x32xf32>
    %c16_229 = arith.constant 16 : index
    %c0_230 = arith.constant 0 : index
    %144 = vector.load %arg7[%c16_229, %c0_230] : memref<26x32xf32, #tpu.memory_space<vmem>>, vector<5x32xf32>
    tpu.vector_store %arg7[%c16_229, %c0_230], %143 {strides = array<i32>} : memref<26x32xf32, #tpu.memory_space<vmem>>, vector<5x32xf32>,
    %c0_231 = arith.constant 0 : index
    %c10_232 = arith.constant 10 : index
    %145 = vector.load %arg6[%c0_231, %c10_232] : memref<5x46xf32, #tpu.memory_space<vmem>>, vector<5x32xf32>
    %c21_233 = arith.constant 21 : index
    %c0_234 = arith.constant 0 : index
    %146 = vector.load %arg7[%c21_233, %c0_234] : memref<26x32xf32, #tpu.memory_space<vmem>>, vector<5x32xf32>
    tpu.vector_store %arg7[%c21_233, %c0_234], %145 {strides = array<i32>} : memref<26x32xf32, #tpu.memory_space<vmem>>, vector<5x32xf32>,
    %c0_235 = arith.constant 0 : index
    %c0_236 = arith.constant 0 : index
    %147 = vector.load %arg7[%c0_235, %c0_236] : memref<26x32xf32, #tpu.memory_space<vmem>>, vector<26x32xf32>
    %cst_237 = arith.constant dense<0.000000e+00> : vector<5x32xf32>
    %148 = tpu.matmul %135, %147, %cst_237 {dimension_numbers = #tpu.dot_dimension_numbers<[1], [0], [0], [1], [0, 0, 1, 1], [], []>} : vector<5x26xf32>, vector<26x32xf32>, vector<5x32xf32> -> vector<5x32xf32>
    %cst_238 = arith.constant 0.000000e+00 : f32
    %149 = vector.broadcast %cst_238 : f32 to vector<5x32xf32>
    %150 = arith.maximumf %148, %149 : vector<5x32xf32>
    %c31 = arith.constant 31 : index
    %c0_239 = arith.constant 0 : index
    %151 = vector.load %arg1[%c31, %c0_239] : memref<36x26xf32, #tpu.memory_space<vmem>>, vector<5x16xf32>
    %c0_240 = arith.constant 0 : index
    %c6_241 = arith.constant 6 : index
    %152 = vector.load %arg6[%c0_240, %c6_241] : memref<5x46xf32, #tpu.memory_space<vmem>>, vector<5x32xf32>
    tpu.vector_store %arg6[%c0_240, %c6_241], %150 {strides = array<i32>} : memref<5x46xf32, #tpu.memory_space<vmem>>, vector<5x32xf32>,
    %c0_242 = arith.constant 0 : index
    %c4_243 = arith.constant 4 : index
    %153 = vector.load %arg6[%c0_242, %c4_243] : memref<5x46xf32, #tpu.memory_space<vmem>>, vector<5x32xf32>
    %c1_244 = arith.constant 1 : index
    %c0_245 = arith.constant 0 : index
    %154 = vector.load %arg7[%c1_244, %c0_245] : memref<26x32xf32, #tpu.memory_space<vmem>>, vector<5x32xf32>
    tpu.vector_store %arg7[%c1_244, %c0_245], %153 {strides = array<i32>} : memref<26x32xf32, #tpu.memory_space<vmem>>, vector<5x32xf32>,
    %c0_246 = arith.constant 0 : index
    %c6_247 = arith.constant 6 : index
    %155 = vector.load %arg6[%c0_246, %c6_247] : memref<5x46xf32, #tpu.memory_space<vmem>>, vector<5x32xf32>
    %c6_248 = arith.constant 6 : index
    %c0_249 = arith.constant 0 : index
    %156 = vector.load %arg7[%c6_248, %c0_249] : memref<26x32xf32, #tpu.memory_space<vmem>>, vector<5x32xf32>
    tpu.vector_store %arg7[%c6_248, %c0_249], %155 {strides = array<i32>} : memref<26x32xf32, #tpu.memory_space<vmem>>, vector<5x32xf32>,
    %c0_250 = arith.constant 0 : index
    %c8_251 = arith.constant 8 : index
    %157 = vector.load %arg6[%c0_250, %c8_251] : memref<5x46xf32, #tpu.memory_space<vmem>>, vector<5x32xf32>
    %c11_252 = arith.constant 11 : index
    %c0_253 = arith.constant 0 : index
    %158 = vector.load %arg7[%c11_252, %c0_253] : memref<26x32xf32, #tpu.memory_space<vmem>>, vector<5x32xf32>
    tpu.vector_store %arg7[%c11_252, %c0_253], %157 {strides = array<i32>} : memref<26x32xf32, #tpu.memory_space<vmem>>, vector<5x32xf32>,
    %c0_254 = arith.constant 0 : index
    %c0_255 = arith.constant 0 : index
    %159 = vector.load %arg7[%c0_254, %c0_255] : memref<26x32xf32, #tpu.memory_space<vmem>>, vector<16x32xf32>
    %cst_256 = arith.constant dense<0.000000e+00> : vector<5x32xf32>
    %160 = tpu.matmul %151, %159, %cst_256 {dimension_numbers = #tpu.dot_dimension_numbers<[1], [0], [0], [1], [0, 0, 1, 1], [], []>} : vector<5x16xf32>, vector<16x32xf32>, vector<5x32xf32> -> vector<5x32xf32>
    %161 = arith.addf %160, %131 : vector<5x32xf32>
    %cst_257 = arith.constant 0.000000e+00 : f32
    %162 = vector.broadcast %cst_257 : f32 to vector<5x32xf32>
    %163 = arith.maximumf %161, %162 : vector<5x32xf32>
    %c0_258 = arith.constant 0 : index
    %c0_259 = arith.constant 0 : index
    %164 = vector.load %arg2[%c0_258, %c0_259] : memref<16x9xf32, #tpu.memory_space<vmem>>, vector<16x5xf32>
    %c0_260 = arith.constant 0 : index
    %c5_261 = arith.constant 5 : index
    %165 = vector.load %arg2[%c0_260, %c5_261] : memref<16x9xf32, #tpu.memory_space<vmem>>, vector<16x4xf32>
    %cst_262 = arith.constant dense<0.000000e+00> : vector<16x32xf32>
    %166 = tpu.matmul %164, %163, %cst_262 {dimension_numbers = #tpu.dot_dimension_numbers<[1], [0], [0], [1], [0, 0, 1, 1], [], []>} : vector<16x5xf32>, vector<5x32xf32>, vector<16x32xf32> -> vector<16x32xf32>
    %cst_263 = arith.constant 0.000000e+00 : f32
    %167 = vector.broadcast %cst_263 : f32 to vector<4x2xf32>
    %cst_264 = arith.constant 0.000000e+00 : f32
    %168 = vector.broadcast %cst_264 : f32 to vector<4x2xf32>
    %169 = vector.extract_strided_slice %166 {offsets = [0, 0], sizes = [16, 2], strides = [1, 1]} : vector<16x32xf32> to vector<16x2xf32>
    %cst_265 = arith.constant dense<0.000000e+00> : vector<16x2xf32>
    %170 = tpu.matmul %165, %167, %cst_265 {dimension_numbers = #tpu.dot_dimension_numbers<[1], [0], [0], [1], [0, 0, 1, 1], [], []>} : vector<16x4xf32>, vector<4x2xf32>, vector<16x2xf32> -> vector<16x2xf32>
    %171 = arith.addf %169, %170 : vector<16x2xf32>
    %172 = vector.extract_strided_slice %171 {offsets = [0, 0], sizes = [12, 2], strides = [1, 1]} : vector<16x2xf32> to vector<12x2xf32>
    %173 = arith.negf %172 : vector<12x2xf32>
    %174 = math.exp %173 : vector<12x2xf32>
    %cst_266 = arith.constant 1.000000e+00 : f32
    %175 = vector.broadcast %cst_266 : f32 to vector<12x2xf32>
    %176 = arith.addf %175, %174 : vector<12x2xf32>
    %177 = arith.divf %175, %176 : vector<12x2xf32>
    %178 = vector.extract_strided_slice %177 {offsets = [0, 0], sizes = [4, 2], strides = [1, 1]} : vector<12x2xf32> to vector<4x2xf32>
    %179 = vector.extract_strided_slice %177 {offsets = [4, 0], sizes = [4, 2], strides = [1, 1]} : vector<12x2xf32> to vector<4x2xf32>
    %180 = vector.extract_strided_slice %177 {offsets = [8, 0], sizes = [4, 2], strides = [1, 1]} : vector<12x2xf32> to vector<4x2xf32>
    %181 = vector.extract_strided_slice %171 {offsets = [12, 0], sizes = [4, 2], strides = [1, 1]} : vector<16x2xf32> to vector<4x2xf32>
    %182 = math.tanh %181 : vector<4x2xf32>
    %183 = arith.mulf %179, %168 : vector<4x2xf32>
    %184 = arith.mulf %178, %182 : vector<4x2xf32>
    %185 = arith.addf %183, %184 : vector<4x2xf32>
    %186 = math.tanh %185 : vector<4x2xf32>
    %187 = arith.mulf %180, %186 : vector<4x2xf32>
    %188 = vector.extract_strided_slice %166 {offsets = [0, 2], sizes = [16, 2], strides = [1, 1]} : vector<16x32xf32> to vector<16x2xf32>
    %cst_267 = arith.constant dense<0.000000e+00> : vector<16x2xf32>
    %189 = tpu.matmul %165, %187, %cst_267 {dimension_numbers = #tpu.dot_dimension_numbers<[1], [0], [0], [1], [0, 0, 1, 1], [], []>} : vector<16x4xf32>, vector<4x2xf32>, vector<16x2xf32> -> vector<16x2xf32>
    %190 = arith.addf %188, %189 : vector<16x2xf32>
    %191 = vector.extract_strided_slice %190 {offsets = [0, 0], sizes = [12, 2], strides = [1, 1]} : vector<16x2xf32> to vector<12x2xf32>
    %192 = arith.negf %191 : vector<12x2xf32>
    %193 = math.exp %192 : vector<12x2xf32>
    %cst_268 = arith.constant 1.000000e+00 : f32
    %194 = vector.broadcast %cst_268 : f32 to vector<12x2xf32>
    %195 = arith.addf %194, %193 : vector<12x2xf32>
    %196 = arith.divf %194, %195 : vector<12x2xf32>
    %197 = vector.extract_strided_slice %196 {offsets = [0, 0], sizes = [4, 2], strides = [1, 1]} : vector<12x2xf32> to vector<4x2xf32>
    %198 = vector.extract_strided_slice %196 {offsets = [4, 0], sizes = [4, 2], strides = [1, 1]} : vector<12x2xf32> to vector<4x2xf32>
    %199 = vector.extract_strided_slice %196 {offsets = [8, 0], sizes = [4, 2], strides = [1, 1]} : vector<12x2xf32> to vector<4x2xf32>
    %200 = vector.extract_strided_slice %190 {offsets = [12, 0], sizes = [4, 2], strides = [1, 1]} : vector<16x2xf32> to vector<4x2xf32>
    %201 = math.tanh %200 : vector<4x2xf32>
    %202 = arith.mulf %198, %185 : vector<4x2xf32>
    %203 = arith.mulf %197, %201 : vector<4x2xf32>
    %204 = arith.addf %202, %203 : vector<4x2xf32>
    %205 = math.tanh %204 : vector<4x2xf32>
    %206 = arith.mulf %199, %205 : vector<4x2xf32>
    %207 = vector.extract_strided_slice %166 {offsets = [0, 4], sizes = [16, 2], strides = [1, 1]} : vector<16x32xf32> to vector<16x2xf32>
    %cst_269 = arith.constant dense<0.000000e+00> : vector<16x2xf32>
    %208 = tpu.matmul %165, %206, %cst_269 {dimension_numbers = #tpu.dot_dimension_numbers<[1], [0], [0], [1], [0, 0, 1, 1], [], []>} : vector<16x4xf32>, vector<4x2xf32>, vector<16x2xf32> -> vector<16x2xf32>
    %209 = arith.addf %207, %208 : vector<16x2xf32>
    %210 = vector.extract_strided_slice %209 {offsets = [0, 0], sizes = [12, 2], strides = [1, 1]} : vector<16x2xf32> to vector<12x2xf32>
    %211 = arith.negf %210 : vector<12x2xf32>
    %212 = math.exp %211 : vector<12x2xf32>
    %cst_270 = arith.constant 1.000000e+00 : f32
    %213 = vector.broadcast %cst_270 : f32 to vector<12x2xf32>
    %214 = arith.addf %213, %212 : vector<12x2xf32>
    %215 = arith.divf %213, %214 : vector<12x2xf32>
    %216 = vector.extract_strided_slice %215 {offsets = [0, 0], sizes = [4, 2], strides = [1, 1]} : vector<12x2xf32> to vector<4x2xf32>
    %217 = vector.extract_strided_slice %215 {offsets = [4, 0], sizes = [4, 2], strides = [1, 1]} : vector<12x2xf32> to vector<4x2xf32>
    %218 = vector.extract_strided_slice %215 {offsets = [8, 0], sizes = [4, 2], strides = [1, 1]} : vector<12x2xf32> to vector<4x2xf32>
    %219 = vector.extract_strided_slice %209 {offsets = [12, 0], sizes = [4, 2], strides = [1, 1]} : vector<16x2xf32> to vector<4x2xf32>
    %220 = math.tanh %219 : vector<4x2xf32>
    %221 = arith.mulf %217, %204 : vector<4x2xf32>
    %222 = arith.mulf %216, %220 : vector<4x2xf32>
    %223 = arith.addf %221, %222 : vector<4x2xf32>
    %224 = math.tanh %223 : vector<4x2xf32>
    %225 = arith.mulf %218, %224 : vector<4x2xf32>
    %226 = vector.extract_strided_slice %166 {offsets = [0, 6], sizes = [16, 2], strides = [1, 1]} : vector<16x32xf32> to vector<16x2xf32>
    %cst_271 = arith.constant dense<0.000000e+00> : vector<16x2xf32>
    %227 = tpu.matmul %165, %225, %cst_271 {dimension_numbers = #tpu.dot_dimension_numbers<[1], [0], [0], [1], [0, 0, 1, 1], [], []>} : vector<16x4xf32>, vector<4x2xf32>, vector<16x2xf32> -> vector<16x2xf32>
    %228 = arith.addf %226, %227 : vector<16x2xf32>
    %229 = vector.extract_strided_slice %228 {offsets = [0, 0], sizes = [12, 2], strides = [1, 1]} : vector<16x2xf32> to vector<12x2xf32>
    %230 = arith.negf %229 : vector<12x2xf32>
    %231 = math.exp %230 : vector<12x2xf32>
    %cst_272 = arith.constant 1.000000e+00 : f32
    %232 = vector.broadcast %cst_272 : f32 to vector<12x2xf32>
    %233 = arith.addf %232, %231 : vector<12x2xf32>
    %234 = arith.divf %232, %233 : vector<12x2xf32>
    %235 = vector.extract_strided_slice %234 {offsets = [0, 0], sizes = [4, 2], strides = [1, 1]} : vector<12x2xf32> to vector<4x2xf32>
    %236 = vector.extract_strided_slice %234 {offsets = [4, 0], sizes = [4, 2], strides = [1, 1]} : vector<12x2xf32> to vector<4x2xf32>
    %237 = vector.extract_strided_slice %234 {offsets = [8, 0], sizes = [4, 2], strides = [1, 1]} : vector<12x2xf32> to vector<4x2xf32>
    %238 = vector.extract_strided_slice %228 {offsets = [12, 0], sizes = [4, 2], strides = [1, 1]} : vector<16x2xf32> to vector<4x2xf32>
    %239 = math.tanh %238 : vector<4x2xf32>
    %240 = arith.mulf %236, %223 : vector<4x2xf32>
    %241 = arith.mulf %235, %239 : vector<4x2xf32>
    %242 = arith.addf %240, %241 : vector<4x2xf32>
    %243 = math.tanh %242 : vector<4x2xf32>
    %244 = arith.mulf %237, %243 : vector<4x2xf32>
    %245 = vector.extract_strided_slice %166 {offsets = [0, 8], sizes = [16, 2], strides = [1, 1]} : vector<16x32xf32> to vector<16x2xf32>
    %cst_273 = arith.constant dense<0.000000e+00> : vector<16x2xf32>
    %246 = tpu.matmul %165, %244, %cst_273 {dimension_numbers = #tpu.dot_dimension_numbers<[1], [0], [0], [1], [0, 0, 1, 1], [], []>} : vector<16x4xf32>, vector<4x2xf32>, vector<16x2xf32> -> vector<16x2xf32>
    %247 = arith.addf %245, %246 : vector<16x2xf32>
    %248 = vector.extract_strided_slice %247 {offsets = [0, 0], sizes = [12, 2], strides = [1, 1]} : vector<16x2xf32> to vector<12x2xf32>
    %249 = arith.negf %248 : vector<12x2xf32>
    %250 = math.exp %249 : vector<12x2xf32>
    %cst_274 = arith.constant 1.000000e+00 : f32
    %251 = vector.broadcast %cst_274 : f32 to vector<12x2xf32>
    %252 = arith.addf %251, %250 : vector<12x2xf32>
    %253 = arith.divf %251, %252 : vector<12x2xf32>
    %254 = vector.extract_strided_slice %253 {offsets = [0, 0], sizes = [4, 2], strides = [1, 1]} : vector<12x2xf32> to vector<4x2xf32>
    %255 = vector.extract_strided_slice %253 {offsets = [4, 0], sizes = [4, 2], strides = [1, 1]} : vector<12x2xf32> to vector<4x2xf32>
    %256 = vector.extract_strided_slice %253 {offsets = [8, 0], sizes = [4, 2], strides = [1, 1]} : vector<12x2xf32> to vector<4x2xf32>
    %257 = vector.extract_strided_slice %247 {offsets = [12, 0], sizes = [4, 2], strides = [1, 1]} : vector<16x2xf32> to vector<4x2xf32>
    %258 = math.tanh %257 : vector<4x2xf32>
    %259 = arith.mulf %255, %242 : vector<4x2xf32>
    %260 = arith.mulf %254, %258 : vector<4x2xf32>
    %261 = arith.addf %259, %260 : vector<4x2xf32>
    %262 = math.tanh %261 : vector<4x2xf32>
    %263 = arith.mulf %256, %262 : vector<4x2xf32>
    %264 = vector.extract_strided_slice %166 {offsets = [0, 10], sizes = [16, 2], strides = [1, 1]} : vector<16x32xf32> to vector<16x2xf32>
    %cst_275 = arith.constant dense<0.000000e+00> : vector<16x2xf32>
    %265 = tpu.matmul %165, %263, %cst_275 {dimension_numbers = #tpu.dot_dimension_numbers<[1], [0], [0], [1], [0, 0, 1, 1], [], []>} : vector<16x4xf32>, vector<4x2xf32>, vector<16x2xf32> -> vector<16x2xf32>
    %266 = arith.addf %264, %265 : vector<16x2xf32>
    %267 = vector.extract_strided_slice %266 {offsets = [0, 0], sizes = [12, 2], strides = [1, 1]} : vector<16x2xf32> to vector<12x2xf32>
    %268 = arith.negf %267 : vector<12x2xf32>
    %269 = math.exp %268 : vector<12x2xf32>
    %cst_276 = arith.constant 1.000000e+00 : f32
    %270 = vector.broadcast %cst_276 : f32 to vector<12x2xf32>
    %271 = arith.addf %270, %269 : vector<12x2xf32>
    %272 = arith.divf %270, %271 : vector<12x2xf32>
    %273 = vector.extract_strided_slice %272 {offsets = [0, 0], sizes = [4, 2], strides = [1, 1]} : vector<12x2xf32> to vector<4x2xf32>
    %274 = vector.extract_strided_slice %272 {offsets = [4, 0], sizes = [4, 2], strides = [1, 1]} : vector<12x2xf32> to vector<4x2xf32>
    %275 = vector.extract_strided_slice %272 {offsets = [8, 0], sizes = [4, 2], strides = [1, 1]} : vector<12x2xf32> to vector<4x2xf32>
    %276 = vector.extract_strided_slice %266 {offsets = [12, 0], sizes = [4, 2], strides = [1, 1]} : vector<16x2xf32> to vector<4x2xf32>
    %277 = math.tanh %276 : vector<4x2xf32>
    %278 = arith.mulf %274, %261 : vector<4x2xf32>
    %279 = arith.mulf %273, %277 : vector<4x2xf32>
    %280 = arith.addf %278, %279 : vector<4x2xf32>
    %281 = math.tanh %280 : vector<4x2xf32>
    %282 = arith.mulf %275, %281 : vector<4x2xf32>
    %283 = vector.extract_strided_slice %166 {offsets = [0, 12], sizes = [16, 2], strides = [1, 1]} : vector<16x32xf32> to vector<16x2xf32>
    %cst_277 = arith.constant dense<0.000000e+00> : vector<16x2xf32>
    %284 = tpu.matmul %165, %282, %cst_277 {dimension_numbers = #tpu.dot_dimension_numbers<[1], [0], [0], [1], [0, 0, 1, 1], [], []>} : vector<16x4xf32>, vector<4x2xf32>, vector<16x2xf32> -> vector<16x2xf32>
    %285 = arith.addf %283, %284 : vector<16x2xf32>
    %286 = vector.extract_strided_slice %285 {offsets = [0, 0], sizes = [12, 2], strides = [1, 1]} : vector<16x2xf32> to vector<12x2xf32>
    %287 = arith.negf %286 : vector<12x2xf32>
    %288 = math.exp %287 : vector<12x2xf32>
    %cst_278 = arith.constant 1.000000e+00 : f32
    %289 = vector.broadcast %cst_278 : f32 to vector<12x2xf32>
    %290 = arith.addf %289, %288 : vector<12x2xf32>
    %291 = arith.divf %289, %290 : vector<12x2xf32>
    %292 = vector.extract_strided_slice %291 {offsets = [0, 0], sizes = [4, 2], strides = [1, 1]} : vector<12x2xf32> to vector<4x2xf32>
    %293 = vector.extract_strided_slice %291 {offsets = [4, 0], sizes = [4, 2], strides = [1, 1]} : vector<12x2xf32> to vector<4x2xf32>
    %294 = vector.extract_strided_slice %291 {offsets = [8, 0], sizes = [4, 2], strides = [1, 1]} : vector<12x2xf32> to vector<4x2xf32>
    %295 = vector.extract_strided_slice %285 {offsets = [12, 0], sizes = [4, 2], strides = [1, 1]} : vector<16x2xf32> to vector<4x2xf32>
    %296 = math.tanh %295 : vector<4x2xf32>
    %297 = arith.mulf %293, %280 : vector<4x2xf32>
    %298 = arith.mulf %292, %296 : vector<4x2xf32>
    %299 = arith.addf %297, %298 : vector<4x2xf32>
    %300 = math.tanh %299 : vector<4x2xf32>
    %301 = arith.mulf %294, %300 : vector<4x2xf32>
    %302 = vector.extract_strided_slice %166 {offsets = [0, 14], sizes = [16, 2], strides = [1, 1]} : vector<16x32xf32> to vector<16x2xf32>
    %cst_279 = arith.constant dense<0.000000e+00> : vector<16x2xf32>
    %303 = tpu.matmul %165, %301, %cst_279 {dimension_numbers = #tpu.dot_dimension_numbers<[1], [0], [0], [1], [0, 0, 1, 1], [], []>} : vector<16x4xf32>, vector<4x2xf32>, vector<16x2xf32> -> vector<16x2xf32>
    %304 = arith.addf %302, %303 : vector<16x2xf32>
    %305 = vector.extract_strided_slice %304 {offsets = [0, 0], sizes = [12, 2], strides = [1, 1]} : vector<16x2xf32> to vector<12x2xf32>
    %306 = arith.negf %305 : vector<12x2xf32>
    %307 = math.exp %306 : vector<12x2xf32>
    %cst_280 = arith.constant 1.000000e+00 : f32
    %308 = vector.broadcast %cst_280 : f32 to vector<12x2xf32>
    %309 = arith.addf %308, %307 : vector<12x2xf32>
    %310 = arith.divf %308, %309 : vector<12x2xf32>
    %311 = vector.extract_strided_slice %310 {offsets = [0, 0], sizes = [4, 2], strides = [1, 1]} : vector<12x2xf32> to vector<4x2xf32>
    %312 = vector.extract_strided_slice %310 {offsets = [4, 0], sizes = [4, 2], strides = [1, 1]} : vector<12x2xf32> to vector<4x2xf32>
    %313 = vector.extract_strided_slice %310 {offsets = [8, 0], sizes = [4, 2], strides = [1, 1]} : vector<12x2xf32> to vector<4x2xf32>
    %314 = vector.extract_strided_slice %304 {offsets = [12, 0], sizes = [4, 2], strides = [1, 1]} : vector<16x2xf32> to vector<4x2xf32>
    %315 = math.tanh %314 : vector<4x2xf32>
    %316 = arith.mulf %312, %299 : vector<4x2xf32>
    %317 = arith.mulf %311, %315 : vector<4x2xf32>
    %318 = arith.addf %316, %317 : vector<4x2xf32>
    %319 = math.tanh %318 : vector<4x2xf32>
    %320 = arith.mulf %313, %319 : vector<4x2xf32>
    %321 = vector.extract_strided_slice %166 {offsets = [0, 16], sizes = [16, 2], strides = [1, 1]} : vector<16x32xf32> to vector<16x2xf32>
    %cst_281 = arith.constant dense<0.000000e+00> : vector<16x2xf32>
    %322 = tpu.matmul %165, %320, %cst_281 {dimension_numbers = #tpu.dot_dimension_numbers<[1], [0], [0], [1], [0, 0, 1, 1], [], []>} : vector<16x4xf32>, vector<4x2xf32>, vector<16x2xf32> -> vector<16x2xf32>
    %323 = arith.addf %321, %322 : vector<16x2xf32>
    %324 = vector.extract_strided_slice %323 {offsets = [0, 0], sizes = [12, 2], strides = [1, 1]} : vector<16x2xf32> to vector<12x2xf32>
    %325 = arith.negf %324 : vector<12x2xf32>
    %326 = math.exp %325 : vector<12x2xf32>
    %cst_282 = arith.constant 1.000000e+00 : f32
    %327 = vector.broadcast %cst_282 : f32 to vector<12x2xf32>
    %328 = arith.addf %327, %326 : vector<12x2xf32>
    %329 = arith.divf %327, %328 : vector<12x2xf32>
    %330 = vector.extract_strided_slice %329 {offsets = [0, 0], sizes = [4, 2], strides = [1, 1]} : vector<12x2xf32> to vector<4x2xf32>
    %331 = vector.extract_strided_slice %329 {offsets = [4, 0], sizes = [4, 2], strides = [1, 1]} : vector<12x2xf32> to vector<4x2xf32>
    %332 = vector.extract_strided_slice %329 {offsets = [8, 0], sizes = [4, 2], strides = [1, 1]} : vector<12x2xf32> to vector<4x2xf32>
    %333 = vector.extract_strided_slice %323 {offsets = [12, 0], sizes = [4, 2], strides = [1, 1]} : vector<16x2xf32> to vector<4x2xf32>
    %334 = math.tanh %333 : vector<4x2xf32>
    %335 = arith.mulf %331, %318 : vector<4x2xf32>
    %336 = arith.mulf %330, %334 : vector<4x2xf32>
    %337 = arith.addf %335, %336 : vector<4x2xf32>
    %338 = math.tanh %337 : vector<4x2xf32>
    %339 = arith.mulf %332, %338 : vector<4x2xf32>
    %340 = vector.extract_strided_slice %166 {offsets = [0, 18], sizes = [16, 2], strides = [1, 1]} : vector<16x32xf32> to vector<16x2xf32>
    %cst_283 = arith.constant dense<0.000000e+00> : vector<16x2xf32>
    %341 = tpu.matmul %165, %339, %cst_283 {dimension_numbers = #tpu.dot_dimension_numbers<[1], [0], [0], [1], [0, 0, 1, 1], [], []>} : vector<16x4xf32>, vector<4x2xf32>, vector<16x2xf32> -> vector<16x2xf32>
    %342 = arith.addf %340, %341 : vector<16x2xf32>
    %343 = vector.extract_strided_slice %342 {offsets = [0, 0], sizes = [12, 2], strides = [1, 1]} : vector<16x2xf32> to vector<12x2xf32>
    %344 = arith.negf %343 : vector<12x2xf32>
    %345 = math.exp %344 : vector<12x2xf32>
    %cst_284 = arith.constant 1.000000e+00 : f32
    %346 = vector.broadcast %cst_284 : f32 to vector<12x2xf32>
    %347 = arith.addf %346, %345 : vector<12x2xf32>
    %348 = arith.divf %346, %347 : vector<12x2xf32>
    %349 = vector.extract_strided_slice %348 {offsets = [0, 0], sizes = [4, 2], strides = [1, 1]} : vector<12x2xf32> to vector<4x2xf32>
    %350 = vector.extract_strided_slice %348 {offsets = [4, 0], sizes = [4, 2], strides = [1, 1]} : vector<12x2xf32> to vector<4x2xf32>
    %351 = vector.extract_strided_slice %348 {offsets = [8, 0], sizes = [4, 2], strides = [1, 1]} : vector<12x2xf32> to vector<4x2xf32>
    %352 = vector.extract_strided_slice %342 {offsets = [12, 0], sizes = [4, 2], strides = [1, 1]} : vector<16x2xf32> to vector<4x2xf32>
    %353 = math.tanh %352 : vector<4x2xf32>
    %354 = arith.mulf %350, %337 : vector<4x2xf32>
    %355 = arith.mulf %349, %353 : vector<4x2xf32>
    %356 = arith.addf %354, %355 : vector<4x2xf32>
    %357 = math.tanh %356 : vector<4x2xf32>
    %358 = arith.mulf %351, %357 : vector<4x2xf32>
    %359 = vector.extract_strided_slice %166 {offsets = [0, 20], sizes = [16, 2], strides = [1, 1]} : vector<16x32xf32> to vector<16x2xf32>
    %cst_285 = arith.constant dense<0.000000e+00> : vector<16x2xf32>
    %360 = tpu.matmul %165, %358, %cst_285 {dimension_numbers = #tpu.dot_dimension_numbers<[1], [0], [0], [1], [0, 0, 1, 1], [], []>} : vector<16x4xf32>, vector<4x2xf32>, vector<16x2xf32> -> vector<16x2xf32>
    %361 = arith.addf %359, %360 : vector<16x2xf32>
    %362 = vector.extract_strided_slice %361 {offsets = [0, 0], sizes = [12, 2], strides = [1, 1]} : vector<16x2xf32> to vector<12x2xf32>
    %363 = arith.negf %362 : vector<12x2xf32>
    %364 = math.exp %363 : vector<12x2xf32>
    %cst_286 = arith.constant 1.000000e+00 : f32
    %365 = vector.broadcast %cst_286 : f32 to vector<12x2xf32>
    %366 = arith.addf %365, %364 : vector<12x2xf32>
    %367 = arith.divf %365, %366 : vector<12x2xf32>
    %368 = vector.extract_strided_slice %367 {offsets = [0, 0], sizes = [4, 2], strides = [1, 1]} : vector<12x2xf32> to vector<4x2xf32>
    %369 = vector.extract_strided_slice %367 {offsets = [4, 0], sizes = [4, 2], strides = [1, 1]} : vector<12x2xf32> to vector<4x2xf32>
    %370 = vector.extract_strided_slice %367 {offsets = [8, 0], sizes = [4, 2], strides = [1, 1]} : vector<12x2xf32> to vector<4x2xf32>
    %371 = vector.extract_strided_slice %361 {offsets = [12, 0], sizes = [4, 2], strides = [1, 1]} : vector<16x2xf32> to vector<4x2xf32>
    %372 = math.tanh %371 : vector<4x2xf32>
    %373 = arith.mulf %369, %356 : vector<4x2xf32>
    %374 = arith.mulf %368, %372 : vector<4x2xf32>
    %375 = arith.addf %373, %374 : vector<4x2xf32>
    %376 = math.tanh %375 : vector<4x2xf32>
    %377 = arith.mulf %370, %376 : vector<4x2xf32>
    %378 = vector.extract_strided_slice %166 {offsets = [0, 22], sizes = [16, 2], strides = [1, 1]} : vector<16x32xf32> to vector<16x2xf32>
    %cst_287 = arith.constant dense<0.000000e+00> : vector<16x2xf32>
    %379 = tpu.matmul %165, %377, %cst_287 {dimension_numbers = #tpu.dot_dimension_numbers<[1], [0], [0], [1], [0, 0, 1, 1], [], []>} : vector<16x4xf32>, vector<4x2xf32>, vector<16x2xf32> -> vector<16x2xf32>
    %380 = arith.addf %378, %379 : vector<16x2xf32>
    %381 = vector.extract_strided_slice %380 {offsets = [0, 0], sizes = [12, 2], strides = [1, 1]} : vector<16x2xf32> to vector<12x2xf32>
    %382 = arith.negf %381 : vector<12x2xf32>
    %383 = math.exp %382 : vector<12x2xf32>
    %cst_288 = arith.constant 1.000000e+00 : f32
    %384 = vector.broadcast %cst_288 : f32 to vector<12x2xf32>
    %385 = arith.addf %384, %383 : vector<12x2xf32>
    %386 = arith.divf %384, %385 : vector<12x2xf32>
    %387 = vector.extract_strided_slice %386 {offsets = [0, 0], sizes = [4, 2], strides = [1, 1]} : vector<12x2xf32> to vector<4x2xf32>
    %388 = vector.extract_strided_slice %386 {offsets = [4, 0], sizes = [4, 2], strides = [1, 1]} : vector<12x2xf32> to vector<4x2xf32>
    %389 = vector.extract_strided_slice %386 {offsets = [8, 0], sizes = [4, 2], strides = [1, 1]} : vector<12x2xf32> to vector<4x2xf32>
    %390 = vector.extract_strided_slice %380 {offsets = [12, 0], sizes = [4, 2], strides = [1, 1]} : vector<16x2xf32> to vector<4x2xf32>
    %391 = math.tanh %390 : vector<4x2xf32>
    %392 = arith.mulf %388, %375 : vector<4x2xf32>
    %393 = arith.mulf %387, %391 : vector<4x2xf32>
    %394 = arith.addf %392, %393 : vector<4x2xf32>
    %395 = math.tanh %394 : vector<4x2xf32>
    %396 = arith.mulf %389, %395 : vector<4x2xf32>
    %397 = vector.extract_strided_slice %166 {offsets = [0, 24], sizes = [16, 2], strides = [1, 1]} : vector<16x32xf32> to vector<16x2xf32>
    %cst_289 = arith.constant dense<0.000000e+00> : vector<16x2xf32>
    %398 = tpu.matmul %165, %396, %cst_289 {dimension_numbers = #tpu.dot_dimension_numbers<[1], [0], [0], [1], [0, 0, 1, 1], [], []>} : vector<16x4xf32>, vector<4x2xf32>, vector<16x2xf32> -> vector<16x2xf32>
    %399 = arith.addf %397, %398 : vector<16x2xf32>
    %400 = vector.extract_strided_slice %399 {offsets = [0, 0], sizes = [12, 2], strides = [1, 1]} : vector<16x2xf32> to vector<12x2xf32>
    %401 = arith.negf %400 : vector<12x2xf32>
    %402 = math.exp %401 : vector<12x2xf32>
    %cst_290 = arith.constant 1.000000e+00 : f32
    %403 = vector.broadcast %cst_290 : f32 to vector<12x2xf32>
    %404 = arith.addf %403, %402 : vector<12x2xf32>
    %405 = arith.divf %403, %404 : vector<12x2xf32>
    %406 = vector.extract_strided_slice %405 {offsets = [0, 0], sizes = [4, 2], strides = [1, 1]} : vector<12x2xf32> to vector<4x2xf32>
    %407 = vector.extract_strided_slice %405 {offsets = [4, 0], sizes = [4, 2], strides = [1, 1]} : vector<12x2xf32> to vector<4x2xf32>
    %408 = vector.extract_strided_slice %405 {offsets = [8, 0], sizes = [4, 2], strides = [1, 1]} : vector<12x2xf32> to vector<4x2xf32>
    %409 = vector.extract_strided_slice %399 {offsets = [12, 0], sizes = [4, 2], strides = [1, 1]} : vector<16x2xf32> to vector<4x2xf32>
    %410 = math.tanh %409 : vector<4x2xf32>
    %411 = arith.mulf %407, %394 : vector<4x2xf32>
    %412 = arith.mulf %406, %410 : vector<4x2xf32>
    %413 = arith.addf %411, %412 : vector<4x2xf32>
    %414 = math.tanh %413 : vector<4x2xf32>
    %415 = arith.mulf %408, %414 : vector<4x2xf32>
    %416 = vector.extract_strided_slice %166 {offsets = [0, 26], sizes = [16, 2], strides = [1, 1]} : vector<16x32xf32> to vector<16x2xf32>
    %cst_291 = arith.constant dense<0.000000e+00> : vector<16x2xf32>
    %417 = tpu.matmul %165, %415, %cst_291 {dimension_numbers = #tpu.dot_dimension_numbers<[1], [0], [0], [1], [0, 0, 1, 1], [], []>} : vector<16x4xf32>, vector<4x2xf32>, vector<16x2xf32> -> vector<16x2xf32>
    %418 = arith.addf %416, %417 : vector<16x2xf32>
    %419 = vector.extract_strided_slice %418 {offsets = [0, 0], sizes = [12, 2], strides = [1, 1]} : vector<16x2xf32> to vector<12x2xf32>
    %420 = arith.negf %419 : vector<12x2xf32>
    %421 = math.exp %420 : vector<12x2xf32>
    %cst_292 = arith.constant 1.000000e+00 : f32
    %422 = vector.broadcast %cst_292 : f32 to vector<12x2xf32>
    %423 = arith.addf %422, %421 : vector<12x2xf32>
    %424 = arith.divf %422, %423 : vector<12x2xf32>
    %425 = vector.extract_strided_slice %424 {offsets = [0, 0], sizes = [4, 2], strides = [1, 1]} : vector<12x2xf32> to vector<4x2xf32>
    %426 = vector.extract_strided_slice %424 {offsets = [4, 0], sizes = [4, 2], strides = [1, 1]} : vector<12x2xf32> to vector<4x2xf32>
    %427 = vector.extract_strided_slice %424 {offsets = [8, 0], sizes = [4, 2], strides = [1, 1]} : vector<12x2xf32> to vector<4x2xf32>
    %428 = vector.extract_strided_slice %418 {offsets = [12, 0], sizes = [4, 2], strides = [1, 1]} : vector<16x2xf32> to vector<4x2xf32>
    %429 = math.tanh %428 : vector<4x2xf32>
    %430 = arith.mulf %426, %413 : vector<4x2xf32>
    %431 = arith.mulf %425, %429 : vector<4x2xf32>
    %432 = arith.addf %430, %431 : vector<4x2xf32>
    %433 = math.tanh %432 : vector<4x2xf32>
    %434 = arith.mulf %427, %433 : vector<4x2xf32>
    %435 = vector.extract_strided_slice %166 {offsets = [0, 28], sizes = [16, 2], strides = [1, 1]} : vector<16x32xf32> to vector<16x2xf32>
    %cst_293 = arith.constant dense<0.000000e+00> : vector<16x2xf32>
    %436 = tpu.matmul %165, %434, %cst_293 {dimension_numbers = #tpu.dot_dimension_numbers<[1], [0], [0], [1], [0, 0, 1, 1], [], []>} : vector<16x4xf32>, vector<4x2xf32>, vector<16x2xf32> -> vector<16x2xf32>
    %437 = arith.addf %435, %436 : vector<16x2xf32>
    %438 = vector.extract_strided_slice %437 {offsets = [0, 0], sizes = [12, 2], strides = [1, 1]} : vector<16x2xf32> to vector<12x2xf32>
    %439 = arith.negf %438 : vector<12x2xf32>
    %440 = math.exp %439 : vector<12x2xf32>
    %cst_294 = arith.constant 1.000000e+00 : f32
    %441 = vector.broadcast %cst_294 : f32 to vector<12x2xf32>
    %442 = arith.addf %441, %440 : vector<12x2xf32>
    %443 = arith.divf %441, %442 : vector<12x2xf32>
    %444 = vector.extract_strided_slice %443 {offsets = [0, 0], sizes = [4, 2], strides = [1, 1]} : vector<12x2xf32> to vector<4x2xf32>
    %445 = vector.extract_strided_slice %443 {offsets = [4, 0], sizes = [4, 2], strides = [1, 1]} : vector<12x2xf32> to vector<4x2xf32>
    %446 = vector.extract_strided_slice %443 {offsets = [8, 0], sizes = [4, 2], strides = [1, 1]} : vector<12x2xf32> to vector<4x2xf32>
    %447 = vector.extract_strided_slice %437 {offsets = [12, 0], sizes = [4, 2], strides = [1, 1]} : vector<16x2xf32> to vector<4x2xf32>
    %448 = math.tanh %447 : vector<4x2xf32>
    %449 = arith.mulf %445, %432 : vector<4x2xf32>
    %450 = arith.mulf %444, %448 : vector<4x2xf32>
    %451 = arith.addf %449, %450 : vector<4x2xf32>
    %452 = math.tanh %451 : vector<4x2xf32>
    %453 = arith.mulf %446, %452 : vector<4x2xf32>
    %454 = vector.extract_strided_slice %166 {offsets = [0, 30], sizes = [16, 2], strides = [1, 1]} : vector<16x32xf32> to vector<16x2xf32>
    %cst_295 = arith.constant dense<0.000000e+00> : vector<16x2xf32>
    %455 = tpu.matmul %165, %453, %cst_295 {dimension_numbers = #tpu.dot_dimension_numbers<[1], [0], [0], [1], [0, 0, 1, 1], [], []>} : vector<16x4xf32>, vector<4x2xf32>, vector<16x2xf32> -> vector<16x2xf32>
    %456 = arith.addf %454, %455 : vector<16x2xf32>
    %457 = vector.extract_strided_slice %456 {offsets = [0, 0], sizes = [12, 2], strides = [1, 1]} : vector<16x2xf32> to vector<12x2xf32>
    %458 = arith.negf %457 : vector<12x2xf32>
    %459 = math.exp %458 : vector<12x2xf32>
    %cst_296 = arith.constant 1.000000e+00 : f32
    %460 = vector.broadcast %cst_296 : f32 to vector<12x2xf32>
    %461 = arith.addf %460, %459 : vector<12x2xf32>
    %462 = arith.divf %460, %461 : vector<12x2xf32>
    %463 = vector.extract_strided_slice %462 {offsets = [0, 0], sizes = [4, 2], strides = [1, 1]} : vector<12x2xf32> to vector<4x2xf32>
    %464 = vector.extract_strided_slice %462 {offsets = [4, 0], sizes = [4, 2], strides = [1, 1]} : vector<12x2xf32> to vector<4x2xf32>
    %465 = vector.extract_strided_slice %462 {offsets = [8, 0], sizes = [4, 2], strides = [1, 1]} : vector<12x2xf32> to vector<4x2xf32>
    %466 = vector.extract_strided_slice %456 {offsets = [12, 0], sizes = [4, 2], strides = [1, 1]} : vector<16x2xf32> to vector<4x2xf32>
    %467 = math.tanh %466 : vector<4x2xf32>
    %468 = arith.mulf %464, %451 : vector<4x2xf32>
    %469 = arith.mulf %463, %467 : vector<4x2xf32>
    %470 = arith.addf %468, %469 : vector<4x2xf32>
    %471 = math.tanh %470 : vector<4x2xf32>
    %472 = arith.mulf %465, %471 : vector<4x2xf32>
    %c0_297 = arith.constant 0 : index
    %c0_298 = arith.constant 0 : index
    %473 = vector.load %arg3[%c0_297, %c0_298] : memref<193x5xf32, #tpu.memory_space<vmem>>, vector<193x4xf32>
    %cst_299 = arith.constant dense<0.000000e+00> : vector<193x2xf32>
    %474 = tpu.matmul %473, %472, %cst_299 {dimension_numbers = #tpu.dot_dimension_numbers<[1], [0], [0], [1], [0, 0, 1, 1], [], []>} : vector<193x4xf32>, vector<4x2xf32>, vector<193x2xf32> -> vector<193x2xf32>
    %c0_300 = arith.constant 0 : index
    %c4_301 = arith.constant 4 : index
    %475 = vector.load %arg3[%c0_300, %c4_301] : memref<193x5xf32, #tpu.memory_space<vmem>>, vector<193x1xf32>
    %476 = vector.broadcast %475 : vector<193x1xf32> to vector<193x2xf32>
    %477 = arith.addf %474, %476 : vector<193x2xf32>
    %cst_302 = arith.constant 0.000000e+00 : f32
    %478 = vector.broadcast %cst_302 : f32 to vector<193x2xf32>
    %479 = arith.maximumf %477, %478 : vector<193x2xf32>
    %c0_303 = arith.constant 0 : index
    %c0_304 = arith.constant 0 : index
    %480 = vector.load %arg4[%c0_303, %c0_304] : memref<1x193xf32, #tpu.memory_space<vmem>>, vector<1x193xf32>
    %cst_305 = arith.constant dense<0.000000e+00> : vector<1x2xf32>
    %481 = tpu.matmul %480, %479, %cst_305 {dimension_numbers = #tpu.dot_dimension_numbers<[1], [0], [0], [1], [0, 0, 1, 1], [], []>} : vector<1x193xf32>, vector<193x2xf32>, vector<1x2xf32> -> vector<1x2xf32>
    %c0_306 = arith.constant 0 : index
    %c0_307 = arith.constant 0 : index
    %482 = vector.load %arg5[%c0_306, %c0_307] : memref<1x2xf32, #tpu.memory_space<vmem>>, vector<1x2xf32>
    tpu.vector_store %arg5[%c0_306, %c0_307], %481 {strides = array<i32>} : memref<1x2xf32, #tpu.memory_space<vmem>>, vector<1x2xf32>,
    return
  }
}

</mosaic_0001>

<bundles_post_ra>
// kernel: resnet_lstm_forward.1
= control target key start
LH: loop header
LB: loop body
LE: loop exit
PB: predicated region body
PF: predicated region fallthrough
CT: control target
= control target key end

     0   :  { %vm21_vm0 = vcmask 372736   ;;  %s4704_s20 = smov 6   ;;  %v4705_v1 = vmov 0.0   ;;  %s5343_s0 = inlined_call_operand.vmem [shape: f32[3,32], index: 0, kind: input, shape index: {}]   ;;  %s5344_s1 = inlined_call_operand.vmem [shape: f32[36,26], index: 1, kind: input, shape index: {}]   ;;  %s5345_s2 = inlined_call_operand.vmem [shape: f32[16,9], index: 2, kind: input, shape index: {}]   ;;  %s5346_s3 = inlined_call_operand.vmem [shape: f32[193,5], index: 3, kind: input, shape index: {}]   ;;  %s5347_s4 = inlined_call_operand.vmem [shape: f32[1,193], index: 4, kind: input, shape index: {}]   ;;  %s5348_s5 = inlined_call_operand.hbm [shape: f32[1,2], index: 5, kind: output, shape index: {}]  }
   0x1   :  { %v25_v0 = vld [vmem:[%s5343_s0] sm:$0x7]  ;;  %22 = vst.msk [vmem:[#allocation2] sm:$0x1f] %vm21_vm0, %v4705_v1  ;;  %4160 = vmatprep.subr.mxu1 %v4705_v1 }
   0x2   :  { %29 = vrot.lane.b32.xlu0 %v25_v0, %s4704_s20 }
   0x3   :  { %10 = vsyncpa [#allocation5], 0  ;;  %vm23_vm1 = vcmask 253952   ;;  %v4706_v2 = vmov 1.0   ;;  %vm32_vm2 = vcmask 305200   ;;  %vm35_vm3 = vcmask 256000  }
   0x4   :  { %24 = vst.msk [vmem:[#allocation3] sm:$0x1] %vm23_vm1, %v4706_v2  ;;  %s4707_s0 = smov 124   ;;  %s4708_s21 = smov 126   ;;  %v4709_v7 = vmov 0.0|0.0   ;;  %vm4714_vm4 = vmmov 0  }
   0x5   :  { %4363 = vmatprep.subr.bf16.mxu0 %v4709_v7  ;;  %s4710_s22 = smov 122   ;;  %s4711_s23 = smov 120   ;;  %4109 = vmatprep.mubr.msk.f32.mxu0 %vm4714_vm4, %v4705_v1  ;;  %vm87_vm5 = vcmask 1040384   ;;  %vm4716_vm6 = vmmov 1   ;;  %v26_v26 = vld [vmem:[%s5344_s1] sm:$0x3] }
   0x6   :  { %s4712_s24 = smov 118   ;;  %s4713_s25 = smov 116   ;;  %4162 = vmatprep.mubr.msk.f32.mxu1 %vm4714_vm4, %v4705_v1  ;;  %vm4368_vm7 = vmpackc.low %vm87_vm5, %vm4716_vm6  ;;  %vm83_vm8 = vcmask 203776   ;;  %v27_v27 = vld [vmem:[%s5344_s1 + $0x2] sm:$0x3]  ;;  %vm240_vm9 = vcmask 304176  }
   0x7   :  { %s4715_s26 = smov 114   ;;  %vm247_vm10 = vcmask 254976   ;;  %vm279_vm11 = vcmask 1042432   ;;  %v235_v46 = vld [vmem:[%s5344_s1 + $0x4] sm:$0x3]  ;;  %vm275_vm13 = vcmask 89088  }
   0x8   :  { %vm4827_vm12 = vmpackc.low %vm279_vm11, %vm4716_vm6  ;;  %vm383_vm14 = vcmask 1046528   ;;  %v354_v57 = vld [vmem:[%s5344_s1 + $0x6] sm:$0x3]  ;;  %vm379_vm15 = vcmask 56320   ;;  %vm512_vm0 = vcmask 138240   ;;  %vm1089_vm1 = vcmask 307248  }
   0x9   :  { %s4717_s8 = smov 123   ;;  %vm1315_vm11 = vcmask 1044480   ;;  %s4728_s13 = smov 20  }
   0xa   :  { %s4729_s14 = smov 108   ;;  %s4730_s15 = smov 22  }
   0xb   :  { %s4731_s16 = smov 106   ;;  %s4732_s17 = smov 24  }
   0xc   :  { %s4733_s18 = smov 104   ;;  %s4734_s19 = smov 26  }
   0xd   :  { %s4735_s27 = smov 102   ;;  %s4736_s28 = smov 28  }
   0xe   :  { %s4737_s29 = smov 100   ;;  %s4738_s30 = smov 30  }
   0xf   :  { %s4739_s6 = smov 98  }
  0x74   :  { %v30_v3 = vpop.permute.xlu0 %29 }
  0x75   :  { %33 = vst.msk [vmem:[#allocation2] sm:$0x7] %vm32_vm2, %v30_v3  ;;  %vm1096_vm2 = vcmask 258048  }
  0x7c   :  { %v34_v4 = vld [vmem:[#allocation2] sm:$0x7] }
  0x7d   :  { %v43_v5 = vld [vmem:[#allocation2] sm:$0x7]  ;;  %36 = vst.msk [vmem:[#allocation3 + $0x1] sm:$0x7] %vm35_vm3, %v34_v4 }
  0x7e   :  { %v37_v6 = vld [vmem:[#allocation2] sm:$0x7]  ;;  %45 = vrot.lane.b32.xlu1 %v43_v5, %s4707_s0 }
  0x7f   :  { %39 = vrot.lane.b32.xlu0 %v37_v6, %s4708_s21  ;;  %v49_v8 = vld [vmem:[#allocation2] sm:$0x7] }
  0x80   :  { %v55_v9 = vld [vmem:[#allocation2] sm:$0x7] }
  0x81   :  { %v61_v10 = vld [vmem:[#allocation2] sm:$0x7] }
  0x82   :  { %51 = vrot.lane.b32.xlu1 %v49_v8, %s4710_s22  ;;  %v67_v11 = vld [vmem:[#allocation2] sm:$0x7] }
  0x83   :  { %57 = vrot.lane.b32.xlu0 %v55_v9, %s4711_s23  ;;  %v73_v12 = vld [vmem:[#allocation2] sm:$0x7] }
  0x86   :  { %63 = vrot.lane.b32.xlu1 %v61_v10, %s4712_s24 }
  0x87   :  { %69 = vrot.lane.b32.xlu0 %v67_v11, %s4713_s25 }
  0x8a   :  { %75 = vrot.lane.b32.xlu1 %v73_v12, %s4715_s26 }
  0xf0   :  { %v46_v13 = vpop.permute.xlu1 %45 }
  0xf1   :  { %v40_v14 = vpop.permute.xlu0 %39  ;;  %48 = vst.msk [vmem:[#allocation3 + $0x7] sm:$0x7] %vm35_vm3, %v46_v13 }
  0xf2   :  { %42 = vst.msk [vmem:[#allocation3 + $0x4] sm:$0x7] %vm35_vm3, %v40_v14 }
  0xf4   :  { %v52_v15 = vpop.permute.xlu1 %51 }
  0xf5   :  { %v58_v16 = vpop.permute.xlu0 %57  ;;  %54 = vst.msk [vmem:[#allocation3 + $0xa] sm:$0x7] %vm35_vm3, %v52_v15 }
  0xf6   :  { %60 = vst.msk [vmem:[#allocation3 + $0xd] sm:$0x7] %vm35_vm3, %v58_v16 }
  0xf8   :  { %v64_v17 = vpop.permute.xlu1 %63 }
  0xf9   :  { %v70_v18 = vpop.permute.xlu0 %69  ;;  %66 = vst.msk [vmem:[#allocation3 + $0x10] sm:$0x7] %vm35_vm3, %v64_v17  ;;  %v79_v19 = vld [vmem:[#allocation3] sm:$0xff] }
  0xfa   :  { %72 = vst.msk [vmem:[#allocation3 + $0x13] sm:$0x7] %vm35_vm3, %v70_v18 }
  0xfc   :  { %v76_v21 = vpop.permute.xlu1 %75 }
  0xfd   :  { %v80_v20 = vld [vmem:[#allocation3 + $0x8] sm:$0xff]  ;;  %78 = vst.msk [vmem:[#allocation3 + $0x16] sm:$0x7] %vm35_vm3, %v76_v21  ;;  %v459_v21 = vld [vmem:[%s5344_s1 + $0xa] sm:$0x3]  ;;  %vm1130_vm3 = vcmask 1041408  }
  0xfe   :  { %v4364_v22 = vpack.c.bf16 %v80_v20, %v79_v19  ;;  %v458_v19 = vld [vmem:[%s5344_s1 + $0x8] sm:$0x3] }
 0x100   :  { %4365 = vmatpush3.bf16.msra.mxu0 %v4364_v22 }
 0x101   :  { %4366 = vmatprep.subr.bf16.mxu0 %v4709_v7 }
 0x104   :  { %v81_v23 = vld [vmem:[#allocation3 + $0x10] sm:$0xff]  ;;  %v82_v24 = vld [vmem:[#allocation3 + $0x18] sm:$0x1] }
 0x105   :  { %v4367_v25 = vpack.c.bf16 %v82_v24, %v81_v23 }
 0x107   :  { %4369 = vmatpush3.bf16.msk.msra.mxu0 %vm4368_vm7, %v4367_v25 }
 0x108   :  { %4370 = vmatprep.subr.bf16.mxu0 %v4709_v7 }
 0x10a   :  { %4110 = vmatmul.mubr.msk.f32.vlgmr.msra.gmra.mrb[0].mxu0 %vm83_vm8, %v26_v26 }
 0x10b   :  { %4372 = vmatpush3.bf16.msra.mxu0 %v4364_v22  ;;  %4120 = vmatprep.mubr.msk.f32.mxu0 %vm4714_vm4, %v4705_v1 }
 0x10c   :  { %4373 = vmatprep.subr.bf16.mxu0 %v4709_v7 }
 0x10f   :  { %4376 = vmatpush3.bf16.msk.msra.mxu0 %vm4368_vm7, %v4367_v25  ;;  %vm4402_vm7 = vmpackc.low %vm1130_vm3, %vm4716_vm6  ;;  %vm1231_vm6 = vcmask 130048  }
 0x110   :  { %4377 = vmatprep.subr.bf16.mxu0 %v4709_v7 }
 0x112   :  { %4121 = vmatmul.mubr.msk.f32.vlgmr.msra.gmra.mrb[2].mxu0 %vm83_vm8, %v27_v27  ;;  %vm1126_vm8 = vcmask 211968  }
 0x113   :  { %4127 = vmatprep.mubr.msk.f32.mxu0 %vm4714_vm4, %v4705_v1 }
 0x1e5   :  { %v230_v28 = vpop.f32.mrb[2].mxu0 }
 0x1e6   :  { %v234_v29 = vmax.f32 %v230_v28, 0.0  ;;  %v4122_v30 = vpop.f32.mrb[3].mxu0 }
 0x1e8   :  { %237 = vrot.lane.b32.xlu0 %v234_v29, %s4704_s20 }
 0x25a   :  { %v238_v31 = vpop.permute.xlu0 %237 }
 0x25b   :  { %241 = vst.msk [vmem:[#allocation2] sm:$0x3] %vm240_vm9, %v238_v31 }
 0x262   :  { %v249_v32 = vld [vmem:[#allocation2] sm:$0x3] }
 0x263   :  { %v242_v33 = vld [vmem:[#allocation2] sm:$0x3]  ;;  %251 = vrot.lane.b32.xlu0 %v249_v32, %s4707_s0 }
 0x264   :  { %244 = vrot.lane.b32.xlu1 %v242_v33, %s4708_s21  ;;  %v261_v34 = vld [vmem:[#allocation2] sm:$0x3] }
 0x265   :  { %v255_v35 = vld [vmem:[#allocation2] sm:$0x3] }
 0x266   :  { %v267_v36 = vld [vmem:[#allocation2] sm:$0x3] }
 0x267   :  { %263 = vrot.lane.b32.xlu0 %v261_v34, %s4711_s23 }
 0x268   :  { %257 = vrot.lane.b32.xlu1 %v255_v35, %s4710_s22 }
 0x26c   :  { %269 = vrot.lane.b32.xlu1 %v267_v36, %s4712_s24 }
 0x2d5   :  { %v252_v37 = vpop.permute.xlu0 %251 }
 0x2d6   :  { %v245_v38 = vpop.permute.xlu1 %244  ;;  %254 = vst.msk [vmem:[#allocation3 + $0x3] sm:$0x3] %vm247_vm10, %v252_v37 }
 0x2d7   :  { %248 = vst.msk [vmem:[#allocation3 + $0x1] sm:$0x3] %vm247_vm10, %v245_v38 }
 0x2d9   :  { %v264_v39 = vpop.permute.xlu0 %263 }
 0x2da   :  { %v258_v40 = vpop.permute.xlu1 %257  ;;  %266 = vst.msk [vmem:[#allocation3 + $0x7] sm:$0x3] %vm247_vm10, %v264_v39 }
 0x2db   :  { %260 = vst.msk [vmem:[#allocation3 + $0x5] sm:$0x3] %vm247_vm10, %v258_v40 }
 0x2de   :  { %v270_v41 = vpop.permute.xlu1 %269 }
 0x2df   :  { %272 = vst.msk [vmem:[#allocation3 + $0x9] sm:$0x3] %vm247_vm10, %v270_v41  ;;  %v663_v41 = vld [vmem:[%s5344_s1 + $0xc] sm:$0x3] }
 0x2e2   :  { %v273_v42 = vld [vmem:[#allocation3] sm:$0xff] }
 0x2e6   :  { %v274_v43 = vld [vmem:[#allocation3 + $0x8] sm:$0x7] }
 0x2e7   :  { %v4378_v45 = vpack.c.bf16 %v274_v43, %v273_v42 }
 0x2e9   :  { %4380 = vmatpush3.bf16.msk.msra.mxu0 %vm4827_vm12, %v4378_v45 }
 0x2ea   :  { %4130 = vmatprep.subr.mxu0 %v4705_v1 }
 0x2ec   :  { %4128 = vmatmul.mubr.msk.f32.vlgmr.msra.gmra.mrb[4].mxu0 %vm275_vm13, %v235_v46 }
 0x2ed   :  { %4132 = vmatprep.mubr.msk.f32.mxu0 %vm4714_vm4, %v4705_v1 }
 0x3bf   :  { %v349_v47 = vpop.f32.mrb[4].mxu0 }
 0x3c0   :  { %v353_v48 = vmax.f32 %v349_v47, 0.0  ;;  %v4129_v49 = vpop.f32.mrb[5].mxu0 }
 0x3c2   :  { %356 = vrot.lane.b32.xlu0 %v353_v48, %s4704_s20 }
 0x434   :  { %v357_v50 = vpop.permute.xlu0 %356 }
 0x435   :  { %359 = vst.msk [vmem:[#allocation2] sm:$0x3] %vm240_vm9, %v357_v50 }
 0x43c   :  { %v366_v51 = vld [vmem:[#allocation2] sm:$0x3] }
 0x43d   :  { %v360_v52 = vld [vmem:[#allocation2] sm:$0x3]  ;;  %368 = vrot.lane.b32.xlu0 %v366_v51, %s4710_s22 }
 0x43e   :  { %362 = vrot.lane.b32.xlu1 %v360_v52, %s4707_s0  ;;  %v372_v53 = vld [vmem:[#allocation2] sm:$0x3]  ;;  %v778_v52 = vld [vmem:[%s5344_s1 + $0xe] sm:$0x3] }
 0x442   :  { %374 = vrot.lane.b32.xlu1 %v372_v53, %s4711_s23 }
 0x4af   :  { %v369_v54 = vpop.permute.xlu0 %368 }
 0x4b0   :  { %v363_v55 = vpop.permute.xlu1 %362  ;;  %371 = vst.msk [vmem:[#allocation3 + $0x3] sm:$0x3] %vm247_vm10, %v369_v54 }
 0x4b1   :  { %365 = vst.msk [vmem:[#allocation3 + $0x1] sm:$0x3] %vm247_vm10, %v363_v55 }
 0x4b4   :  { %v375_v56 = vpop.permute.xlu1 %374 }
 0x4b5   :  { %377 = vst.msk [vmem:[#allocation3 + $0x5] sm:$0x3] %vm247_vm10, %v375_v56 }
 0x4bc   :  { %v378_v58 = vld [vmem:[#allocation3] sm:$0x7f] }
 0x4bd   :  { %4131 = vmatpush3.msk.msra.mxu0 %vm383_vm14, %v378_v58 }
 0x4be   :  { %4133 = vmatmul.mubr.msk.f32.vlgmr.msra.gmra.mrb[0].mxu0 %vm379_vm15, %v354_v57  ;;  %4381 = vmatprep.subr.bf16.mxu0 %v4709_v7 }
 0x4bf   :  { %4141 = vmatprep.mubr.msk.f32.mxu0 %vm4714_vm4, %v4705_v1 }
 0x591   :  { %v453_v59 = vpop.f32.mrb[0].mxu0 }
 0x592   :  { %v457_v60 = vmax.f32 %v453_v59, 0.0  ;;  %v4134_v61 = vpop.f32.mrb[1].mxu0 }
 0x594   :  { %461 = vrot.lane.b32.xlu0 %v457_v60, %s4704_s20 }
 0x606   :  { %v462_v62 = vpop.permute.xlu0 %461 }
 0x607   :  { %464 = vst.msk [vmem:[#allocation2] sm:$0x3] %vm240_vm9, %v462_v62 }
 0x60e   :  { %v473_v63 = vld [vmem:[#allocation2] sm:$0x3] }
 0x60f   :  { %v467_v0 = vld [vmem:[#allocation2] sm:$0x3]  ;;  %475 = vrot.lane.b32.xlu0 %v473_v63, %s4707_s0 }
 0x610   :  { %469 = vrot.lane.b32.xlu1 %v467_v0, %s4708_s21  ;;  %v465_v2 = vld [vmem:[#allocation2] sm:$0x3] }
 0x611   :  { %466 = vst.msk [vmem:[#allocation3 + $0x1] sm:$0x3] %vm247_vm10, %v465_v2  ;;  %v485_v3 = vld [vmem:[#allocation2] sm:$0x3] }
 0x612   :  { %v479_v4 = vld [vmem:[#allocation2] sm:$0x3] }
 0x613   :  { %487 = vrot.lane.b32.xlu0 %v485_v3, %s4711_s23  ;;  %v497_v5 = vld [vmem:[#allocation2] sm:$0x3] }
 0x614   :  { %481 = vrot.lane.b32.xlu1 %v479_v4, %s4710_s22  ;;  %v491_v6 = vld [vmem:[#allocation2] sm:$0x3] }
 0x615   :  { %v503_v8 = vld [vmem:[#allocation2] sm:$0x3] }
 0x617   :  { %499 = vrot.lane.b32.xlu0 %v497_v5, %s4713_s25 }
 0x618   :  { %493 = vrot.lane.b32.xlu1 %v491_v6, %s4712_s24 }
 0x61c   :  { %505 = vrot.lane.b32.xlu1 %v503_v8, %s4715_s26 }
 0x681   :  { %v476_v9 = vpop.permute.xlu0 %475 }
 0x682   :  { %v470_v10 = vpop.permute.xlu1 %469  ;;  %478 = vst.msk [vmem:[#allocation3 + $0x5] sm:$0x3] %vm247_vm10, %v476_v9 }
 0x683   :  { %472 = vst.msk [vmem:[#allocation3 + $0x3] sm:$0x3] %vm247_vm10, %v470_v10 }
 0x685   :  { %v488_v11 = vpop.permute.xlu0 %487 }
 0x686   :  { %v482_v12 = vpop.permute.xlu1 %481  ;;  %490 = vst.msk [vmem:[#allocation3 + $0x9] sm:$0x3] %vm247_vm10, %v488_v11 }
 0x687   :  { %484 = vst.msk [vmem:[#allocation3 + $0x7] sm:$0x3] %vm247_vm10, %v482_v12 }
 0x689   :  { %v500_v13 = vpop.permute.xlu0 %499 }
 0x68a   :  { %v494_v14 = vpop.permute.xlu1 %493  ;;  %502 = vst.msk [vmem:[#allocation3 + $0xd] sm:$0x3] %vm247_vm10, %v500_v13 }
 0x68b   :  { %496 = vst.msk [vmem:[#allocation3 + $0xb] sm:$0x3] %vm247_vm10, %v494_v14 }
 0x68e   :  { %v506_v15 = vpop.permute.xlu1 %505  ;;  %v509_v16 = vld [vmem:[#allocation3] sm:$0xff] }
 0x68f   :  { %508 = vst.msk [vmem:[#allocation3 + $0xf] sm:$0x3] %vm247_vm10, %v506_v15  ;;  %v881_v15 = vld [vmem:[%s5344_s1 + $0x15] sm:$0x1f] }
 0x696   :  { %v510_v17 = vld [vmem:[#allocation3 + $0x8] sm:$0xff]  ;;  %v511_v20 = vld [vmem:[#allocation3 + $0x10] sm:$0x1] }
 0x697   :  { %v4382_v18 = vpack.c.bf16 %v510_v17, %v509_v16 }
 0x699   :  { %4383 = vmatpush3.bf16.msra.mxu0 %v4382_v18 }
 0x69a   :  { %4139 = vmatprep.subr.mxu0 %v4705_v1 }
 0x69d   :  { %4140 = vmatpush3.msk.msra.mxu0 %vm87_vm5, %v511_v20 }
 0x69e   :  { %4142 = vmatmul.mubr.msk.f32.vlgmr.msra.gmra.mrb[6].mxu0 %vm512_vm0, %v458_v19  ;;  %4384 = vmatprep.subr.bf16.mxu0 %v4709_v7 }
 0x69f   :  { %4386 = vmatpush3.bf16.msra.mxu0 %v4382_v18  ;;  %4150 = vmatprep.mubr.msk.f32.mxu0 %vm4714_vm4, %v4705_v1 }
 0x6a0   :  { %4148 = vmatprep.subr.mxu0 %v4705_v1 }
 0x6a3   :  { %4149 = vmatpush3.msk.msra.mxu0 %vm87_vm5, %v511_v20 }
 0x6a4   :  { %4151 = vmatmul.mubr.msk.f32.vlgmr.msra.gmra.mrb[8].mxu0 %vm512_vm0, %v459_v21  ;;  %4387 = vmatprep.subr.bf16.mxu0 %v4709_v7  ;;  %v880_v21 = vld [vmem:[%s5344_s1 + $0x10] sm:$0x1f] }
 0x6a5   :  { %4157 = vmatprep.mubr.msk.f32.mxu0 %vm4714_vm4, %v4705_v1 }
 0x771   :  { %v585_v22 = vpop.f32.mrb[6].mxu0 }
 0x772   :  { %v4143_v23 = vpop.f32.mrb[7].mxu0 }
 0x777   :  { %v658_v24 = vpop.f32.mrb[8].mxu0 }
 0x778   :  { %v662_v25 = vmax.f32 %v658_v24, 0.0  ;;  %v4152_v26 = vpop.f32.mrb[9].mxu0 }
 0x77a   :  { %665 = vrot.lane.b32.xlu0 %v662_v25, %s4704_s20 }
 0x7ec   :  { %v666_v27 = vpop.permute.xlu0 %665 }
 0x7ed   :  { %668 = vst.msk [vmem:[#allocation2] sm:$0x3] %vm240_vm9, %v666_v27 }
 0x7f4   :  { %v675_v28 = vld [vmem:[#allocation2] sm:$0x3] }
 0x7f5   :  { %v669_v29 = vld [vmem:[#allocation2] sm:$0x3]  ;;  %677 = vrot.lane.b32.xlu0 %v675_v28, %s4707_s0 }
 0x7f6   :  { %671 = vrot.lane.b32.xlu1 %v669_v29, %s4708_s21  ;;  %v687_v30 = vld [vmem:[#allocation2] sm:$0x3] }
 0x7f7   :  { %v681_v31 = vld [vmem:[#allocation2] sm:$0x3] }
 0x7f8   :  { %v693_v32 = vld [vmem:[#allocation2] sm:$0x3] }
 0x7f9   :  { %689 = vrot.lane.b32.xlu0 %v687_v30, %s4711_s23 }
 0x7fa   :  { %683 = vrot.lane.b32.xlu1 %v681_v31, %s4710_s22 }
 0x7fe   :  { %695 = vrot.lane.b32.xlu1 %v693_v32, %s4712_s24 }
 0x867   :  { %v678_v33 = vpop.permute.xlu0 %677 }
 0x868   :  { %v672_v34 = vpop.permute.xlu1 %671  ;;  %680 = vst.msk [vmem:[#allocation3 + $0x3] sm:$0x3] %vm247_vm10, %v678_v33 }
 0x869   :  { %674 = vst.msk [vmem:[#allocation3 + $0x1] sm:$0x3] %vm247_vm10, %v672_v34 }
 0x86b   :  { %v690_v35 = vpop.permute.xlu0 %689 }
 0x86c   :  { %v684_v36 = vpop.permute.xlu1 %683  ;;  %692 = vst.msk [vmem:[#allocation3 + $0x7] sm:$0x3] %vm247_vm10, %v690_v35 }
 0x86d   :  { %686 = vst.msk [vmem:[#allocation3 + $0x5] sm:$0x3] %vm247_vm10, %v684_v36 }
 0x870   :  { %v696_v37 = vpop.permute.xlu1 %695 }
 0x871   :  { %698 = vst.msk [vmem:[#allocation3 + $0x9] sm:$0x3] %vm247_vm10, %v696_v37 }
 0x874   :  { %v699_v38 = vld [vmem:[#allocation3] sm:$0xff] }
 0x878   :  { %v700_v39 = vld [vmem:[#allocation3 + $0x8] sm:$0x7] }
 0x879   :  { %v4388_v40 = vpack.c.bf16 %v700_v39, %v699_v38  ;;  %v1084_v38 = vld [vmem:[%s5344_s1 + $0x1a] sm:$0x1f] }
 0x87b   :  { %4390 = vmatpush3.bf16.msk.msra.mxu0 %vm4827_vm12, %v4388_v40  ;;  %vm1403_vm12 = vcmask 1043456  }
 0x87c   :  { %4391 = vmatprep.subr.bf16.mxu0 %v4709_v7 }
 0x87e   :  { %4158 = vmatmul.mubr.msk.f32.vlgmr.msra.gmra.mrb[10].mxu0 %vm275_vm13, %v663_v41  ;;  %vm3755_vm13 = vcmask 531456  }
 0x87f   :  { %4171 = vmatprep.mubr.msk.f32.mxu0 %vm4714_vm4, %v4705_v1 }
 0x951   :  { %v773_v42 = vpop.f32.mrb[10].mxu0 }
 0x952   :  { %v777_v43 = vmax.f32 %v773_v42, 0.0  ;;  %v4159_v45 = vpop.f32.mrb[11].mxu0 }
 0x954   :  { %780 = vrot.lane.b32.xlu0 %v777_v43, %s4704_s20 }
 0x9c6   :  { %v781_v46 = vpop.permute.xlu0 %780 }
 0x9c7   :  { %783 = vst.msk [vmem:[#allocation2] sm:$0x3] %vm240_vm9, %v781_v46 }
 0x9ce   :  { %v790_v44 = vld [vmem:[#allocation2] sm:$0x3] }
 0x9cf   :  { %v784_v47 = vld [vmem:[#allocation2] sm:$0x3]  ;;  %792 = vrot.lane.b32.xlu0 %v790_v44, %s4710_s22  ;;  %v1306_v44 = vld [vmem:[%s5345_s2] sm:$0xff] }
 0x9d0   :  { %786 = vrot.lane.b32.xlu1 %v784_v47, %s4707_s0  ;;  %v796_v48 = vld [vmem:[#allocation2] sm:$0x3]  ;;  %v1307_v47 = vld [vmem:[%s5345_s2 + $0x8] sm:$0xff]  ;;  %s4719_s2 = smov 4  }
 0x9d4   :  { %798 = vrot.lane.b32.xlu1 %v796_v48, %s4711_s23 }
 0xa41   :  { %v793_v49 = vpop.permute.xlu0 %792 }
 0xa42   :  { %v787_v50 = vpop.permute.xlu1 %786  ;;  %795 = vst.msk [vmem:[#allocation3 + $0x3] sm:$0x3] %vm247_vm10, %v793_v49 }
 0xa43   :  { %789 = vst.msk [vmem:[#allocation3 + $0x1] sm:$0x3] %vm247_vm10, %v787_v50 }
 0xa46   :  { %v799_v51 = vpop.permute.xlu1 %798 }
 0xa47   :  { %801 = vst.msk [vmem:[#allocation3 + $0x5] sm:$0x3] %vm247_vm10, %v799_v51 }
 0xa4e   :  { %v802_v53 = vld [vmem:[#allocation3] sm:$0x7f] }
 0xa4f   :  { %4161 = vmatpush3.msk.msra.mxu1 %vm383_vm14, %v802_v53 }
 0xa50   :  { %4163 = vmatmul.mubr.msk.f32.vlgmr.msra.gmra.mrb[0].mxu1 %vm379_vm15, %v778_v52  ;;  %4394 = vmatprep.subr.bf16.mxu1 %v4709_v7 }
 0xa51   :  { %4180 = vmatprep.mubr.msk.f32.mxu1 %vm4714_vm4, %v4705_v1 }
 0xb23   :  { %v875_v54 = vpop.f32.mrb[0].mxu1 }
 0xb24   :  { %v876_v55 = vadd.f32 %v875_v54, %v585_v22  ;;  %v4164_v56 = vpop.f32.mrb[1].mxu1  ;;  %v1205_v54 = vld [vmem:[%s5344_s1 + $0x1f] sm:$0x1f]  ;;  %s4718_s1 = smov 2  }
 0xb26   :  { %v879_v57 = vmax.f32 %v876_v55, 0.0 }
 0xb28   :  { %883 = vrot.lane.b32.xlu0 %v879_v57, %s4704_s20 }
 0xb9a   :  { %v884_v58 = vpop.permute.xlu0 %883 }
 0xb9b   :  { %886 = vst.msk [vmem:[#allocation2] sm:$0x3] %vm240_vm9, %v884_v58  ;;  %vm1308_vm9 = vcmask 39936  }
 0xba2   :  { %v895_v59 = vld [vmem:[#allocation2] sm:$0x3] }
 0xba3   :  { %v889_v60 = vld [vmem:[#allocation2] sm:$0x3]  ;;  %897 = vrot.lane.b32.xlu0 %v895_v59, %s4707_s0 }
 0xba4   :  { %891 = vrot.lane.b32.xlu1 %v889_v60, %s4708_s21  ;;  %v887_v61 = vld [vmem:[#allocation2] sm:$0x3] }
 0xba5   :  { %888 = vst.msk [vmem:[#allocation3 + $0x1] sm:$0x3] %vm247_vm10, %v887_v61  ;;  %v907_v62 = vld [vmem:[#allocation2] sm:$0x3] }
 0xba6   :  { %v901_v63 = vld [vmem:[#allocation2] sm:$0x3] }
 0xba7   :  { %909 = vrot.lane.b32.xlu0 %v907_v62, %s4711_s23  ;;  %v919_v0 = vld [vmem:[#allocation2] sm:$0x3] }
 0xba8   :  { %903 = vrot.lane.b32.xlu1 %v901_v63, %s4710_s22  ;;  %v913_v2 = vld [vmem:[#allocation2] sm:$0x3] }
 0xba9   :  { %v925_v3 = vld [vmem:[#allocation2] sm:$0x3] }
 0xbab   :  { %921 = vrot.lane.b32.xlu0 %v919_v0, %s4713_s25 }
 0xbac   :  { %915 = vrot.lane.b32.xlu1 %v913_v2, %s4712_s24 }
 0xbb0   :  { %927 = vrot.lane.b32.xlu1 %v925_v3, %s4715_s26 }
 0xc15   :  { %v898_v4 = vpop.permute.xlu0 %897 }
 0xc16   :  { %v892_v5 = vpop.permute.xlu1 %891  ;;  %900 = vst.msk [vmem:[#allocation3 + $0x5] sm:$0x3] %vm247_vm10, %v898_v4 }
 0xc17   :  { %894 = vst.msk [vmem:[#allocation3 + $0x3] sm:$0x3] %vm247_vm10, %v892_v5 }
 0xc19   :  { %v910_v6 = vpop.permute.xlu0 %909 }
 0xc1a   :  { %v904_v8 = vpop.permute.xlu1 %903  ;;  %912 = vst.msk [vmem:[#allocation3 + $0x9] sm:$0x3] %vm247_vm10, %v910_v6 }
 0xc1b   :  { %906 = vst.msk [vmem:[#allocation3 + $0x7] sm:$0x3] %vm247_vm10, %v904_v8 }
 0xc1d   :  { %v922_v9 = vpop.permute.xlu0 %921 }
 0xc1e   :  { %v916_v10 = vpop.permute.xlu1 %915  ;;  %924 = vst.msk [vmem:[#allocation3 + $0xd] sm:$0x3] %vm247_vm10, %v922_v9 }
 0xc1f   :  { %918 = vst.msk [vmem:[#allocation3 + $0xb] sm:$0x3] %vm247_vm10, %v916_v10 }
 0xc22   :  { %v928_v11 = vpop.permute.xlu1 %927  ;;  %v931_v12 = vld [vmem:[#allocation3] sm:$0xff] }
 0xc23   :  { %930 = vst.msk [vmem:[#allocation3 + $0xf] sm:$0x3] %vm247_vm10, %v928_v11  ;;  %vm1398_vm10 = vcmask 31744  }
 0xc2a   :  { %v932_v13 = vld [vmem:[#allocation3 + $0x8] sm:$0xff]  ;;  %v933_v16 = vld [vmem:[#allocation3 + $0x10] sm:$0x1] }
 0xc2b   :  { %v4392_v14 = vpack.c.bf16 %v932_v13, %v931_v12 }
 0xc2d   :  { %4393 = vmatpush3.bf16.msra.mxu0 %v4392_v14  ;;  %4396 = vmatpush3.bf16.msra.mxu1 %v4392_v14 }
 0xc2e   :  { %4169 = vmatprep.subr.mxu0 %v4705_v1  ;;  %4178 = vmatprep.subr.mxu1 %v4705_v1 }
 0xc31   :  { %4170 = vmatpush3.msk.msra.mxu0 %vm87_vm5, %v933_v16  ;;  %4179 = vmatpush3.msk.msra.mxu1 %vm87_vm5, %v933_v16 }
 0xc32   :  { %4181 = vmatmul.mubr.msk.f32.vlgmr.msra.gmra.mrb[2].mxu1 %vm512_vm0, %v881_v15  ;;  %4397 = vmatprep.subr.bf16.mxu0 %v4709_v7 }
 0xc33   :  { %4172 = vmatmul.mubr.msk.f32.vlgmr.msra.gmra.mrb[12].mxu0 %vm512_vm0, %v880_v21  ;;  %4203 = vmatprep.mubr.msk.f32.mxu1 %vm1308_vm9, %v1306_v44 }
 0xc34   :  { %4191 = vmatprep.mubr.msk.f32.mxu0 %vm4714_vm4, %v4705_v1 }
 0xd05   :  { %v1079_v17 = vpop.f32.mrb[2].mxu1 }
 0xd06   :  { %v1083_v18 = vmax.f32 %v1079_v17, 0.0  ;;  %v4182_v19 = vpop.f32.mrb[3].mxu1 }
 0xd08   :  { %1086 = vrot.lane.b32.xlu0 %v1083_v18, %s4704_s20 }
 0xd7a   :  { %v1087_v20 = vpop.permute.xlu0 %1086 }
 0xd7b   :  { %1090 = vst.msk [vmem:[#allocation2] sm:$0x1f] %vm1089_vm1, %v1087_v20 }
 0xd82   :  { %v1098_v22 = vld [vmem:[#allocation2] sm:$0x1f] }
 0xd83   :  { %v1091_v23 = vld [vmem:[#allocation2] sm:$0x1f]  ;;  %1100 = vrot.lane.b32.xlu0 %v1098_v22, %s4707_s0 }
 0xd84   :  { %1093 = vrot.lane.b32.xlu1 %v1091_v23, %s4708_s21  ;;  %v1110_v24 = vld [vmem:[#allocation2] sm:$0x1f] }
 0xd85   :  { %v1104_v25 = vld [vmem:[#allocation2] sm:$0x1f] }
 0xd86   :  { %v1116_v26 = vld [vmem:[#allocation2] sm:$0x1f] }
 0xd87   :  { %1112 = vrot.lane.b32.xlu0 %v1110_v24, %s4711_s23 }
 0xd88   :  { %1106 = vrot.lane.b32.xlu1 %v1104_v25, %s4710_s22 }
 0xd8c   :  { %1118 = vrot.lane.b32.xlu1 %v1116_v26, %s4712_s24 }
 0xdf5   :  { %v1101_v27 = vpop.permute.xlu0 %1100 }
 0xdf6   :  { %v1094_v28 = vpop.permute.xlu1 %1093  ;;  %1103 = vst.msk [vmem:[#allocation3 + $0x6] sm:$0x1f] %vm1096_vm2, %v1101_v27 }
 0xdf7   :  { %1097 = vst.msk [vmem:[#allocation3 + $0x1] sm:$0x1f] %vm1096_vm2, %v1094_v28 }
 0xdf9   :  { %v1113_v29 = vpop.permute.xlu0 %1112 }
 0xdfa   :  { %v1107_v30 = vpop.permute.xlu1 %1106  ;;  %1115 = vst.msk [vmem:[#allocation3 + $0x10] sm:$0x1f] %vm1096_vm2, %v1113_v29 }
 0xdfb   :  { %1109 = vst.msk [vmem:[#allocation3 + $0xb] sm:$0x1f] %vm1096_vm2, %v1107_v30 }
 0xdfe   :  { %v1119_v31 = vpop.permute.xlu1 %1118  ;;  %v1122_v32 = vld [vmem:[#allocation3] sm:$0xff] }
 0xdff   :  { %1121 = vst.msk [vmem:[#allocation3 + $0x15] sm:$0x1f] %vm1096_vm2, %v1119_v31 }
 0xe02   :  { %v1123_v33 = vld [vmem:[#allocation3 + $0x8] sm:$0xff] }
 0xe03   :  { %v4398_v34 = vpack.c.bf16 %v1123_v33, %v1122_v32 }
 0xe05   :  { %4399 = vmatpush3.bf16.msra.mxu0 %v4398_v34 }
 0xe06   :  { %4400 = vmatprep.subr.bf16.mxu0 %v4709_v7  ;;  %v1124_v35 = vld [vmem:[#allocation3 + $0x10] sm:$0xff]  ;;  %v1125_v36 = vld [vmem:[#allocation3 + $0x18] sm:$0x3] }
 0xe07   :  { %v4401_v37 = vpack.c.bf16 %v1125_v36, %v1124_v35 }
 0xe09   :  { %4403 = vmatpush3.bf16.msk.msra.mxu0 %vm4402_vm7, %v4401_v37 }
 0xe0a   :  { %4404 = vmatprep.subr.bf16.mxu0 %v4709_v7 }
 0xe0c   :  { %4192 = vmatmul.mubr.msk.f32.vlgmr.msra.gmra.mrb[14].mxu0 %vm1126_vm8, %v1084_v38 }
 0xe0d   :  { %4198 = vmatprep.mubr.msk.f32.mxu0 %vm4714_vm4, %v4705_v1 }
 0xedf   :  { %v1200_v39 = vpop.f32.mrb[14].mxu0 }
 0xee0   :  { %v1204_v40 = vmax.f32 %v1200_v39, 0.0  ;;  %v4193_v41 = vpop.f32.mrb[15].mxu0 }
 0xee2   :  { %1207 = vrot.lane.b32.xlu0 %v1204_v40, %s4704_s20 }
 0xf54   :  { %v1208_v42 = vpop.permute.xlu0 %1207 }
 0xf55   :  { %1210 = vst.msk [vmem:[#allocation2] sm:$0x1f] %vm1089_vm1, %v1208_v42 }
 0xf5c   :  { %v1217_v43 = vld [vmem:[#allocation2] sm:$0x1f] }
 0xf5d   :  { %v1211_v45 = vld [vmem:[#allocation2] sm:$0x1f]  ;;  %1219 = vrot.lane.b32.xlu0 %v1217_v43, %s4710_s22 }
 0xf5e   :  { %1213 = vrot.lane.b32.xlu1 %v1211_v45, %s4707_s0  ;;  %v1223_v46 = vld [vmem:[#allocation2] sm:$0x1f] }
 0xf61   :  { %1394 = vrot.lane.b32.xlu0 %v1306_v44, %s4717_s8 }
 0xf62   :  { %1225 = vrot.lane.b32.xlu1 %v1223_v46, %s4711_s23 }
 0xf66   :  { %1396 = vrot.lane.b32.xlu1 %v1307_v47, %s4717_s8 }
 0xfcf   :  { %v1220_v48 = vpop.permute.xlu0 %1219 }
 0xfd0   :  { %v1214_v49 = vpop.permute.xlu1 %1213  ;;  %1222 = vst.msk [vmem:[#allocation3 + $0x6] sm:$0x1f] %vm1096_vm2, %v1220_v48 }
 0xfd1   :  { %1216 = vst.msk [vmem:[#allocation3 + $0x1] sm:$0x1f] %vm1096_vm2, %v1214_v49 }
 0xfd3   :  { %v4997_v55 = vpop.permute.xlu0 %1394 }
 0xfd4   :  { %v1226_v50 = vpop.permute.xlu1 %1225 }
 0xfd5   :  { %1228 = vst.msk [vmem:[#allocation3 + $0xb] sm:$0x1f] %vm1096_vm2, %v1226_v50 }
 0xfd8   :  { %v1229_v51 = vld [vmem:[#allocation3] sm:$0xff]  ;;  %v5002_v59 = vpop.permute.xlu1 %1396 }
 0xfdc   :  { %v1230_v52 = vld [vmem:[#allocation3 + $0x8] sm:$0xff] }
 0xfdd   :  { %v4405_v53 = vpack.c.bf16 %v1230_v52, %v1229_v51 }
 0xfdf   :  { %4406 = vmatpush3.bf16.msra.mxu0 %v4405_v53 }
 0xfe2   :  { %4199 = vmatmul.mubr.msk.f32.vlgmr.msra.gmra.mrb[12].mxu0 %vm1231_vm6, %v1205_v54 }
 0xfe3   :  { %4213 = vmatprep.mubr.msk.f32.mxu0 %vm1398_vm10, %v4997_v55 }
0x10b5   :  { %v1301_v56 = vpop.f32.mrb[12].mxu0 }
0x10b6   :  { %v1305_v57 = vmax.f32 %v1301_v56, 0.0  ;;  %v4200_v58 = vpop.f32.mrb[13].mxu0 }
0x10b8   :  { %4201 = vmatprep.subr.msk.mxu1 %vm1315_vm11, %v1305_v57 }
0x10b9   :  { %4202 = vmatpush3.msk.msra.mxu1 %vm1315_vm11, %v1305_v57 }
0x10ba   :  { %4204 = vmatmul.mubr.msk.f32.vlgmr.msra.gmra.mrb[4].mxu1 %vm1308_vm9, %v1307_v47  ;;  %4206 = vmatprep.subr.mxu1 %v4705_v1 }
0x10bb   :  { %4207 = vmatpush3.msra.mxu1 %v4705_v1  ;;  %4208 = vmatprep.mubr.msk.f32.mxu1 %vm1398_vm10, %v4997_v55 }
0x10be   :  { %4209 = vmatmul.mubr.msk.f32.vlgmr.msra.gmra.mrb[6].mxu1 %vm1398_vm10, %v5002_v59 }
0x10bf   :  { %4218 = vmatprep.mubr.msk.f32.mxu1 %vm1398_vm10, %v4997_v55 }
0x118d   :  { %v5011_v60 = vpop.f32.mrb[4].mxu1 }
0x118e   :  { %v5013_v61 = vpop.f32.mrb[5].mxu1 }
0x1191   :  { %v4210_v62 = vpop.f32.mrb[6].mxu1 }
0x1192   :  { %v1483_v63 = vadd.f32 %v4210_v62, %v5011_v60  ;;  %v1473_v0 = vpop.f32.mrb[7].mxu1 }
0x1193   :  { %v1482_v2 = vadd.f32 %v1473_v0, %v5013_v61 }
0x1194   :  { %v3876_v5 = vmul.f32 -1.442695, %v1483_v63 }
0x1195   :  { %v3875_v3 = vmul.f32 -1.442695, %v1482_v2 }
0x1197   :  { %4488 = vpow2.f32 %v3875_v3 }
0x1198   :  { %4490 = vtanh.f32 %v1483_v63 }
0x11a1   :  { %v4489_v4 = vpop.eup %4488 }
0x11a2   :  { %v1490_v6 = vadd.f32 1.0, %v4489_v4  ;;  %v4491_v8 = vpop.eup %4490 }
0x11a3   :  { %v1499_v9 = vrot.slane %v4491_v8, 4 }
0x11a4   :  { %4492 = vrcp.f32 %v1490_v6 }
0x11a5   :  { %4494 = vpow2.f32 %v3876_v5 }
0x11ae   :  { %v4493_v10 = vpop.eup %4492 }
0x11af   :  { %v1501_v11 = vmul.f32 %v4493_v10, %v1499_v9  ;;  %v4495_v12 = vpop.eup %4494  ;;  %v1497_v13 = vmul.f32 0.0, %v4493_v10 }
0x11b0   :  { %v1491_v15 = vadd.f32 1.0, %v4495_v12 }
0x11b1   :  { %v1503_v14 = vrot.slane %v1501_v11, 4 }
0x11b3   :  { %v1505_v16 = vadd.f32 %v1503_v14, %v1497_v13 }
0x11b5   :  { %4496 = vtanh.f32 %v1505_v16 }
0x11b6   :  { %4498 = vrcp.f32 %v1491_v15 }
0x11bf   :  { %v4497_v17 = vpop.eup %4496 }
0x11c0   :  { %v1508_v18 = vrot.slane %v4497_v17, 4  ;;  %v4499_v19 = vpop.eup %4498 }
0x11c2   :  { %v1510_v20 = vmul.f32 %v4499_v19, %v1508_v18 }
0x11c4   :  { %4211 = vmatprep.subr.msk.mxu0 %vm1403_vm12, %v1510_v20 }
0x11c5   :  { %4212 = vmatpush3.msk.msra.mxu0 %vm1403_vm12, %v1510_v20 }
0x11c6   :  { %4214 = vmatmul.mubr.msk.f32.vlgmr.msra.gmra.mrb[16].mxu0 %vm1398_vm10, %v5002_v59 }
0x11c7   :  { %4223 = vmatprep.mubr.msk.f32.mxu0 %vm1398_vm10, %v4997_v55 }
0x1299   :  { %v4215_v21 = vpop.f32.mrb[16].mxu0 }
0x129a   :  { %1593 = vrot.lane.b32.xlu1 %v4215_v21, %s4718_s1  ;;  %v1580_v22 = vpop.f32.mrb[17].mxu0 }
0x129b   :  { %1591 = vrot.lane.b32.xlu0 %v1580_v22, %s4718_s1 }
0x129f   :  { %1613 = vrot.lane.b32.xlu0 %v1505_v16, %s4718_s1 }
0x130c   :  { %v1594_v26 = vpop.permute.xlu1 %1593 }
0x130d   :  { %v1592_v23 = vpop.permute.xlu0 %1591  ;;  %v1598_v27 = vadd.f32 %v5011_v60, %v1594_v26 }
0x130e   :  { %v1597_v24 = vadd.f32 %v1592_v23, %v5013_v61 }
0x130f   :  { %v3881_v29 = vmul.f32 -1.442695, %v1598_v27 }
0x1310   :  { %v3880_v25 = vmul.f32 -1.442695, %v1597_v24 }
0x1311   :  { %v1614_v36 = vpop.permute.xlu0 %1613 }
0x1312   :  { %4500 = vpow2.f32 %v3880_v25 }
0x1313   :  { %4502 = vtanh.f32 %v1598_v27 }
0x131c   :  { %v4501_v28 = vpop.eup %4500 }
0x131d   :  { %v1605_v30 = vadd.f32 1.0, %v4501_v28  ;;  %v4503_v31 = vpop.eup %4502 }
0x131e   :  { %v1618_v32 = vrot.slane %v4503_v31, 4 }
0x131f   :  { %4504 = vrcp.f32 %v1605_v30 }
0x1320   :  { %4506 = vpow2.f32 %v3881_v29 }
0x1329   :  { %v4505_v33 = vpop.eup %4504 }
0x132a   :  { %v1620_v34 = vmul.f32 %v4505_v33, %v1618_v32  ;;  %v4507_v35 = vpop.eup %4506  ;;  %v1616_v38 = vmul.f32 %v4505_v33, %v1614_v36 }
0x132b   :  { %v1606_v39 = vadd.f32 1.0, %v4507_v35 }
0x132c   :  { %v1622_v37 = vrot.slane %v1620_v34, 4 }
0x132e   :  { %v1624_v40 = vadd.f32 %v1622_v37, %v1616_v38 }
0x1330   :  { %4508 = vtanh.f32 %v1624_v40 }
0x1331   :  { %4510 = vrcp.f32 %v1606_v39 }
0x133a   :  { %v4509_v41 = vpop.eup %4508 }
0x133b   :  { %v1627_v42 = vrot.slane %v4509_v41, 4  ;;  %v4511_v43 = vpop.eup %4510 }
0x133d   :  { %v1629_v45 = vmul.f32 %v4511_v43, %v1627_v42 }
0x133f   :  { %1631 = vrot.lane.b32.xlu1 %v1629_v45, %s4708_s21  ;;  %s4722_s21 = smov 12  }
0x13b1   :  { %v1632_v46 = vpop.permute.xlu1 %1631 }
0x13b2   :  { %4216 = vmatprep.subr.msk.mxu1 %vm1403_vm12, %v1632_v46 }
0x13b3   :  { %4217 = vmatpush3.msk.msra.mxu1 %vm1403_vm12, %v1632_v46 }
0x13b4   :  { %4219 = vmatmul.mubr.msk.f32.vlgmr.msra.gmra.mrb[8].mxu1 %vm1398_vm10, %v5002_v59 }
0x13b5   :  { %4228 = vmatprep.mubr.msk.f32.mxu1 %vm1398_vm10, %v4997_v55 }
0x1487   :  { %v4220_v44 = vpop.f32.mrb[8].mxu1 }
0x1488   :  { %1714 = vrot.lane.b32.xlu1 %v4220_v44, %s4719_s2  ;;  %v1701_v47 = vpop.f32.mrb[9].mxu1 }
0x1489   :  { %1712 = vrot.lane.b32.xlu0 %v1701_v47, %s4719_s2 }
0x148d   :  { %1734 = vrot.lane.b32.xlu0 %v1624_v40, %s4718_s1 }
0x14fa   :  { %v1715_v51 = vpop.permute.xlu1 %1714 }
0x14fb   :  { %v1713_v48 = vpop.permute.xlu0 %1712  ;;  %v1719_v52 = vadd.f32 %v5011_v60, %v1715_v51 }
0x14fc   :  { %v1718_v49 = vadd.f32 %v1713_v48, %v5013_v61 }
0x14fd   :  { %v3886_v54 = vmul.f32 -1.442695, %v1719_v52 }
0x14fe   :  { %v3885_v50 = vmul.f32 -1.442695, %v1718_v49 }
0x14ff   :  { %v1735_v2 = vpop.permute.xlu0 %1734 }
0x1500   :  { %4512 = vpow2.f32 %v3885_v50 }
0x1501   :  { %4514 = vtanh.f32 %v1719_v52 }
0x150a   :  { %v4513_v53 = vpop.eup %4512 }
0x150b   :  { %v1726_v56 = vadd.f32 1.0, %v4513_v53  ;;  %v4515_v57 = vpop.eup %4514 }
0x150c   :  { %v1739_v58 = vrot.slane %v4515_v57, 4 }
0x150d   :  { %4516 = vrcp.f32 %v1726_v56 }
0x150e   :  { %4518 = vpow2.f32 %v3886_v54 }
0x1517   :  { %v4517_v62 = vpop.eup %4516 }
0x1518   :  { %v1741_v63 = vmul.f32 %v4517_v62, %v1739_v58  ;;  %v4519_v0 = vpop.eup %4518  ;;  %v1737_v4 = vmul.f32 %v4517_v62, %v1735_v2 }
0x1519   :  { %v1727_v5 = vadd.f32 1.0, %v4519_v0 }
0x151a   :  { %v1743_v3 = vrot.slane %v1741_v63, 4 }
0x151c   :  { %v1745_v6 = vadd.f32 %v1743_v3, %v1737_v4 }
0x151e   :  { %4520 = vtanh.f32 %v1745_v6 }
0x151f   :  { %4522 = vrcp.f32 %v1727_v5 }
0x1528   :  { %v4521_v8 = vpop.eup %4520 }
0x1529   :  { %v1748_v9 = vrot.slane %v4521_v8, 4  ;;  %v4523_v10 = vpop.eup %4522 }
0x152b   :  { %v1750_v11 = vmul.f32 %v4523_v10, %v1748_v9 }
0x152d   :  { %1752 = vrot.lane.b32.xlu1 %v1750_v11, %s4707_s0  ;;  %s4721_s0 = smov 10  }
0x159f   :  { %v1753_v12 = vpop.permute.xlu1 %1752 }
0x15a0   :  { %4221 = vmatprep.subr.msk.mxu0 %vm1403_vm12, %v1753_v12 }
0x15a1   :  { %4222 = vmatpush3.msk.msra.mxu0 %vm1403_vm12, %v1753_v12 }
0x15a2   :  { %4224 = vmatmul.mubr.msk.f32.vlgmr.msra.gmra.mrb[18].mxu0 %vm1398_vm10, %v5002_v59 }
0x15a3   :  { %4233 = vmatprep.mubr.msk.f32.mxu0 %vm1398_vm10, %v4997_v55 }
0x1675   :  { %v4225_v13 = vpop.f32.mrb[18].mxu0 }
0x1676   :  { %1835 = vrot.lane.b32.xlu1 %v4225_v13, %s4704_s20  ;;  %v1822_v14 = vpop.f32.mrb[19].mxu0 }
0x1677   :  { %1833 = vrot.lane.b32.xlu0 %v1822_v14, %s4704_s20  ;;  %s4720_s20 = smov 8  }
0x167b   :  { %1855 = vrot.lane.b32.xlu0 %v1745_v6, %s4718_s1 }
0x16e8   :  { %v1836_v18 = vpop.permute.xlu1 %1835 }
0x16e9   :  { %v1834_v15 = vpop.permute.xlu0 %1833  ;;  %v1840_v19 = vadd.f32 %v5011_v60, %v1836_v18 }
0x16ea   :  { %v1839_v16 = vadd.f32 %v1834_v15, %v5013_v61 }
0x16eb   :  { %v3891_v21 = vmul.f32 -1.442695, %v1840_v19 }
0x16ec   :  { %v3890_v17 = vmul.f32 -1.442695, %v1839_v16 }
0x16ed   :  { %v1856_v28 = vpop.permute.xlu0 %1855 }
0x16ee   :  { %4524 = vpow2.f32 %v3890_v17 }
0x16ef   :  { %4526 = vtanh.f32 %v1840_v19 }
0x16f8   :  { %v4525_v20 = vpop.eup %4524 }
0x16f9   :  { %v1847_v22 = vadd.f32 1.0, %v4525_v20  ;;  %v4527_v23 = vpop.eup %4526 }
0x16fa   :  { %v1860_v24 = vrot.slane %v4527_v23, 4 }
0x16fb   :  { %4528 = vrcp.f32 %v1847_v22 }
0x16fc   :  { %4530 = vpow2.f32 %v3891_v21 }
0x1705   :  { %v4529_v25 = vpop.eup %4528 }
0x1706   :  { %v1862_v26 = vmul.f32 %v4529_v25, %v1860_v24  ;;  %v4531_v27 = vpop.eup %4530  ;;  %v1858_v30 = vmul.f32 %v4529_v25, %v1856_v28 }
0x1707   :  { %v1848_v31 = vadd.f32 1.0, %v4531_v27 }
0x1708   :  { %v1864_v29 = vrot.slane %v1862_v26, 4 }
0x170a   :  { %v1866_v32 = vadd.f32 %v1864_v29, %v1858_v30 }
0x170c   :  { %4532 = vtanh.f32 %v1866_v32 }
0x170d   :  { %4534 = vrcp.f32 %v1848_v31 }
0x1716   :  { %v4533_v33 = vpop.eup %4532 }
0x1717   :  { %v1869_v34 = vrot.slane %v4533_v33, 4  ;;  %v4535_v35 = vpop.eup %4534 }
0x1719   :  { %v1871_v36 = vmul.f32 %v4535_v35, %v1869_v34 }
0x171b   :  { %1873 = vrot.lane.b32.xlu1 %v1871_v36, %s4710_s22  ;;  %s4723_s22 = smov 14  }
0x178d   :  { %v1874_v37 = vpop.permute.xlu1 %1873 }
0x178e   :  { %4226 = vmatprep.subr.msk.mxu1 %vm1403_vm12, %v1874_v37 }
0x178f   :  { %4227 = vmatpush3.msk.msra.mxu1 %vm1403_vm12, %v1874_v37 }
0x1790   :  { %4229 = vmatmul.mubr.msk.f32.vlgmr.msra.gmra.mrb[10].mxu1 %vm1398_vm10, %v5002_v59 }
0x1791   :  { %4238 = vmatprep.mubr.msk.f32.mxu1 %vm1398_vm10, %v4997_v55 }
0x1863   :  { %v4230_v38 = vpop.f32.mrb[10].mxu1 }
0x1864   :  { %1956 = vrot.lane.b32.xlu1 %v4230_v38, %s4720_s20  ;;  %v1943_v39 = vpop.f32.mrb[11].mxu1 }
0x1865   :  { %1954 = vrot.lane.b32.xlu0 %v1943_v39, %s4720_s20 }
0x1869   :  { %1976 = vrot.lane.b32.xlu0 %v1866_v32, %s4718_s1 }
0x18d6   :  { %v1957_v43 = vpop.permute.xlu1 %1956 }
0x18d7   :  { %v1955_v40 = vpop.permute.xlu0 %1954  ;;  %v1961_v45 = vadd.f32 %v5011_v60, %v1957_v43 }
0x18d8   :  { %v1960_v41 = vadd.f32 %v1955_v40, %v5013_v61 }
0x18d9   :  { %v3896_v44 = vmul.f32 -1.442695, %v1961_v45 }
0x18da   :  { %v3895_v42 = vmul.f32 -1.442695, %v1960_v41 }
0x18db   :  { %v1977_v53 = vpop.permute.xlu0 %1976 }
0x18dc   :  { %4536 = vpow2.f32 %v3895_v42 }
0x18dd   :  { %4538 = vtanh.f32 %v1961_v45 }
0x18e6   :  { %v4537_v46 = vpop.eup %4536 }
0x18e7   :  { %v1968_v47 = vadd.f32 1.0, %v4537_v46  ;;  %v4539_v48 = vpop.eup %4538 }
0x18e8   :  { %v1981_v49 = vrot.slane %v4539_v48, 4 }
0x18e9   :  { %4540 = vrcp.f32 %v1968_v47 }
0x18ea   :  { %4542 = vpow2.f32 %v3896_v44 }
0x18f3   :  { %v4541_v50 = vpop.eup %4540 }
0x18f4   :  { %v1983_v51 = vmul.f32 %v4541_v50, %v1981_v49  ;;  %v4543_v52 = vpop.eup %4542  ;;  %v1979_v56 = vmul.f32 %v4541_v50, %v1977_v53 }
0x18f5   :  { %v1969_v57 = vadd.f32 1.0, %v4543_v52 }
0x18f6   :  { %v1985_v54 = vrot.slane %v1983_v51, 4 }
0x18f8   :  { %v1987_v58 = vadd.f32 %v1985_v54, %v1979_v56 }
0x18fa   :  { %4544 = vtanh.f32 %v1987_v58 }
0x18fb   :  { %4546 = vrcp.f32 %v1969_v57 }
0x1904   :  { %v4545_v62 = vpop.eup %4544 }
0x1905   :  { %v1990_v63 = vrot.slane %v4545_v62, 4  ;;  %v4547_v0 = vpop.eup %4546 }
0x1907   :  { %v1992_v2 = vmul.f32 %v4547_v0, %v1990_v63 }
0x1909   :  { %1994 = vrot.lane.b32.xlu1 %v1992_v2, %s4711_s23  ;;  %s4724_s23 = smov 16  }
0x197b   :  { %v1995_v3 = vpop.permute.xlu1 %1994 }
0x197c   :  { %4231 = vmatprep.subr.msk.mxu0 %vm1403_vm12, %v1995_v3 }
0x197d   :  { %4232 = vmatpush3.msk.msra.mxu0 %vm1403_vm12, %v1995_v3 }
0x197e   :  { %4234 = vmatmul.mubr.msk.f32.vlgmr.msra.gmra.mrb[20].mxu0 %vm1398_vm10, %v5002_v59 }
0x197f   :  { %4243 = vmatprep.mubr.msk.f32.mxu0 %vm1398_vm10, %v4997_v55 }
0x1a51   :  { %v4235_v4 = vpop.f32.mrb[20].mxu0 }
0x1a52   :  { %2077 = vrot.lane.b32.xlu1 %v4235_v4, %s4721_s0  ;;  %v2064_v5 = vpop.f32.mrb[21].mxu0 }
0x1a53   :  { %2075 = vrot.lane.b32.xlu0 %v2064_v5, %s4721_s0 }
0x1a57   :  { %2097 = vrot.lane.b32.xlu0 %v1987_v58, %s4718_s1 }
0x1ac4   :  { %v2078_v10 = vpop.permute.xlu1 %2077 }
0x1ac5   :  { %v2076_v6 = vpop.permute.xlu0 %2075  ;;  %v2082_v11 = vadd.f32 %v5011_v60, %v2078_v10 }
0x1ac6   :  { %v2081_v8 = vadd.f32 %v2076_v6, %v5013_v61 }
0x1ac7   :  { %v3901_v13 = vmul.f32 -1.442695, %v2082_v11 }
0x1ac8   :  { %v3900_v9 = vmul.f32 -1.442695, %v2081_v8 }
0x1ac9   :  { %v2098_v20 = vpop.permute.xlu0 %2097 }
0x1aca   :  { %4548 = vpow2.f32 %v3900_v9 }
0x1acb   :  { %4550 = vtanh.f32 %v2082_v11 }
0x1ad4   :  { %v4549_v12 = vpop.eup %4548 }
0x1ad5   :  { %v2089_v14 = vadd.f32 1.0, %v4549_v12  ;;  %v4551_v15 = vpop.eup %4550 }
0x1ad6   :  { %v2102_v16 = vrot.slane %v4551_v15, 4 }
0x1ad7   :  { %4552 = vrcp.f32 %v2089_v14 }
0x1ad8   :  { %4554 = vpow2.f32 %v3901_v13 }
0x1ae1   :  { %v4553_v17 = vpop.eup %4552 }
0x1ae2   :  { %v2104_v18 = vmul.f32 %v4553_v17, %v2102_v16  ;;  %v4555_v19 = vpop.eup %4554  ;;  %v2100_v22 = vmul.f32 %v4553_v17, %v2098_v20 }
0x1ae3   :  { %v2090_v23 = vadd.f32 1.0, %v4555_v19 }
0x1ae4   :  { %v2106_v21 = vrot.slane %v2104_v18, 4 }
0x1ae6   :  { %v2108_v24 = vadd.f32 %v2106_v21, %v2100_v22 }
0x1ae8   :  { %4556 = vtanh.f32 %v2108_v24 }
0x1ae9   :  { %4558 = vrcp.f32 %v2090_v23 }
0x1af2   :  { %v4557_v25 = vpop.eup %4556 }
0x1af3   :  { %v2111_v26 = vrot.slane %v4557_v25, 4  ;;  %v4559_v27 = vpop.eup %4558 }
0x1af5   :  { %v2113_v28 = vmul.f32 %v4559_v27, %v2111_v26 }
0x1af7   :  { %2115 = vrot.lane.b32.xlu1 %v2113_v28, %s4712_s24  ;;  %s4725_s24 = smov 112  }
0x1b69   :  { %v2116_v29 = vpop.permute.xlu1 %2115 }
0x1b6a   :  { %4236 = vmatprep.subr.msk.mxu1 %vm1403_vm12, %v2116_v29 }
0x1b6b   :  { %4237 = vmatpush3.msk.msra.mxu1 %vm1403_vm12, %v2116_v29 }
0x1b6c   :  { %4239 = vmatmul.mubr.msk.f32.vlgmr.msra.gmra.mrb[12].mxu1 %vm1398_vm10, %v5002_v59 }
0x1b6d   :  { %4248 = vmatprep.mubr.msk.f32.mxu1 %vm1398_vm10, %v4997_v55 }
0x1c3f   :  { %v4240_v30 = vpop.f32.mrb[12].mxu1 }
0x1c40   :  { %2198 = vrot.lane.b32.xlu1 %v4240_v30, %s4722_s21  ;;  %v2185_v31 = vpop.f32.mrb[13].mxu1 }
0x1c41   :  { %2196 = vrot.lane.b32.xlu0 %v2185_v31, %s4722_s21 }
0x1c45   :  { %2218 = vrot.lane.b32.xlu0 %v2108_v24, %s4718_s1 }
0x1cb2   :  { %v2199_v35 = vpop.permute.xlu1 %2198 }
0x1cb3   :  { %v2197_v32 = vpop.permute.xlu0 %2196  ;;  %v2203_v36 = vadd.f32 %v5011_v60, %v2199_v35 }
0x1cb4   :  { %v2202_v33 = vadd.f32 %v2197_v32, %v5013_v61 }
0x1cb5   :  { %v3906_v38 = vmul.f32 -1.442695, %v2203_v36 }
0x1cb6   :  { %v3905_v34 = vmul.f32 -1.442695, %v2202_v33 }
0x1cb7   :  { %v2219_v46 = vpop.permute.xlu0 %2218 }
0x1cb8   :  { %4560 = vpow2.f32 %v3905_v34 }
0x1cb9   :  { %4562 = vtanh.f32 %v2203_v36 }
0x1cc2   :  { %v4561_v37 = vpop.eup %4560 }
0x1cc3   :  { %v2210_v39 = vadd.f32 1.0, %v4561_v37  ;;  %v4563_v40 = vpop.eup %4562 }
0x1cc4   :  { %v2223_v41 = vrot.slane %v4563_v40, 4 }
0x1cc5   :  { %4564 = vrcp.f32 %v2210_v39 }
0x1cc6   :  { %4566 = vpow2.f32 %v3906_v38 }
0x1ccf   :  { %v4565_v42 = vpop.eup %4564 }
0x1cd0   :  { %v2225_v43 = vmul.f32 %v4565_v42, %v2223_v41  ;;  %v4567_v45 = vpop.eup %4566  ;;  %v2221_v47 = vmul.f32 %v4565_v42, %v2219_v46 }
0x1cd1   :  { %v2211_v48 = vadd.f32 1.0, %v4567_v45 }
0x1cd2   :  { %v2227_v44 = vrot.slane %v2225_v43, 4 }
0x1cd4   :  { %v2229_v49 = vadd.f32 %v2227_v44, %v2221_v47 }
0x1cd6   :  { %4568 = vtanh.f32 %v2229_v49 }
0x1cd7   :  { %4570 = vrcp.f32 %v2211_v48 }
0x1ce0   :  { %v4569_v50 = vpop.eup %4568 }
0x1ce1   :  { %v2232_v51 = vrot.slane %v4569_v50, 4  ;;  %v4571_v52 = vpop.eup %4570 }
0x1ce3   :  { %v2234_v53 = vmul.f32 %v4571_v52, %v2232_v51 }
0x1ce5   :  { %2236 = vrot.lane.b32.xlu1 %v2234_v53, %s4713_s25  ;;  %s4726_s25 = smov 18  }
0x1d57   :  { %v2237_v54 = vpop.permute.xlu1 %2236 }
0x1d58   :  { %4241 = vmatprep.subr.msk.mxu0 %vm1403_vm12, %v2237_v54 }
0x1d59   :  { %4242 = vmatpush3.msk.msra.mxu0 %vm1403_vm12, %v2237_v54 }
0x1d5a   :  { %4244 = vmatmul.mubr.msk.f32.vlgmr.msra.gmra.mrb[22].mxu0 %vm1398_vm10, %v5002_v59 }
0x1d5b   :  { %4253 = vmatprep.mubr.msk.f32.mxu0 %vm1398_vm10, %v4997_v55 }
0x1e2d   :  { %v4245_v56 = vpop.f32.mrb[22].mxu0 }
0x1e2e   :  { %2319 = vrot.lane.b32.xlu1 %v4245_v56, %s4723_s22  ;;  %v2306_v57 = vpop.f32.mrb[23].mxu0 }
0x1e2f   :  { %2317 = vrot.lane.b32.xlu0 %v2306_v57, %s4723_s22 }
0x1e33   :  { %2339 = vrot.lane.b32.xlu0 %v2229_v49, %s4718_s1 }
0x1ea0   :  { %v2320_v0 = vpop.permute.xlu1 %2319 }
0x1ea1   :  { %v2318_v58 = vpop.permute.xlu0 %2317  ;;  %v2324_v2 = vadd.f32 %v5011_v60, %v2320_v0 }
0x1ea2   :  { %v2323_v62 = vadd.f32 %v2318_v58, %v5013_v61 }
0x1ea3   :  { %v3911_v4 = vmul.f32 -1.442695, %v2324_v2 }
0x1ea4   :  { %v3910_v63 = vmul.f32 -1.442695, %v2323_v62 }
0x1ea5   :  { %v2340_v12 = vpop.permute.xlu0 %2339 }
0x1ea6   :  { %4572 = vpow2.f32 %v3910_v63 }
0x1ea7   :  { %4574 = vtanh.f32 %v2324_v2 }
0x1eb0   :  { %v4573_v3 = vpop.eup %4572 }
0x1eb1   :  { %v2331_v5 = vadd.f32 1.0, %v4573_v3  ;;  %v4575_v6 = vpop.eup %4574 }
0x1eb2   :  { %v2344_v8 = vrot.slane %v4575_v6, 4 }
0x1eb3   :  { %4576 = vrcp.f32 %v2331_v5 }
0x1eb4   :  { %4578 = vpow2.f32 %v3911_v4 }
0x1ebd   :  { %v4577_v9 = vpop.eup %4576 }
0x1ebe   :  { %v2346_v10 = vmul.f32 %v4577_v9, %v2344_v8  ;;  %v4579_v11 = vpop.eup %4578  ;;  %v2342_v14 = vmul.f32 %v4577_v9, %v2340_v12 }
0x1ebf   :  { %v2332_v15 = vadd.f32 1.0, %v4579_v11 }
0x1ec0   :  { %v2348_v13 = vrot.slane %v2346_v10, 4 }
0x1ec2   :  { %v2350_v16 = vadd.f32 %v2348_v13, %v2342_v14 }
0x1ec4   :  { %4580 = vtanh.f32 %v2350_v16 }
0x1ec5   :  { %4582 = vrcp.f32 %v2332_v15 }
0x1ece   :  { %v4581_v17 = vpop.eup %4580 }
0x1ecf   :  { %v2353_v18 = vrot.slane %v4581_v17, 4  ;;  %v4583_v19 = vpop.eup %4582 }
0x1ed1   :  { %v2355_v20 = vmul.f32 %v4583_v19, %v2353_v18 }
0x1ed3   :  { %2357 = vrot.lane.b32.xlu1 %v2355_v20, %s4715_s26  ;;  %s4727_s26 = smov 110  }
0x1f45   :  { %v2358_v21 = vpop.permute.xlu1 %2357 }
0x1f46   :  { %4246 = vmatprep.subr.msk.mxu1 %vm1403_vm12, %v2358_v21 }
0x1f47   :  { %4247 = vmatpush3.msk.msra.mxu1 %vm1403_vm12, %v2358_v21 }
0x1f48   :  { %4249 = vmatmul.mubr.msk.f32.vlgmr.msra.gmra.mrb[14].mxu1 %vm1398_vm10, %v5002_v59 }
0x1f49   :  { %4258 = vmatprep.mubr.msk.f32.mxu1 %vm1398_vm10, %v4997_v55 }
0x201b   :  { %v4250_v22 = vpop.f32.mrb[14].mxu1 }
0x201c   :  { %2440 = vrot.lane.b32.xlu1 %v4250_v22, %s4724_s23  ;;  %v2427_v23 = vpop.f32.mrb[15].mxu1 }
0x201d   :  { %2438 = vrot.lane.b32.xlu0 %v2427_v23, %s4724_s23 }
0x2021   :  { %2460 = vrot.lane.b32.xlu0 %v2350_v16, %s4718_s1 }
0x208e   :  { %v2441_v27 = vpop.permute.xlu1 %2440 }
0x208f   :  { %v2439_v24 = vpop.permute.xlu0 %2438  ;;  %v2445_v28 = vadd.f32 %v5011_v60, %v2441_v27 }
0x2090   :  { %v2444_v25 = vadd.f32 %v2439_v24, %v5013_v61 }
0x2091   :  { %v3916_v30 = vmul.f32 -1.442695, %v2445_v28 }
0x2092   :  { %v3915_v26 = vmul.f32 -1.442695, %v2444_v25 }
0x2093   :  { %v2461_v37 = vpop.permute.xlu0 %2460 }
0x2094   :  { %4584 = vpow2.f32 %v3915_v26 }
0x2095   :  { %4586 = vtanh.f32 %v2445_v28 }
0x209e   :  { %v4585_v29 = vpop.eup %4584 }
0x209f   :  { %v2452_v31 = vadd.f32 1.0, %v4585_v29  ;;  %v4587_v32 = vpop.eup %4586 }
0x20a0   :  { %v2465_v33 = vrot.slane %v4587_v32, 4 }
0x20a1   :  { %4588 = vrcp.f32 %v2452_v31 }
0x20a2   :  { %4590 = vpow2.f32 %v3916_v30 }
0x20ab   :  { %v4589_v34 = vpop.eup %4588 }
0x20ac   :  { %v2467_v35 = vmul.f32 %v4589_v34, %v2465_v33  ;;  %v4591_v36 = vpop.eup %4590  ;;  %v2463_v39 = vmul.f32 %v4589_v34, %v2461_v37 }
0x20ad   :  { %v2453_v40 = vadd.f32 1.0, %v4591_v36 }
0x20ae   :  { %v2469_v38 = vrot.slane %v2467_v35, 4 }
0x20b0   :  { %v2471_v41 = vadd.f32 %v2469_v38, %v2463_v39 }
0x20b2   :  { %4592 = vtanh.f32 %v2471_v41 }
0x20b3   :  { %4594 = vrcp.f32 %v2453_v40 }
0x20bc   :  { %v4593_v42 = vpop.eup %4592 }
0x20bd   :  { %v2474_v43 = vrot.slane %v4593_v42, 4  ;;  %v4595_v45 = vpop.eup %4594 }
0x20bf   :  { %v2476_v46 = vmul.f32 %v4595_v45, %v2474_v43 }
0x20c1   :  { %2478 = vrot.lane.b32.xlu1 %v2476_v46, %s4725_s24 }
0x2133   :  { %v2479_v44 = vpop.permute.xlu1 %2478 }
0x2134   :  { %4251 = vmatprep.subr.msk.mxu0 %vm1403_vm12, %v2479_v44 }
0x2135   :  { %4252 = vmatpush3.msk.msra.mxu0 %vm1403_vm12, %v2479_v44 }
0x2136   :  { %4254 = vmatmul.mubr.msk.f32.vlgmr.msra.gmra.mrb[24].mxu0 %vm1398_vm10, %v5002_v59 }
0x2137   :  { %4263 = vmatprep.mubr.msk.f32.mxu0 %vm1398_vm10, %v4997_v55 }
0x2209   :  { %v4255_v47 = vpop.f32.mrb[24].mxu0 }
0x220a   :  { %2561 = vrot.lane.b32.xlu1 %v4255_v47, %s4726_s25  ;;  %v2548_v48 = vpop.f32.mrb[25].mxu0 }
0x220b   :  { %2559 = vrot.lane.b32.xlu0 %v2548_v48, %s4726_s25 }
0x220f   :  { %2581 = vrot.lane.b32.xlu0 %v2471_v41, %s4718_s1 }
0x227c   :  { %v2562_v52 = vpop.permute.xlu1 %2561 }
0x227d   :  { %v2560_v49 = vpop.permute.xlu0 %2559  ;;  %v2566_v53 = vadd.f32 %v5011_v60, %v2562_v52 }
0x227e   :  { %v2565_v50 = vadd.f32 %v2560_v49, %v5013_v61 }
0x227f   :  { %v3921_v56 = vmul.f32 -1.442695, %v2566_v53 }
0x2280   :  { %v3920_v51 = vmul.f32 -1.442695, %v2565_v50 }
0x2281   :  { %v2582_v3 = vpop.permute.xlu0 %2581 }
0x2282   :  { %4596 = vpow2.f32 %v3920_v51 }
0x2283   :  { %4598 = vtanh.f32 %v2566_v53 }
0x228c   :  { %v4597_v54 = vpop.eup %4596 }
0x228d   :  { %v2573_v57 = vadd.f32 1.0, %v4597_v54  ;;  %v4599_v58 = vpop.eup %4598 }
0x228e   :  { %v2586_v62 = vrot.slane %v4599_v58, 4 }
0x228f   :  { %4600 = vrcp.f32 %v2573_v57 }
0x2290   :  { %4602 = vpow2.f32 %v3921_v56 }
0x2299   :  { %v4601_v63 = vpop.eup %4600 }
0x229a   :  { %v2588_v0 = vmul.f32 %v4601_v63, %v2586_v62  ;;  %v4603_v2 = vpop.eup %4602  ;;  %v2584_v5 = vmul.f32 %v4601_v63, %v2582_v3 }
0x229b   :  { %v2574_v6 = vadd.f32 1.0, %v4603_v2 }
0x229c   :  { %v2590_v4 = vrot.slane %v2588_v0, 4 }
0x229e   :  { %v2592_v8 = vadd.f32 %v2590_v4, %v2584_v5 }
0x22a0   :  { %4604 = vtanh.f32 %v2592_v8 }
0x22a1   :  { %4606 = vrcp.f32 %v2574_v6 }
0x22aa   :  { %v4605_v9 = vpop.eup %4604 }
0x22ab   :  { %v2595_v10 = vrot.slane %v4605_v9, 4  ;;  %v4607_v11 = vpop.eup %4606 }
0x22ad   :  { %v2597_v12 = vmul.f32 %v4607_v11, %v2595_v10 }
0x22af   :  { %2599 = vrot.lane.b32.xlu1 %v2597_v12, %s4727_s26 }
0x2321   :  { %v2600_v13 = vpop.permute.xlu1 %2599 }
0x2322   :  { %4256 = vmatprep.subr.msk.mxu1 %vm1403_vm12, %v2600_v13 }
0x2323   :  { %4257 = vmatpush3.msk.msra.mxu1 %vm1403_vm12, %v2600_v13 }
0x2324   :  { %4259 = vmatmul.mubr.msk.f32.vlgmr.msra.gmra.mrb[16].mxu1 %vm1398_vm10, %v5002_v59 }
0x2325   :  { %4268 = vmatprep.mubr.msk.f32.mxu1 %vm1398_vm10, %v4997_v55 }
0x23f7   :  { %v4260_v14 = vpop.f32.mrb[16].mxu1 }
0x23f8   :  { %2682 = vrot.lane.b32.xlu1 %v4260_v14, %s4728_s13  ;;  %v2669_v15 = vpop.f32.mrb[17].mxu1 }
0x23f9   :  { %2680 = vrot.lane.b32.xlu0 %v2669_v15, %s4728_s13 }
0x23fd   :  { %2702 = vrot.lane.b32.xlu0 %v2592_v8, %s4718_s1 }
0x246a   :  { %v2683_v19 = vpop.permute.xlu1 %2682 }
0x246b   :  { %v2681_v16 = vpop.permute.xlu0 %2680  ;;  %v2687_v20 = vadd.f32 %v5011_v60, %v2683_v19 }
0x246c   :  { %v2686_v17 = vadd.f32 %v2681_v16, %v5013_v61 }
0x246d   :  { %v3926_v22 = vmul.f32 -1.442695, %v2687_v20 }
0x246e   :  { %v3925_v18 = vmul.f32 -1.442695, %v2686_v17 }
0x246f   :  { %v2703_v29 = vpop.permute.xlu0 %2702 }
0x2470   :  { %4608 = vpow2.f32 %v3925_v18 }
0x2471   :  { %4610 = vtanh.f32 %v2687_v20 }
0x247a   :  { %v4609_v21 = vpop.eup %4608 }
0x247b   :  { %v2694_v23 = vadd.f32 1.0, %v4609_v21  ;;  %v4611_v24 = vpop.eup %4610 }
0x247c   :  { %v2707_v25 = vrot.slane %v4611_v24, 4 }
0x247d   :  { %4612 = vrcp.f32 %v2694_v23 }
0x247e   :  { %4614 = vpow2.f32 %v3926_v22 }
0x2487   :  { %v4613_v26 = vpop.eup %4612 }
0x2488   :  { %v2709_v27 = vmul.f32 %v4613_v26, %v2707_v25  ;;  %v4615_v28 = vpop.eup %4614  ;;  %v2705_v31 = vmul.f32 %v4613_v26, %v2703_v29 }
0x2489   :  { %v2695_v32 = vadd.f32 1.0, %v4615_v28 }
0x248a   :  { %v2711_v30 = vrot.slane %v2709_v27, 4 }
0x248c   :  { %v2713_v33 = vadd.f32 %v2711_v30, %v2705_v31 }
0x248e   :  { %4616 = vtanh.f32 %v2713_v33 }
0x248f   :  { %4618 = vrcp.f32 %v2695_v32 }
0x2498   :  { %v4617_v34 = vpop.eup %4616 }
0x2499   :  { %v2716_v35 = vrot.slane %v4617_v34, 4  ;;  %v4619_v36 = vpop.eup %4618 }
0x249b   :  { %v2718_v37 = vmul.f32 %v4619_v36, %v2716_v35 }
0x249d   :  { %2720 = vrot.lane.b32.xlu1 %v2718_v37, %s4729_s14 }
0x250f   :  { %v2721_v38 = vpop.permute.xlu1 %2720 }
0x2510   :  { %4261 = vmatprep.subr.msk.mxu0 %vm1403_vm12, %v2721_v38 }
0x2511   :  { %4262 = vmatpush3.msk.msra.mxu0 %vm1403_vm12, %v2721_v38 }
0x2512   :  { %4264 = vmatmul.mubr.msk.f32.vlgmr.msra.gmra.mrb[26].mxu0 %vm1398_vm10, %v5002_v59 }
0x2513   :  { %4273 = vmatprep.mubr.msk.f32.mxu0 %vm1398_vm10, %v4997_v55 }
0x25e5   :  { %v4265_v39 = vpop.f32.mrb[26].mxu0 }
0x25e6   :  { %2803 = vrot.lane.b32.xlu1 %v4265_v39, %s4730_s15  ;;  %v2790_v40 = vpop.f32.mrb[27].mxu0 }
0x25e7   :  { %2801 = vrot.lane.b32.xlu0 %v2790_v40, %s4730_s15 }
0x25eb   :  { %2823 = vrot.lane.b32.xlu0 %v2713_v33, %s4718_s1 }
0x2658   :  { %v2804_v45 = vpop.permute.xlu1 %2803 }
0x2659   :  { %v2802_v41 = vpop.permute.xlu0 %2801  ;;  %v2808_v46 = vadd.f32 %v5011_v60, %v2804_v45 }
0x265a   :  { %v2807_v42 = vadd.f32 %v2802_v41, %v5013_v61 }
0x265b   :  { %v3931_v47 = vmul.f32 -1.442695, %v2808_v46 }
0x265c   :  { %v3930_v43 = vmul.f32 -1.442695, %v2807_v42 }
0x265d   :  { %v2824_v54 = vpop.permute.xlu0 %2823 }
0x265e   :  { %4620 = vpow2.f32 %v3930_v43 }
0x265f   :  { %4622 = vtanh.f32 %v2808_v46 }
0x2668   :  { %v4621_v44 = vpop.eup %4620 }
0x2669   :  { %v2815_v48 = vadd.f32 1.0, %v4621_v44  ;;  %v4623_v49 = vpop.eup %4622 }
0x266a   :  { %v2828_v50 = vrot.slane %v4623_v49, 4 }
0x266b   :  { %4624 = vrcp.f32 %v2815_v48 }
0x266c   :  { %4626 = vpow2.f32 %v3931_v47 }
0x2675   :  { %v4625_v51 = vpop.eup %4624 }
0x2676   :  { %v2830_v52 = vmul.f32 %v4625_v51, %v2828_v50  ;;  %v4627_v53 = vpop.eup %4626  ;;  %v2826_v57 = vmul.f32 %v4625_v51, %v2824_v54 }
0x2677   :  { %v2816_v58 = vadd.f32 1.0, %v4627_v53 }
0x2678   :  { %v2832_v56 = vrot.slane %v2830_v52, 4 }
0x267a   :  { %v2834_v62 = vadd.f32 %v2832_v56, %v2826_v57 }
0x267c   :  { %4628 = vtanh.f32 %v2834_v62 }
0x267d   :  { %4630 = vrcp.f32 %v2816_v58 }
0x2686   :  { %v4629_v63 = vpop.eup %4628 }
0x2687   :  { %v2837_v0 = vrot.slane %v4629_v63, 4  ;;  %v4631_v2 = vpop.eup %4630 }
0x2689   :  { %v2839_v3 = vmul.f32 %v4631_v2, %v2837_v0 }
0x268b   :  { %2841 = vrot.lane.b32.xlu1 %v2839_v3, %s4731_s16 }
0x26fd   :  { %v2842_v4 = vpop.permute.xlu1 %2841 }
0x26fe   :  { %4266 = vmatprep.subr.msk.mxu1 %vm1403_vm12, %v2842_v4 }
0x26ff   :  { %4267 = vmatpush3.msk.msra.mxu1 %vm1403_vm12, %v2842_v4 }
0x2700   :  { %4269 = vmatmul.mubr.msk.f32.vlgmr.msra.gmra.mrb[18].mxu1 %vm1398_vm10, %v5002_v59 }
0x2701   :  { %4278 = vmatprep.mubr.msk.f32.mxu1 %vm1398_vm10, %v4997_v55 }
0x27d3   :  { %v4270_v5 = vpop.f32.mrb[18].mxu1 }
0x27d4   :  { %2924 = vrot.lane.b32.xlu1 %v4270_v5, %s4732_s17  ;;  %v2911_v6 = vpop.f32.mrb[19].mxu1 }
0x27d5   :  { %2922 = vrot.lane.b32.xlu0 %v2911_v6, %s4732_s17 }
0x27d9   :  { %2944 = vrot.lane.b32.xlu0 %v2834_v62, %s4718_s1 }
0x2846   :  { %v2925_v11 = vpop.permute.xlu1 %2924 }
0x2847   :  { %v2923_v8 = vpop.permute.xlu0 %2922  ;;  %v2929_v12 = vadd.f32 %v5011_v60, %v2925_v11 }
0x2848   :  { %v2928_v9 = vadd.f32 %v2923_v8, %v5013_v61 }
0x2849   :  { %v3936_v14 = vmul.f32 -1.442695, %v2929_v12 }
0x284a   :  { %v3935_v10 = vmul.f32 -1.442695, %v2928_v9 }
0x284b   :  { %v2945_v21 = vpop.permute.xlu0 %2944 }
0x284c   :  { %4632 = vpow2.f32 %v3935_v10 }
0x284d   :  { %4634 = vtanh.f32 %v2929_v12 }
0x2856   :  { %v4633_v13 = vpop.eup %4632 }
0x2857   :  { %v2936_v15 = vadd.f32 1.0, %v4633_v13  ;;  %v4635_v16 = vpop.eup %4634 }
0x2858   :  { %v2949_v17 = vrot.slane %v4635_v16, 4 }
0x2859   :  { %4636 = vrcp.f32 %v2936_v15 }
0x285a   :  { %4638 = vpow2.f32 %v3936_v14 }
0x2863   :  { %v4637_v18 = vpop.eup %4636 }
0x2864   :  { %v2951_v19 = vmul.f32 %v4637_v18, %v2949_v17  ;;  %v4639_v20 = vpop.eup %4638  ;;  %v2947_v23 = vmul.f32 %v4637_v18, %v2945_v21 }
0x2865   :  { %v2937_v24 = vadd.f32 1.0, %v4639_v20 }
0x2866   :  { %v2953_v22 = vrot.slane %v2951_v19, 4 }
0x2868   :  { %v2955_v25 = vadd.f32 %v2953_v22, %v2947_v23 }
0x286a   :  { %4640 = vtanh.f32 %v2955_v25 }
0x286b   :  { %4642 = vrcp.f32 %v2937_v24 }
0x2874   :  { %v4641_v26 = vpop.eup %4640 }
0x2875   :  { %v2958_v27 = vrot.slane %v4641_v26, 4  ;;  %v4643_v28 = vpop.eup %4642 }
0x2877   :  { %v2960_v29 = vmul.f32 %v4643_v28, %v2958_v27 }
0x2879   :  { %2962 = vrot.lane.b32.xlu1 %v2960_v29, %s4733_s18 }
0x28eb   :  { %v2963_v30 = vpop.permute.xlu1 %2962 }
0x28ec   :  { %4271 = vmatprep.subr.msk.mxu0 %vm1403_vm12, %v2963_v30 }
0x28ed   :  { %4272 = vmatpush3.msk.msra.mxu0 %vm1403_vm12, %v2963_v30 }
0x28ee   :  { %4274 = vmatmul.mubr.msk.f32.vlgmr.msra.gmra.mrb[28].mxu0 %vm1398_vm10, %v5002_v59 }
0x28ef   :  { %4283 = vmatprep.mubr.msk.f32.mxu0 %vm1398_vm10, %v4997_v55 }
0x29c1   :  { %v4275_v31 = vpop.f32.mrb[28].mxu0 }
0x29c2   :  { %3045 = vrot.lane.b32.xlu1 %v4275_v31, %s4734_s19  ;;  %v3032_v32 = vpop.f32.mrb[29].mxu0 }
0x29c3   :  { %3043 = vrot.lane.b32.xlu0 %v3032_v32, %s4734_s19 }
0x29c7   :  { %3065 = vrot.lane.b32.xlu0 %v2955_v25, %s4718_s1 }
0x2a34   :  { %v3046_v36 = vpop.permute.xlu1 %3045 }
0x2a35   :  { %v3044_v33 = vpop.permute.xlu0 %3043  ;;  %v3050_v37 = vadd.f32 %v5011_v60, %v3046_v36 }
0x2a36   :  { %v3049_v34 = vadd.f32 %v3044_v33, %v5013_v61 }
0x2a37   :  { %v3941_v39 = vmul.f32 -1.442695, %v3050_v37 }
0x2a38   :  { %v3940_v35 = vmul.f32 -1.442695, %v3049_v34 }
0x2a39   :  { %v3066_v46 = vpop.permute.xlu0 %3065 }
0x2a3a   :  { %4644 = vpow2.f32 %v3940_v35 }
0x2a3b   :  { %4646 = vtanh.f32 %v3050_v37 }
0x2a44   :  { %v4645_v38 = vpop.eup %4644 }
0x2a45   :  { %v3057_v40 = vadd.f32 1.0, %v4645_v38  ;;  %v4647_v55 = vpop.eup %4646 }
0x2a46   :  { %v3070_v41 = vrot.slane %v4647_v55, 4 }
0x2a47   :  { %4648 = vrcp.f32 %v3057_v40 }
0x2a48   :  { %4650 = vpow2.f32 %v3941_v39 }
0x2a51   :  { %v4649_v42 = vpop.eup %4648 }
0x2a52   :  { %v3072_v43 = vmul.f32 %v4649_v42, %v3070_v41  ;;  %v4651_v45 = vpop.eup %4650  ;;  %v3068_v47 = vmul.f32 %v4649_v42, %v3066_v46  ;;  %v3324_v42 = vld [vmem:[%s5346_s3] sm:$0xff]  ;;  %v3326_v46 = vld [vmem:[%s5346_s3 + $0x10] sm:$0xff] }
0x2a53   :  { %v3058_v48 = vadd.f32 1.0, %v4651_v45  ;;  %v4740_v45 = vmov 4  }
0x2a54   :  { %v3074_v44 = vrot.slane %v3072_v43, 4  ;;  %v3325_v43 = vld [vmem:[%s5346_s3 + $0x8] sm:$0xff]  ;;  %4487 = vset.pattern.permute.xlu1 %v4740_v45  ;;  %4486 = vset.pattern.permute.xlu0 %v4740_v45 }
0x2a56   :  { %v3076_v49 = vadd.f32 %v3074_v44, %v3068_v47  ;;  %v3327_v44 = vld [vmem:[%s5346_s3 + $0x18] sm:$0xff]  ;;  %v3328_v47 = vld [vmem:[%s5346_s3 + $0x20] sm:$0xff] }
0x2a58   :  { %4652 = vtanh.f32 %v3076_v49 }
0x2a59   :  { %4654 = vrcp.f32 %v3058_v48  ;;  %v3329_v48 = vld [vmem:[%s5346_s3 + $0x28] sm:$0xff] }
0x2a62   :  { %v4653_v50 = vpop.eup %4652 }
0x2a63   :  { %v3079_v51 = vrot.slane %v4653_v50, 4  ;;  %v4655_v52 = vpop.eup %4654  ;;  %v3331_v50 = vld [vmem:[%s5346_s3 + $0x38] sm:$0xff] }
0x2a65   :  { %v3081_v53 = vmul.f32 %v4655_v52, %v3079_v51  ;;  %v3332_v51 = vld [vmem:[%s5346_s3 + $0x40] sm:$0xff]  ;;  %v3333_v52 = vld [vmem:[%s5346_s3 + $0x48] sm:$0xff] }
0x2a67   :  { %3083 = vrot.lane.b32.xlu1 %v3081_v53, %s4735_s27  ;;  %v3334_v53 = vld [vmem:[%s5346_s3 + $0x50] sm:$0xff] }
0x2ad9   :  { %v3084_v54 = vpop.permute.xlu1 %3083 }
0x2ada   :  { %4276 = vmatprep.subr.msk.mxu1 %vm1403_vm12, %v3084_v54 }
0x2adb   :  { %4277 = vmatpush3.msk.msra.mxu1 %vm1403_vm12, %v3084_v54  ;;  %v3335_v54 = vld [vmem:[%s5346_s3 + $0x58] sm:$0xff] }
0x2adc   :  { %4279 = vmatmul.mubr.msk.f32.vlgmr.msra.gmra.mrb[20].mxu1 %vm1398_vm10, %v5002_v59  ;;  %4286 = vmatprep.subr.mxu1 %v4705_v1 }
0x2add   :  { %4288 = vmatprep.mubr.msk.f32.mxu1 %vm4714_vm4, %v4705_v1 }
0x2baf   :  { %v4280_v56 = vpop.f32.mrb[20].mxu1 }
0x2bb0   :  { %3166 = vrot.lane.b32.xlu1 %v4280_v56, %s4736_s28  ;;  %v3153_v57 = vpop.f32.mrb[21].mxu1  ;;  %v3336_v56 = vld [vmem:[%s5346_s3 + $0x60] sm:$0xff] }
0x2bb1   :  { %3164 = vrot.lane.b32.xlu0 %v3153_v57, %s4736_s28  ;;  %v3337_v57 = vld [vmem:[%s5346_s3 + $0x68] sm:$0xff] }
0x2bb5   :  { %3186 = vrot.lane.b32.xlu0 %v3076_v49, %s4718_s1  ;;  %v3330_v49 = vld [vmem:[%s5346_s3 + $0x30] sm:$0xff] }
0x2c22   :  { %v3167_v0 = vpop.permute.xlu1 %3166 }
0x2c23   :  { %v3165_v58 = vpop.permute.xlu0 %3164  ;;  %v3171_v2 = vadd.f32 %v5011_v60, %v3167_v0  ;;  %v3341_v0 = vld [vmem:[%s5346_s3 + $0x88] sm:$0xff] }
0x2c24   :  { %v3170_v62 = vadd.f32 %v3165_v58, %v5013_v61  ;;  %v3338_v58 = vld [vmem:[%s5346_s3 + $0x70] sm:$0xff] }
0x2c25   :  { %v3946_v4 = vmul.f32 -1.442695, %v3171_v2 }
0x2c26   :  { %v3945_v63 = vmul.f32 -1.442695, %v3170_v62  ;;  %v3339_v62 = vld [vmem:[%s5346_s3 + $0x78] sm:$0xff] }
0x2c27   :  { %v3187_v12 = vpop.permute.xlu0 %3186 }
0x2c28   :  { %4656 = vpow2.f32 %v3945_v63  ;;  %v3340_v63 = vld [vmem:[%s5346_s3 + $0x80] sm:$0xff] }
0x2c29   :  { %4658 = vtanh.f32 %v3171_v2  ;;  %v3342_v2 = vld [vmem:[%s5346_s3 + $0x90] sm:$0xff] }
0x2c32   :  { %v4657_v3 = vpop.eup %4656 }
0x2c33   :  { %v3178_v5 = vadd.f32 1.0, %v4657_v3  ;;  %v4659_v6 = vpop.eup %4658  ;;  %v3343_v3 = vld [vmem:[%s5346_s3 + $0x98] sm:$0xff] }
0x2c34   :  { %v3191_v8 = vrot.slane %v4659_v6, 4 }
0x2c35   :  { %4660 = vrcp.f32 %v3178_v5  ;;  %v3345_v5 = vld [vmem:[%s5346_s3 + $0xa8] sm:$0xff] }
0x2c36   :  { %4662 = vpow2.f32 %v3946_v4  ;;  %v3344_v4 = vld [vmem:[%s5346_s3 + $0xa0] sm:$0xff] }
0x2c3f   :  { %v4661_v9 = vpop.eup %4660 }
0x2c40   :  { %v3193_v10 = vmul.f32 %v4661_v9, %v3191_v8  ;;  %v4663_v11 = vpop.eup %4662  ;;  %v3189_v14 = vmul.f32 %v4661_v9, %v3187_v12  ;;  %v3346_v8 = vld [vmem:[%s5346_s3 + $0xb0] sm:$0xff]  ;;  %v3347_v9 = vld [vmem:[%s5346_s3 + $0xb8] sm:$0xff] }
0x2c41   :  { %v3179_v15 = vadd.f32 1.0, %v4663_v11  ;;  %v3746_v11 = vlaneseq }
0x2c42   :  { %v3195_v13 = vrot.slane %v3193_v10, 4  ;;  %v3348_v10 = vld [vmem:[%s5346_s3 + $0xc0] sm:$0x1] }
0x2c43   :  { %v3747_v12 = vshrl.u32 %v3746_v11, 7 }
0x2c44   :  { %v3197_v16 = vadd.f32 %v3195_v13, %v3189_v14  ;;  %v3744_v14 = vld [vmem:[%s5347_s4] sm:$0x3]  ;;  %s4741_s4 = smov [#allocation4]  }
0x2c45   :  { %v3752_v13 = vsub.s32 1, %v3747_v12  ;;  %s3839_s27 = sshll.u32 %s4741_s4, 4  ;;  %s3840_s27 = int_to_ptr.vmem [resolvable:$true] %s3839_s27 }
0x2c46   :  { %4664 = vtanh.f32 %v3197_v16  ;;  %s4680_s28 = scalar_lea.vmem %s3840_s27, 16  ;;  %p4685_p1 = scmp.lt.s32.totalorder %s3840_s27, %s3840_s27 }
0x2c47   :  { %4666 = vrcp.f32 %v3179_v15  ;;  %v3748_v15 = vsub.s32 0, %v3747_v12  ;;  %p4681_p0 = scmp.ne.s32.totalorder %s3840_s27, %s4680_s28 }
0x2c50   :  { %v4665_v17 = vpop.eup %4664 }
0x2c51   :  { %v3200_v18 = vrot.slane %v4665_v17, 4  ;;  %v4667_v19 = vpop.eup %4666  ;;  %v5315_v17 = vrot.slane %v3744_v14, %v3748_v15 }
0x2c53   :  { %v3202_v20 = vmul.f32 %v4667_v19, %v3200_v18 }
0x2c55   :  { %3204 = vrot.lane.b32.xlu1 %v3202_v20, %s4737_s29  ;;  %s4684_s29 = scalar_lea.vmem %s3840_s27, 32 }
0x2c56   :  { %p4686_p2 = scmp.lt.s32.totalorder %s4684_s29, %s4680_s28 }
0x2c58   :  { %p4687_p3 = por %p4686_p2, %p4685_p1 }
0x2c5a   :  { %p4688_p4 = pnand %p4687_p3, %p4681_p0 }
0x2cc7   :  { %v3205_v21 = vpop.permute.xlu1 %3204 }
0x2cc8   :  { %4281 = vmatprep.subr.msk.mxu0 %vm1403_vm12, %v3205_v21 }
0x2cc9   :  { %4282 = vmatpush3.msk.msra.mxu0 %vm1403_vm12, %v3205_v21 }
0x2cca   :  { %4284 = vmatmul.mubr.msk.f32.vlgmr.msra.gmra.mrb[30].mxu0 %vm1398_vm10, %v5002_v59  ;;  %4407 = vmatprep.subr.bf16.mxu0 %v4709_v7 }
0x2d9d   :  { %v4285_v22 = vpop.f32.mrb[30].mxu0 }
0x2d9e   :  { %3287 = vrot.lane.b32.xlu1 %v4285_v22, %s4738_s30  ;;  %v3274_v23 = vpop.f32.mrb[31].mxu0 }
0x2d9f   :  { %3285 = vrot.lane.b32.xlu0 %v3274_v23, %s4738_s30 }
0x2da3   :  { %3307 = vrot.lane.b32.xlu0 %v3197_v16, %s4718_s1  ;;  %v3753_v16 = vrot.slane %v3744_v14, %v3752_v13 }
0x2da5   :  { %3979 = vmatprep.mubr.msk.f32.mxu0 %vm3755_vm13, %v3753_v16 }
0x2da7   :  { %3351 = vperm.xlu0 %4486, %v3324_v42  }
0x2dab   :  { %3366 = vperm.xlu0 %4486, %v3327_v44  }
0x2daf   :  { %3376 = vperm.xlu0 %4486, %v3329_v48  }
0x2db3   :  { %3386 = vperm.xlu0 %4486, %v3331_v50  }
0x2db7   :  { %3396 = vperm.xlu0 %4486, %v3333_v52  }
0x2dbb   :  { %3406 = vperm.xlu0 %4486, %v3335_v54  }
0x2dbf   :  { %3416 = vperm.xlu0 %4486, %v3337_v57  }
0x2dc3   :  { %3426 = vperm.xlu0 %4486, %v3339_v62  }
0x2dc7   :  { %3436 = vperm.xlu0 %4486, %v3341_v0  }
0x2dcb   :  { %3446 = vperm.xlu0 %4486, %v3343_v3  }
0x2dcf   :  { %3456 = vperm.xlu0 %4486, %v3345_v5  }
0x2dd3   :  { %3466 = vperm.xlu0 %4486, %v3347_v9  }
0x2e10   :  { %v3288_v27 = vpop.permute.xlu1 %3287 }
0x2e11   :  { %v3286_v24 = vpop.permute.xlu0 %3285  ;;  %v3292_v28 = vadd.f32 %v5011_v60, %v3288_v27 }
0x2e12   :  { %v3291_v25 = vadd.f32 %v3286_v24, %v5013_v61 }
0x2e13   :  { %v3951_v59 = vmul.f32 -1.442695, %v3292_v28 }
0x2e14   :  { %v3950_v26 = vmul.f32 -1.442695, %v3291_v25 }
0x2e15   :  { %v3308_v36 = vpop.permute.xlu0 %3307 }
0x2e16   :  { %4668 = vpow2.f32 %v3950_v26 }
0x2e17   :  { %4670 = vtanh.f32 %v3292_v28 }
0x2e20   :  { %v4669_v29 = vpop.eup %4668 }
0x2e21   :  { %v3299_v30 = vadd.f32 1.0, %v4669_v29  ;;  %v4671_v31 = vpop.eup %4670 }
0x2e22   :  { %v3312_v32 = vrot.slane %v4671_v31, 4 }
0x2e23   :  { %4672 = vrcp.f32 %v3299_v30 }
0x2e24   :  { %4674 = vpow2.f32 %v3951_v59 }
0x2e26   :  { %v3352_v19 = vpop.permute.xlu0 %3351 }
0x2e2d   :  { %v4673_v33 = vpop.eup %4672 }
0x2e2e   :  { %v3314_v34 = vmul.f32 %v4673_v33, %v3312_v32  ;;  %v4675_v35 = vpop.eup %4674  ;;  %v3310_v38 = vmul.f32 %v4673_v33, %v3308_v36  ;;  %v3367_v32 = vpop.permute.xlu0 %3366 }
0x2e2f   :  { %v3300_v61 = vadd.f32 1.0, %v4675_v35 }
0x2e30   :  { %v3316_v37 = vrot.slane %v3314_v34, 4 }
0x2e32   :  { %v3318_v39 = vadd.f32 %v3316_v37, %v3310_v38 }
0x2e34   :  { %4676 = vtanh.f32 %v3318_v39 }
0x2e35   :  { %4678 = vrcp.f32 %v3300_v61 }
0x2e3e   :  { %v4677_v40 = vpop.eup %4676 }
0x2e3f   :  { %v3321_v60 = vrot.slane %v4677_v40, 4  ;;  %v4679_v55 = vpop.eup %4678 }
0x2e41   :  { %v3323_v41 = vmul.f32 %v4679_v55, %v3321_v60  ;;  %v3377_v55 = vpop.permute.xlu0 %3376 }
0x2e43   :  { %3475 = vrot.lane.b32.xlu1 %v3323_v41, %s4739_s6 }
0x2e47   :  { %3356 = vperm.xlu1 %4487, %v3325_v43  }
0x2e4b   :  { %3361 = vperm.xlu1 %4487, %v3326_v46  }
0x2e4f   :  { %3371 = vperm.xlu1 %4487, %v3328_v47  }
0x2e53   :  { %3381 = vperm.xlu1 %4487, %v3330_v49  }
0x2e57   :  { %3391 = vperm.xlu1 %4487, %v3332_v51  }
0x2e5b   :  { %3401 = vperm.xlu1 %4487, %v3334_v53  }
0x2e5f   :  { %3411 = vperm.xlu1 %4487, %v3336_v56  }
0x2e63   :  { %3421 = vperm.xlu1 %4487, %v3338_v58  }
0x2e67   :  { %3431 = vperm.xlu1 %4487, %v3340_v63  }
0x2e6b   :  { %3441 = vperm.xlu1 %4487, %v3342_v2  }
0x2e6f   :  { %3451 = vperm.xlu1 %4487, %v3344_v4  }
0x2e73   :  { %3461 = vperm.xlu1 %4487, %v3346_v8  }
0x2e77   :  { %3471 = vperm.xlu1 %4487, %v3348_v10  }
0x2eb5   :  { %v3476_v6 = vpop.permute.xlu1 %3475 }
0x2eb6   :  { %4287 = vmatpush3.msk.msra.mxu1 %vm1403_vm12, %v3476_v6 }
0x2eb7   :  { %4289 = vmatmul.mubr.msk.f32.vlgmr.msra.gmra.mrb[22].mxu1 %vm1398_vm10, %v3324_v42 }
0x2eb8   :  { %4291 = vmatprep.mubr.msk.f32.mxu1 %vm4714_vm4, %v4705_v1 }
0x2ebb   :  { %4292 = vmatmul.mubr.msk.f32.gmra.mrb[24].mxu1 %vm1398_vm10, %v3325_v43 }
0x2ebc   :  { %4294 = vmatprep.mubr.msk.f32.mxu1 %vm4714_vm4, %v4705_v1 }
0x2ebf   :  { %4295 = vmatmul.mubr.msk.f32.gmra.mrb[26].mxu1 %vm1398_vm10, %v3326_v46 }
0x2ec0   :  { %4297 = vmatprep.mubr.msk.f32.mxu1 %vm4714_vm4, %v4705_v1 }
0x2ec3   :  { %4298 = vmatmul.mubr.msk.f32.gmra.mrb[28].mxu1 %vm1398_vm10, %v3327_v44 }
0x2ec4   :  { %4300 = vmatprep.mubr.msk.f32.mxu1 %vm4714_vm4, %v4705_v1 }
0x2ec6   :  { %v3357_v22 = vpop.permute.xlu1 %3356 }
0x2ec7   :  { %4301 = vmatmul.mubr.msk.f32.gmra.mrb[30].mxu1 %vm1398_vm10, %v3328_v47 }
0x2ec8   :  { %4303 = vmatprep.mubr.msk.f32.mxu1 %vm4714_vm4, %v4705_v1 }
0x2eca   :  { %v3362_v30 = vpop.permute.xlu1 %3361 }
0x2ecb   :  { %4304 = vmatmul.mubr.msk.f32.gmra.mrb[32].mxu1 %vm1398_vm10, %v3329_v48 }
0x2ecc   :  { %4306 = vmatprep.mubr.msk.f32.mxu1 %vm4714_vm4, %v4705_v1 }
0x2ece   :  { %v3372_v40 = vpop.permute.xlu1 %3371 }
0x2ecf   :  { %4307 = vmatmul.mubr.msk.f32.gmra.mrb[34].mxu1 %vm1398_vm10, %v3330_v49 }
0x2ed0   :  { %4309 = vmatprep.mubr.msk.f32.mxu1 %vm4714_vm4, %v4705_v1 }
0x2ed2   :  { %v3382_v49 = vpop.permute.xlu1 %3381 }
0x2ed3   :  { %4310 = vmatmul.mubr.msk.f32.gmra.mrb[36].mxu1 %vm1398_vm10, %v3331_v50 }
0x2ed4   :  { %4312 = vmatprep.mubr.msk.f32.mxu1 %vm4714_vm4, %v4705_v1 }
0x2ed7   :  { %4313 = vmatmul.mubr.msk.f32.gmra.mrb[38].mxu1 %vm1398_vm10, %v3332_v51  ;;  %v3387_v51 = vpop.permute.xlu0 %3386 }
0x2ed8   :  { %4315 = vmatprep.mubr.msk.f32.mxu1 %vm4714_vm4, %v4705_v1 }
0x2edb   :  { %4316 = vmatmul.mubr.msk.f32.gmra.mrb[40].mxu1 %vm1398_vm10, %v3333_v52 }
0x2edc   :  { %4318 = vmatprep.mubr.msk.f32.mxu1 %vm4714_vm4, %v4705_v1 }
0x2edf   :  { %4319 = vmatmul.mubr.msk.f32.gmra.mrb[42].mxu1 %vm1398_vm10, %v3334_v53 }
0x2ee0   :  { %4321 = vmatprep.mubr.msk.f32.mxu1 %vm4714_vm4, %v4705_v1 }
0x2ee3   :  { %4322 = vmatmul.mubr.msk.f32.gmra.mrb[44].mxu1 %vm1398_vm10, %v3335_v54 }
0x2ee4   :  { %4324 = vmatprep.mubr.msk.f32.mxu1 %vm4714_vm4, %v4705_v1 }
0x2ee7   :  { %4325 = vmatmul.mubr.msk.f32.gmra.mrb[46].mxu1 %vm1398_vm10, %v3336_v56 }
0x2ee8   :  { %4327 = vmatprep.mubr.msk.f32.mxu1 %vm4714_vm4, %v4705_v1 }
0x2eeb   :  { %4328 = vmatmul.mubr.msk.f32.gmra.mrb[48].mxu1 %vm1398_vm10, %v3337_v57 }
0x2eec   :  { %4330 = vmatprep.mubr.msk.f32.mxu1 %vm4714_vm4, %v4705_v1 }
0x2eef   :  { %4331 = vmatmul.mubr.msk.f32.gmra.mrb[50].mxu1 %vm1398_vm10, %v3338_v58 }
0x2ef0   :  { %4333 = vmatprep.mubr.msk.f32.mxu1 %vm4714_vm4, %v4705_v1 }
0x2ef3   :  { %4334 = vmatmul.mubr.msk.f32.gmra.mrb[52].mxu1 %vm1398_vm10, %v3339_v62 }
0x2ef4   :  { %4336 = vmatprep.mubr.msk.f32.mxu1 %vm4714_vm4, %v4705_v1 }
0x2ef7   :  { %4337 = vmatmul.mubr.msk.f32.gmra.mrb[54].mxu1 %vm1398_vm10, %v3340_v63 }
0x2ef8   :  { %4339 = vmatprep.mubr.msk.f32.mxu1 %vm4714_vm4, %v4705_v1 }
0x2efb   :  { %4340 = vmatmul.mubr.msk.f32.gmra.mrb[56].mxu1 %vm1398_vm10, %v3341_v0  ;;  %v3392_v0 = vpop.permute.xlu1 %3391 }
0x2efc   :  { %4342 = vmatprep.mubr.msk.f32.mxu1 %vm4714_vm4, %v4705_v1 }
0x2eff   :  { %4343 = vmatmul.mubr.msk.f32.gmra.mrb[58].mxu1 %vm1398_vm10, %v3342_v2  ;;  %v3402_v13 = vpop.permute.xlu1 %3401 }
0x2f00   :  { %4345 = vmatprep.mubr.msk.f32.mxu1 %vm4714_vm4, %v4705_v1 }
0x2f03   :  { %4346 = vmatmul.mubr.msk.f32.gmra.mrb[60].mxu1 %vm1398_vm10, %v3343_v3  ;;  %v3397_v3 = vpop.permute.xlu0 %3396 }
0x2f04   :  { %4348 = vmatprep.mubr.msk.f32.mxu1 %vm4714_vm4, %v4705_v1 }
0x2f07   :  { %4349 = vmatmul.mubr.msk.f32.gmra.mrb[62].mxu1 %vm1398_vm10, %v3344_v4  ;;  %v3407_v15 = vpop.permute.xlu0 %3406 }
0x2f08   :  { %4351 = vmatprep.mubr.msk.f32.mxu1 %vm4714_vm4, %v4705_v1 }
0x2f0b   :  { %4352 = vmatmul.mubr.msk.f32.gmra.mrb[64].mxu1 %vm1398_vm10, %v3345_v5 }
0x2f0c   :  { %4354 = vmatprep.mubr.msk.f32.mxu1 %vm4714_vm4, %v4705_v1 }
0x2f0f   :  { %4355 = vmatmul.mubr.msk.f32.gmra.mrb[66].mxu1 %vm1398_vm10, %v3346_v8 }
0x2f10   :  { %4357 = vmatprep.mubr.msk.f32.mxu1 %vm4714_vm4, %v4705_v1 }
0x2f13   :  { %4358 = vmatmul.mubr.msk.f32.gmra.mrb[68].mxu1 %vm1398_vm10, %v3347_v9 }
0x2f14   :  { %4360 = vmatprep.mubr.msk.f32.mxu1 %vm4714_vm4, %v4705_v1  ;;  %vm3831_vm4 = vcmask 8192  }
0x2f17   :  { %4361 = vmatmul.mubr.msk.f32.gmra.mrb[70].mxu1 %vm1398_vm10, %v3348_v10 }
0x2f8a   :  { %v3595_v18 = vpop.f32.mrb[22].mxu1 }
0x2f8b   :  { %v4290_v20 = vpop.f32.mrb[23].mxu1  ;;  %v3596_v21 = vadd.f32 %v3595_v18, %v3352_v19 }
0x2f8d   :  { %v3719_v26 = vmax.f32 %v3596_v21, 0.0 }
0x2f8e   :  { %v3600_v23 = vpop.f32.mrb[24].mxu1 }
0x2f8f   :  { %v3601_v24 = vadd.f32 %v3600_v23, %v3357_v22  ;;  %v4293_v25 = vpop.f32.mrb[25].mxu1 }
0x2f90   :  { %v3412_v25 = vpop.permute.xlu1 %3411 }
0x2f91   :  { %v3720_v27 = vmax.f32 %v3601_v24, 0.0 }
0x2f92   :  { %v3605_v28 = vpop.f32.mrb[26].mxu1 }
0x2f93   :  { %v4408_v29 = vpack.c.bf16 %v3720_v27, %v3719_v26  ;;  %v4296_v59 = vpop.f32.mrb[27].mxu1  ;;  %v3606_v31 = vadd.f32 %v3605_v28, %v3362_v30  ;;  %v3417_v27 = vpop.permute.xlu0 %3416 }
0x2f95   :  { %4409 = vmatpush1.bf16.msra.mxu0 %v4408_v29  ;;  %v3721_v36 = vmax.f32 %v3606_v31, 0.0 }
0x2f96   :  { %v3610_v33 = vpop.f32.mrb[28].mxu1  ;;  %4410 = vmatprep.subr.bf16.mxu0 %v4709_v7 }
0x2f97   :  { %v3611_v34 = vadd.f32 %v3610_v33, %v3367_v32  ;;  %v4299_v35 = vpop.f32.mrb[29].mxu1 }
0x2f98   :  { %v3422_v35 = vpop.permute.xlu1 %3421 }
0x2f99   :  { %v3722_v37 = vmax.f32 %v3611_v34, 0.0 }
0x2f9a   :  { %v3615_v38 = vpop.f32.mrb[30].mxu1 }
0x2f9b   :  { %v4411_v61 = vpack.c.bf16 %v3722_v37, %v3721_v36  ;;  %v4302_v39 = vpop.f32.mrb[31].mxu1  ;;  %v3616_v60 = vadd.f32 %v3615_v38, %v3372_v40  ;;  %v3427_v37 = vpop.permute.xlu0 %3426 }
0x2f9d   :  { %4412 = vmatpush1.bf16.msra.mxu0 %v4411_v61  ;;  %v3723_v45 = vmax.f32 %v3616_v60, 0.0 }
0x2f9e   :  { %v3620_v41 = vpop.f32.mrb[32].mxu1  ;;  %4413 = vmatprep.subr.bf16.mxu0 %v4709_v7 }
0x2f9f   :  { %v3621_v42 = vadd.f32 %v3620_v41, %v3377_v55  ;;  %v4305_v43 = vpop.f32.mrb[33].mxu1 }
0x2fa0   :  { %v3432_v43 = vpop.permute.xlu1 %3431 }
0x2fa1   :  { %v3724_v46 = vmax.f32 %v3621_v42, 0.0 }
0x2fa2   :  { %v3625_v44 = vpop.f32.mrb[34].mxu1 }
0x2fa3   :  { %v4414_v47 = vpack.c.bf16 %v3724_v46, %v3723_v45  ;;  %v4308_v48 = vpop.f32.mrb[35].mxu1  ;;  %v3626_v50 = vadd.f32 %v3625_v44, %v3382_v49  ;;  %v3437_v46 = vpop.permute.xlu0 %3436 }
0x2fa5   :  { %4415 = vmatpush1.bf16.msra.mxu0 %v4414_v47  ;;  %v3725_v56 = vmax.f32 %v3626_v50, 0.0 }
0x2fa6   :  { %v3630_v52 = vpop.f32.mrb[36].mxu1  ;;  %4416 = vmatprep.subr.bf16.mxu0 %v4709_v7 }
0x2fa7   :  { %v3631_v53 = vadd.f32 %v3630_v52, %v3387_v51  ;;  %v4311_v54 = vpop.f32.mrb[37].mxu1 }
0x2fa8   :  { %v3442_v54 = vpop.permute.xlu1 %3441 }
0x2fa9   :  { %v3726_v57 = vmax.f32 %v3631_v53, 0.0 }
0x2faa   :  { %v3635_v58 = vpop.f32.mrb[38].mxu1 }
0x2fab   :  { %v4417_v62 = vpack.c.bf16 %v3726_v57, %v3725_v56  ;;  %v4314_v63 = vpop.f32.mrb[39].mxu1  ;;  %v3636_v2 = vadd.f32 %v3635_v58, %v3392_v0  ;;  %v3447_v57 = vpop.permute.xlu0 %3446 }
0x2fad   :  { %4418 = vmatpush1.bf16.msra.mxu0 %v4417_v62  ;;  %v3727_v8 = vmax.f32 %v3636_v2, 0.0 }
0x2fae   :  { %v3640_v4 = vpop.f32.mrb[40].mxu1  ;;  %4419 = vmatprep.subr.bf16.mxu0 %v4709_v7 }
0x2faf   :  { %v3641_v5 = vadd.f32 %v3640_v4, %v3397_v3  ;;  %v4317_v6 = vpop.f32.mrb[41].mxu1 }
0x2fb0   :  { %v3452_v6 = vpop.permute.xlu1 %3451 }
0x2fb1   :  { %v3728_v9 = vmax.f32 %v3641_v5, 0.0 }
0x2fb2   :  { %v3645_v10 = vpop.f32.mrb[42].mxu1 }
0x2fb3   :  { %v4420_v11 = vpack.c.bf16 %v3728_v9, %v3727_v8  ;;  %v4320_v12 = vpop.f32.mrb[43].mxu1  ;;  %v3646_v14 = vadd.f32 %v3645_v10, %v3402_v13  ;;  %v3457_v9 = vpop.permute.xlu0 %3456 }
0x2fb5   :  { %4421 = vmatpush1.bf16.msra.mxu0 %v4420_v11  ;;  %v3729_v20 = vmax.f32 %v3646_v14, 0.0 }
0x2fb6   :  { %v3650_v16 = vpop.f32.mrb[44].mxu1  ;;  %4422 = vmatprep.subr.bf16.mxu0 %v4709_v7 }
0x2fb7   :  { %v3651_v18 = vadd.f32 %v3650_v16, %v3407_v15  ;;  %v4323_v19 = vpop.f32.mrb[45].mxu1 }
0x2fb8   :  { %v3462_v19 = vpop.permute.xlu1 %3461 }
0x2fb9   :  { %v3730_v21 = vmax.f32 %v3651_v18, 0.0 }
0x2fba   :  { %v3655_v22 = vpop.f32.mrb[46].mxu1 }
0x2fbb   :  { %v4423_v23 = vpack.c.bf16 %v3730_v21, %v3729_v20  ;;  %v4326_v24 = vpop.f32.mrb[47].mxu1  ;;  %v3656_v26 = vadd.f32 %v3655_v22, %v3412_v25  ;;  %v3467_v21 = vpop.permute.xlu0 %3466 }
0x2fbd   :  { %4424 = vmatpush1.bf16.msra.mxu0 %v4423_v23  ;;  %v3731_v30 = vmax.f32 %v3656_v26, 0.0 }
0x2fbe   :  { %v3660_v28 = vpop.f32.mrb[48].mxu1  ;;  %4425 = vmatprep.subr.bf16.mxu0 %v4709_v7 }
0x2fbf   :  { %v3661_v29 = vadd.f32 %v3660_v28, %v3417_v27  ;;  %v4329_v59 = vpop.f32.mrb[49].mxu1  ;;  %v3472_v27 = vpop.permute.xlu1 %3471 }
0x2fc1   :  { %v3732_v31 = vmax.f32 %v3661_v29, 0.0 }
0x2fc2   :  { %v3665_v32 = vpop.f32.mrb[50].mxu1 }
0x2fc3   :  { %v4426_v33 = vpack.c.bf16 %v3732_v31, %v3731_v30  ;;  %v4332_v34 = vpop.f32.mrb[51].mxu1  ;;  %v3666_v36 = vadd.f32 %v3665_v32, %v3422_v35 }
0x2fc5   :  { %4427 = vmatpush1.bf16.msra.mxu0 %v4426_v33  ;;  %v3733_v40 = vmax.f32 %v3666_v36, 0.0 }
0x2fc6   :  { %v3670_v38 = vpop.f32.mrb[52].mxu1  ;;  %4428 = vmatprep.subr.bf16.mxu0 %v4709_v7 }
0x2fc7   :  { %v3671_v61 = vadd.f32 %v3670_v38, %v3427_v37  ;;  %v4335_v39 = vpop.f32.mrb[53].mxu1 }
0x2fc9   :  { %v3734_v60 = vmax.f32 %v3671_v61, 0.0 }
0x2fca   :  { %v3675_v55 = vpop.f32.mrb[54].mxu1 }
0x2fcb   :  { %v4429_v41 = vpack.c.bf16 %v3734_v60, %v3733_v40  ;;  %v4338_v42 = vpop.f32.mrb[55].mxu1  ;;  %v3676_v45 = vadd.f32 %v3675_v55, %v3432_v43 }
0x2fcd   :  { %4430 = vmatpush1.bf16.msra.mxu0 %v4429_v41  ;;  %v3735_v49 = vmax.f32 %v3676_v45, 0.0 }
0x2fce   :  { %v3680_v44 = vpop.f32.mrb[56].mxu1  ;;  %4431 = vmatprep.subr.bf16.mxu0 %v4709_v7 }
0x2fcf   :  { %v3681_v47 = vadd.f32 %v3680_v44, %v3437_v46  ;;  %v4341_v48 = vpop.f32.mrb[57].mxu1 }
0x2fd1   :  { %v3736_v50 = vmax.f32 %v3681_v47, 0.0 }
0x2fd2   :  { %v3685_v51 = vpop.f32.mrb[58].mxu1 }
0x2fd3   :  { %v4432_v52 = vpack.c.bf16 %v3736_v50, %v3735_v49  ;;  %v4344_v53 = vpop.f32.mrb[59].mxu1  ;;  %v3686_v56 = vadd.f32 %v3685_v51, %v3442_v54 }
0x2fd5   :  { %4433 = vmatpush1.bf16.msra.mxu0 %v4432_v52  ;;  %v3737_v0 = vmax.f32 %v3686_v56, 0.0 }
0x2fd6   :  { %v3690_v58 = vpop.f32.mrb[60].mxu1  ;;  %4434 = vmatprep.subr.bf16.mxu0 %v4709_v7 }
0x2fd7   :  { %v3691_v62 = vadd.f32 %v3690_v58, %v3447_v57  ;;  %v4347_v63 = vpop.f32.mrb[61].mxu1 }
0x2fd9   :  { %v3738_v2 = vmax.f32 %v3691_v62, 0.0 }
0x2fda   :  { %v3695_v3 = vpop.f32.mrb[62].mxu1 }
0x2fdb   :  { %v4435_v4 = vpack.c.bf16 %v3738_v2, %v3737_v0  ;;  %v4350_v5 = vpop.f32.mrb[63].mxu1  ;;  %v3696_v8 = vadd.f32 %v3695_v3, %v3452_v6 }
0x2fdd   :  { %4436 = vmatpush1.bf16.msra.mxu0 %v4435_v4  ;;  %v3739_v13 = vmax.f32 %v3696_v8, 0.0 }
0x2fde   :  { %v3700_v10 = vpop.f32.mrb[64].mxu1  ;;  %4437 = vmatprep.subr.bf16.mxu0 %v4709_v7 }
0x2fdf   :  { %v3701_v11 = vadd.f32 %v3700_v10, %v3457_v9  ;;  %v4353_v12 = vpop.f32.mrb[65].mxu1 }
0x2fe1   :  { %v3740_v14 = vmax.f32 %v3701_v11, 0.0 }
0x2fe2   :  { %v3705_v15 = vpop.f32.mrb[66].mxu1 }
0x2fe3   :  { %v4438_v16 = vpack.c.bf16 %v3740_v14, %v3739_v13  ;;  %v4356_v18 = vpop.f32.mrb[67].mxu1  ;;  %v3706_v20 = vadd.f32 %v3705_v15, %v3462_v19 }
0x2fe5   :  { %4439 = vmatpush1.bf16.msra.mxu0 %v4438_v16  ;;  %v3741_v25 = vmax.f32 %v3706_v20, 0.0 }
0x2fe6   :  { %v3710_v22 = vpop.f32.mrb[68].mxu1  ;;  %4440 = vmatprep.subr.bf16.mxu0 %v4709_v7 }
0x2fe7   :  { %v3711_v23 = vadd.f32 %v3710_v22, %v3467_v21  ;;  %v4359_v24 = vpop.f32.mrb[69].mxu1 }
0x2fe9   :  { %v3742_v26 = vmax.f32 %v3711_v23, 0.0 }
0x2fea   :  { %v3715_v28 = vpop.f32.mrb[70].mxu1 }
0x2feb   :  { %v4441_v29 = vpack.c.bf16 %v3742_v26, %v3741_v25  ;;  %v3716_v59 = vadd.f32 %v3715_v28, %v3472_v27  ;;  %v4362_v30 = vpop.f32.mrb[71].mxu1 }
0x2fed   :  { %4442 = vmatpush1.bf16.msra.mxu0 %v4441_v29  ;;  %v3743_v31 = vmax.f32 %v3716_v59, 0.0 }
0x2fee   :  { %3809 = vmatprep.subr.mxu0 %v4705_v1 }
0x2ff1   :  { %3978 = vmatpush1.msk.msra.mxu0 %vm87_vm5, %v3743_v31 }
0x2ff2   :  { %3826 = vmatmul.mubr.f32.vlgmr.msra.gmra.mrb[32].mxu0 %v5315_v17 }
0x30c5   :  { %v3827_v7 = vpop.f32.mrb[32].mxu0 }
0x30c6   :  { %3832 = vst.msk [vmem:[#allocation4] sm:$0x1] %vm3831_vm4, %v3827_v7  ;;  %v3829_v32 = vpop.f32.mrb[33].mxu0 }
0x30c7   :  { %4691 = shalt.err (!%p4688_p4)
}
0x30c8   :  { %s4692_s7 = scalar_lea.hbm %s5348_s5, 16 }
0x30c9   :  { %p4693_p5 = scmp.ne.s32.totalorder %s5348_s5, %s4692_s7  ;;  %p4696_p6 = scmp.lt.u32.totalorder %s4692_s7, %s5348_s5 }
0x30cb   :  { %p4698_p7 = pnand %p4696_p6, %p4693_p5 }
0x30cd   :  { %4701 = shalt.err (!%p4698_p7)
}
0x30ce   :  { %3842 = dma.vmem_to_hbm [thread:$0]  %s3840_s27, 16, %s5348_s5, [#allocation5]  }
0x30cf   :  { %4702 = dma.done.wait [#allocation5], 16  }
0x30d0   :  { %4703 = vsyncadd [#allocation5], 4294967280 }
0x30d1   :  { %3846 = vsyncpa [#allocation5], 1 }

</bundles_post_ra>
